<compile_context>
chip_gen: v7x
topology: tpu7x:2x2x1
jax: 0.10.0
libtpu: 0.0.40
codegen_flags: <defaults>
</compile_context>

<pallas_src>
import functools

import jax
import jax.numpy as jnp
import numpy as np
from jax.experimental import pallas as pl
from jax.experimental.pallas import tpu as pltpu

BOTTLENECK = 256
VMEM_LIMIT = 32 << 20  # legal on v5e/v6e (128 MiB) and v7x (64 MiB physical)

# (Cin, Cout, group) for conv1/conv2; group * Cout == 256 -> lane-dense GEMM N.
_CONV12_CFG = ((3, 32, 8), (32, 64, 4))
_C3_IN, _C3_OUT = 64, 128
_C3_K = 9 * _C3_IN            # 576
_C3_KPAD = 640                # padded to a multiple of 128
_FC_SPATIAL = 64              # 8*8 spatial positions feeding the FC
_N_PAD = 8                    # batch padded to one f32 sublane tile
_S_CHUNK = 16                 # spatial rows / fc_w chunk per grid step (1 MiB)


def _round_up(x, m):
    return (x + m - 1) // m * m


def _kpg(cin):
    return _round_up(9 * cin, 8)


def _megacore():
    """True on parts with 2 TensorCores behind one device (v4 / v5p / v7x)."""
    try:
        kind = jax.devices()[0].device_kind.lower()
    except Exception:
        return False
    return any(tag in kind for tag in ("v4", "v5p", "v7"))


# ----------------------------------------------------------------------------
# Pallas kernel 1: fused (X @ W + b) + ReLU, f32 accumulation (conv1 / conv2)
# ----------------------------------------------------------------------------
def _gemm_bias_relu_kernel(x_ref, w_ref, b_ref, o_ref):
    acc = jnp.dot(x_ref[...], w_ref[...], preferred_element_type=jnp.float32)
    o_ref[...] = jnp.maximum(acc + b_ref[...], 0.0).astype(o_ref.dtype)


def conv_gemm(xg, w_gemm, b_gemm):
    """relu(xg @ w_gemm + b_gemm); xg:(M,K) bf16, w:(K,256) bf16, b:(1,256) f32."""
    M, K = xg.shape
    K2, N = w_gemm.shape
    assert K == K2
    # grid >= 2 only pays off on megacore parts; single block elsewhere.
    tm = M // 2 if (_megacore() and M % 16 == 0) else M
    return pl.pallas_call(
        _gemm_bias_relu_kernel,
        out_shape=jax.ShapeDtypeStruct((M, N), jnp.bfloat16),
        grid_spec=pltpu.PrefetchScalarGridSpec(
            num_scalar_prefetch=0,
            grid=(M // tm,),
            in_specs=[
                pl.BlockSpec((tm, K), lambda i: (i, 0)),   # row tile of patches
                pl.BlockSpec((K, N), lambda i: (0, 0)),    # whole weight, resident
                pl.BlockSpec((1, N), lambda i: (0, 0)),    # bias row, resident
            ],
            out_specs=pl.BlockSpec((tm, N), lambda i: (i, 0)),
        ),
        compiler_params=pltpu.CompilerParams(
            dimension_semantics=("parallel",),
            vmem_limit_bytes=VMEM_LIMIT,
        ),
    )(xg, w_gemm, b_gemm)


# ----------------------------------------------------------------------------
# Pallas kernel 2: fused conv3 GEMM (+bias+ReLU) and bottleneck FC
# ----------------------------------------------------------------------------
def _conv3_fc_kernel(xg_ref, w3_ref, b3_ref, fcw_ref, fcb_ref, z_ref, acc_ref,
                     *, n_pad, s_chunk, n_out):
    k = pl.program_id(0)

    @pl.when(k == 0)
    def _():
        acc_ref[...] = jnp.zeros_like(acc_ref)

    # conv3 GEMM on this chunk's (spatial, padded-batch) rows -> f3 chunk.
    y = jnp.dot(xg_ref[...], w3_ref[...], preferred_element_type=jnp.float32)
    y = jnp.maximum(y + b3_ref[...], 0.0)                    # (s_chunk*n_pad, 128)
    y3 = y.reshape(s_chunk, n_pad, y.shape[-1]).astype(jnp.bfloat16)

    # FC partial sum: batched over the spatial dim, contract channels on MXU.
    part = jnp.einsum("snc,sco->sno", y3, fcw_ref[...],
                      preferred_element_type=jnp.float32)    # (s_chunk, n_pad, 256)
    acc_ref[...] += jnp.sum(part, axis=0)

    @pl.when(k == pl.num_programs(0) - 1)
    def _():
        acc = acc_ref[...]
        z_ref[...] = acc[0:n_out, :] + fcb_ref[...]


def conv3_fc(xg3, w3, b3, fc_w3d, fc_b, n_out):
    """Fused 3x3/s2 conv3-as-GEMM + FC.

    xg3    : (S * n_pad, Kp) bf16, rows ordered (spatial, padded batch)
    w3     : (Kp, 128)       bf16
    b3     : (1, 128)        f32
    fc_w3d : (S, 128, 256)   bf16  -- fc weight regrouped per spatial position
    fc_b   : (1, 256)        f32
    """
    rows, kp = xg3.shape
    S, C3, NO = fc_w3d.shape
    n_pad = rows // S
    n_chunks = S // _S_CHUNK
    kernel = functools.partial(_conv3_fc_kernel, n_pad=n_pad,
                               s_chunk=_S_CHUNK, n_out=n_out)
    return pl.pallas_call(
        kernel,
        out_shape=jax.ShapeDtypeStruct((n_out, NO), jnp.float32),
        grid_spec=pltpu.PrefetchScalarGridSpec(
            num_scalar_prefetch=0,
            grid=(n_chunks,),
            in_specs=[
                pl.BlockSpec((_S_CHUNK * n_pad, kp), lambda k: (k, 0)),  # patches
                pl.BlockSpec((kp, C3), lambda k: (0, 0)),                # w3 resident
                pl.BlockSpec((1, C3), lambda k: (0, 0)),                 # b3 resident
                pl.BlockSpec((_S_CHUNK, C3, NO), lambda k: (k, 0, 0)),   # fc_w stream
                pl.BlockSpec((1, NO), lambda k: (0, 0)),                 # fc_b resident
            ],
            out_specs=pl.BlockSpec((n_out, NO), lambda k: (0, 0)),
            scratch_shapes=[pltpu.VMEM((n_pad, NO), jnp.float32)],
        ),
        compiler_params=pltpu.CompilerParams(
            dimension_semantics=("arbitrary",),
            vmem_limit_bytes=VMEM_LIMIT,
        ),
    )(xg3, w3, b3, fc_w3d, fc_b)


# ----------------------------------------------------------------------------
# Conv-as-GEMM glue (plain JAX): im2col for 3x3 / stride 2 / pad 1
# ----------------------------------------------------------------------------
def _im2col_3x3_s2_p1(x_nhwc, k_pad=0):
    """Patches with (dy, dx, cin) K-order; optional trailing zero K-pad."""
    N, H, W, C = x_nhwc.shape
    Ho, Wo = H // 2, W // 2
    xp = jnp.pad(x_nhwc, ((0, 0), (1, 1), (1, 1), (0, 0)))
    cols = [xp[:, dy:dy + 2 * Ho:2, dx:dx + 2 * Wo:2, :]
            for dy in range(3) for dx in range(3)]
    if k_pad:
        cols.append(jnp.zeros((N, Ho, Wo, k_pad), x_nhwc.dtype))
    return jnp.concatenate(cols, axis=-1), Ho, Wo      # (N, Ho, Wo, 9*C + k_pad)


def _conv_block(x_nhwc, w_gemm, b_gemm, cout, group, kpg):
    """3x3/s2/p1 conv + ReLU via a grouped (256-lane) Pallas GEMM."""
    N = x_nhwc.shape[0]
    cin = x_nhwc.shape[-1]
    patches, Ho, Wo = _im2col_3x3_s2_p1(x_nhwc, k_pad=kpg - 9 * cin)
    M = N * Ho * Wo
    xg = patches.reshape(M // group, group * kpg)       # free row-major reshape
    y = conv_gemm(xg, w_gemm, b_gemm)                   # (M//group, group*cout)
    return y.reshape(N, Ho, Wo, cout)                   # free row-major reshape


# ----------------------------------------------------------------------------
# One-time repack of PyTorch-layout params into GEMM-ready bf16 operands
# ----------------------------------------------------------------------------
def prepare_encoder_params(params):
    enc = {}
    for idx, (cin, cout, group) in enumerate(_CONV12_CFG, start=1):
        w = params[f"w{idx}"]                              # (Cout, Cin, 3, 3)
        b = params[f"b{idx}"]
        wmat = jnp.transpose(w, (2, 3, 1, 0)).reshape(9 * cin, cout)
        kpg = _kpg(cin)
        if kpg != 9 * cin:
            wmat = jnp.pad(wmat, ((0, kpg - 9 * cin), (0, 0)))
        # Block-diagonal kron(I_G, W): GEMM N = group*cout = 256 (lane-dense).
        w_gemm = jnp.kron(jnp.eye(group, dtype=wmat.dtype), wmat)
        b_gemm = jnp.tile(b, group).reshape(1, group * cout)
        enc[f"conv{idx}"] = (w_gemm.astype(jnp.bfloat16),
                             b_gemm.astype(jnp.float32))
    # conv3: plain weight (no kron), K padded 576 -> 640 for aligned LHS rows.
    w3 = jnp.transpose(params["w3"], (2, 3, 1, 0)).reshape(_C3_K, _C3_OUT)
    w3 = jnp.pad(w3, ((0, _C3_KPAD - _C3_K), (0, 0)))
    enc["w3"] = w3.astype(jnp.bfloat16)
    enc["b3"] = params["b3"].reshape(1, _C3_OUT).astype(jnp.float32)
    # FC weight regrouped ONCE to (spatial, Cin, out) so the fused kernel
    # consumes f3 in conv-GEMM order: fc_w3d[s, c, o] = fc_w[o, c*64 + s].
    fcw = params["fc_w"]
    nb = fcw.shape[0]
    fcw = fcw.reshape(nb, _C3_OUT, 8, 8)
    fcw = jnp.transpose(fcw, (2, 3, 1, 0)).reshape(_FC_SPATIAL, _C3_OUT, nb)
    enc["fc_w3d"] = fcw.astype(jnp.bfloat16)
    enc["fc_b"] = params["fc_b"].reshape(1, nb).astype(jnp.float32)
    return enc


# ----------------------------------------------------------------------------
# SemanticEncoder forward
# ----------------------------------------------------------------------------
def semantic_encoder_forward(enc, x_nchw):
    n = x_nchw.shape[0]
    x = jnp.transpose(x_nchw, (0, 2, 3, 1)).astype(jnp.bfloat16)   # NCHW -> NHWC

    feats = []
    for idx, (cin, cout, group) in enumerate(_CONV12_CFG, start=1):
        w_gemm, b_gemm = enc[f"conv{idx}"]
        x = _conv_block(x, w_gemm, b_gemm, cout, group, _kpg(cin))
        feats.append(x)
    f1, f2 = feats                                     # NHWC bf16

    # conv3 patches: rows reordered spatial-major and batch padded to a full
    # f32 sublane tile so the fused kernel can view f3 as (S, n_pad, 128).
    p3, Ho3, Wo3 = _im2col_3x3_s2_p1(f2, k_pad=_C3_KPAD - _C3_K)   # (N,8,8,640)
    s3 = Ho3 * Wo3
    xg3 = jnp.transpose(p3.reshape(n, s3, _C3_KPAD), (1, 0, 2))    # (S, N, 640)
    xg3 = jnp.pad(xg3, ((0, 0), (0, _N_PAD - n), (0, 0)))          # (S, 8, 640)
    xg3 = xg3.reshape(s3 * _N_PAD, _C3_KPAD)

    z = conv3_fc(xg3, enc["w3"], enc["b3"], enc["fc_w3d"], enc["fc_b"], n)

    # Returned features keep the PyTorch NCHW / f32 convention.
    # TODO(synk): emit NCHW f32 directly from the conv GEMM kernels (second
    # out_spec) to drop these two small relayout ops.
    f1_nchw = jnp.transpose(f1, (0, 3, 1, 2)).astype(jnp.float32)
    f2_nchw = jnp.transpose(f2, (0, 3, 1, 2)).astype(jnp.float32)
    return z, (f1_nchw, f2_nchw)


# ----------------------------------------------------------------------------
# Deterministic parameter init (PyTorch-style uniform fan-in bounds)
# ----------------------------------------------------------------------------
def init_params(key, bottleneck=BOTTLENECK):
    def conv_init(k, cout, cin):
        k1, k2 = jax.random.split(k)
        bound = 1.0 / np.sqrt(cin * 9)
        w = jax.random.uniform(k1, (cout, cin, 3, 3), jnp.float32, -bound, bound)
        b = jax.random.uniform(k2, (cout,), jnp.float32, -bound, bound)
        return w, b

    k1, k2, k3, k4 = jax.random.split(key, 4)
    w1, b1 = conv_init(k1, 32, 3)
    w2, b2 = conv_init(k2, 64, 32)
    w3, b3 = conv_init(k3, 128, 64)
    fan_in = 128 * 8 * 8
    bound = 1.0 / np.sqrt(fan_in)
    ka, kb = jax.random.split(k4)
    fc_w = jax.random.uniform(ka, (bottleneck, fan_in), jnp.float32, -bound, bound)
    fc_b = jax.random.uniform(kb, (bottleneck,), jnp.float32, -bound, bound)
    return dict(w1=w1, b1=b1, w2=w2, b2=b2, w3=w3, b3=b3, fc_w=fc_w, fc_b=fc_b)


# ----------------------------------------------------------------------------
# Pure-JAX f32 reference (for correctness check)
# ----------------------------------------------------------------------------
def reference_forward(params, x_nchw):
    def conv(x, w, b):
        y = jax.lax.conv_general_dilated(
            x, w, window_strides=(2, 2), padding=((1, 1), (1, 1)),
            dimension_numbers=("NCHW", "OIHW", "NCHW"))
        return jax.nn.relu(y + b[None, :, None, None])

    f1 = conv(x_nchw, params["w1"], params["b1"])
    f2 = conv(f1, params["w2"], params["b2"])
    f3 = conv(f2, params["w3"], params["b3"])
    z = f3.reshape(f3.shape[0], -1) @ params["fc_w"].T + params["fc_b"]
    return z, (f1, f2)


if __name__ == "__main__":
    key = jax.random.PRNGKey(0)
    kx, kp = jax.random.split(key)

    # Spatial 64x64 / 3 channels is implied by the fc layer (128*8*8 features).
    x = jax.random.uniform(kx, (2, 3, 64, 64), jnp.float32)
    params = init_params(kp)
    enc_params = prepare_encoder_params(params)   # one-time repack (bf16, kron, fc regroup)

    fwd = jax.jit(semantic_encoder_forward)
    z, (f1, f2) = fwd(enc_params, x)
    jax.block_until_ready(z)
    jax.block_until_ready(f1)
    jax.block_until_ready(f2)

    assert z.shape == (2, BOTTLENECK)
    assert f1.shape == (2, 32, 32, 32)
    assert f2.shape == (2, 64, 16, 16)

    z_ref, (f1_ref, f2_ref) = reference_forward(params, x)
    np.testing.assert_allclose(np.asarray(f1), np.asarray(f1_ref), atol=5e-2, rtol=5e-2)
    np.testing.assert_allclose(np.asarray(f2), np.asarray(f2_ref), atol=5e-2, rtol=5e-2)
    np.testing.assert_allclose(np.asarray(z), np.asarray(z_ref), atol=5e-2, rtol=5e-2)

    print("KERNEL_OK")
</pallas_src>

<mosaic_0001>
module attributes {stable_mosaic.version = 11 : i64} {
  func.func @_gemm_bias_relu_kernel(%arg0: i32, %arg1: memref<256x256xbf16, #tpu.memory_space<vmem>>, %arg2: memref<256x256xbf16, #tpu.memory_space<vmem>>, %arg3: memref<1x256xf32, #tpu.memory_space<vmem>>, %arg4: memref<256x256xbf16, #tpu.memory_space<vmem>>) attributes {dimension_semantics = [#tpu.dimension_semantics<parallel>], iteration_bounds = array<i64: 1>, scalar_prefetch = 0 : i64, scratch_operands = 0 : i64, tpu.core_type = #tpu.core_type<tc>, window_params = [{transform_indices = @transform_0, window_bounds = array<i64: 256, 256>}, {pipeline_mode = #tpu.pipeline_mode<synchronous>, transform_indices = @transform_1, window_bounds = array<i64: 256, 256>}, {pipeline_mode = #tpu.pipeline_mode<synchronous>, transform_indices = @transform_2, window_bounds = array<i64: 1, 256>}, {transform_indices = @transform_3, window_bounds = array<i64: 256, 256>}]} {
    %c0 = arith.constant 0 : index
    %c0_0 = arith.constant 0 : index
    %0 = vector.load %arg1[%c0, %c0_0] : memref<256x256xbf16, #tpu.memory_space<vmem>>, vector<256x256xbf16>
    %c0_1 = arith.constant 0 : index
    %c0_2 = arith.constant 0 : index
    %1 = vector.load %arg2[%c0_1, %c0_2] : memref<256x256xbf16, #tpu.memory_space<vmem>>, vector<256x256xbf16>
    %cst = arith.constant dense<0.000000e+00> : vector<256x256xf32>
    %2 = tpu.matmul %0, %1, %cst {dimension_numbers = #tpu.dot_dimension_numbers<[1], [0], [0], [1], [0, 0, 1, 1], [], []>} : vector<256x256xbf16>, vector<256x256xbf16>, vector<256x256xf32> -> vector<256x256xf32>
    %c0_3 = arith.constant 0 : index
    %c0_4 = arith.constant 0 : index
    %3 = vector.load %arg3[%c0_3, %c0_4] : memref<1x256xf32, #tpu.memory_space<vmem>>, vector<1x256xf32>
    %4 = vector.broadcast %3 : vector<1x256xf32> to vector<256x256xf32>
    %5 = arith.addf %2, %4 : vector<256x256xf32>
    %cst_5 = arith.constant 0.000000e+00 : f32
    %6 = vector.broadcast %cst_5 : f32 to vector<256x256xf32>
    %7 = arith.maximumf %5, %6 : vector<256x256xf32>
    %8 = arith.truncf %7 : vector<256x256xf32> to vector<256x256xbf16>
    %c0_6 = arith.constant 0 : index
    %c0_7 = arith.constant 0 : index
    %9 = vector.load %arg4[%c0_6, %c0_7] : memref<256x256xbf16, #tpu.memory_space<vmem>>, vector<256x256xbf16>
    tpu.vector_store %arg4[%c0_6, %c0_7], %8 {strides = array<i32>} : memref<256x256xbf16, #tpu.memory_space<vmem>>, vector<256x256xbf16>,
    return
  }
  func.func @transform_0(%arg0: i32) -> (i32, i32) {
    %c0_i32 = arith.constant 0 : i32
    %c0_i32_0 = arith.constant 0 : i32
    return %arg0, %c0_i32 : i32, i32
  }
  func.func @transform_1(%arg0: i32) -> (i32, i32) {
    %c0_i32 = arith.constant 0 : i32
    %c0_i32_0 = arith.constant 0 : i32
    %c0_i32_1 = arith.constant 0 : i32
    return %c0_i32, %c0_i32_0 : i32, i32
  }
  func.func @transform_2(%arg0: i32) -> (i32, i32) {
    %c0_i32 = arith.constant 0 : i32
    %c0_i32_0 = arith.constant 0 : i32
    %c0_i32_1 = arith.constant 0 : i32
    return %c0_i32, %c0_i32_0 : i32, i32
  }
  func.func @transform_3(%arg0: i32) -> (i32, i32) {
    %c0_i32 = arith.constant 0 : i32
    %c0_i32_0 = arith.constant 0 : i32
    return %arg0, %c0_i32 : i32, i32
  }
}

module attributes {stable_mosaic.version = 11 : i64} {
  func.func @_gemm_bias_relu_kernel(%arg0: i32, %arg1: memref<128x1152xbf16, #tpu.memory_space<vmem>>, %arg2: memref<1152x256xbf16, #tpu.memory_space<vmem>>, %arg3: memref<1x256xf32, #tpu.memory_space<vmem>>, %arg4: memref<128x256xbf16, #tpu.memory_space<vmem>>) attributes {dimension_semantics = [#tpu.dimension_semantics<parallel>], iteration_bounds = array<i64: 1>, scalar_prefetch = 0 : i64, scratch_operands = 0 : i64, tpu.core_type = #tpu.core_type<tc>, window_params = [{transform_indices = @transform_0, window_bounds = array<i64: 128, 1152>}, {pipeline_mode = #tpu.pipeline_mode<synchronous>, transform_indices = @transform_1, window_bounds = array<i64: 1152, 256>}, {pipeline_mode = #tpu.pipeline_mode<synchronous>, transform_indices = @transform_2, window_bounds = array<i64: 1, 256>}, {transform_indices = @transform_3, window_bounds = array<i64: 128, 256>}]} {
    %c0 = arith.constant 0 : index
    %c0_0 = arith.constant 0 : index
    %0 = vector.load %arg1[%c0, %c0_0] : memref<128x1152xbf16, #tpu.memory_space<vmem>>, vector<128x1152xbf16>
    %c0_1 = arith.constant 0 : index
    %c0_2 = arith.constant 0 : index
    %1 = vector.load %arg2[%c0_1, %c0_2] : memref<1152x256xbf16, #tpu.memory_space<vmem>>, vector<1152x256xbf16>
    %cst = arith.constant dense<0.000000e+00> : vector<128x256xf32>
    %2 = tpu.matmul %0, %1, %cst {dimension_numbers = #tpu.dot_dimension_numbers<[1], [0], [0], [1], [0, 0, 1, 1], [], []>} : vector<128x1152xbf16>, vector<1152x256xbf16>, vector<128x256xf32> -> vector<128x256xf32>
    %c0_3 = arith.constant 0 : index
    %c0_4 = arith.constant 0 : index
    %3 = vector.load %arg3[%c0_3, %c0_4] : memref<1x256xf32, #tpu.memory_space<vmem>>, vector<1x256xf32>
    %4 = vector.broadcast %3 : vector<1x256xf32> to vector<128x256xf32>
    %5 = arith.addf %2, %4 : vector<128x256xf32>
    %cst_5 = arith.constant 0.000000e+00 : f32
    %6 = vector.broadcast %cst_5 : f32 to vector<128x256xf32>
    %7 = arith.maximumf %5, %6 : vector<128x256xf32>
    %8 = arith.truncf %7 : vector<128x256xf32> to vector<128x256xbf16>
    %c0_6 = arith.constant 0 : index
    %c0_7 = arith.constant 0 : index
    %9 = vector.load %arg4[%c0_6, %c0_7] : memref<128x256xbf16, #tpu.memory_space<vmem>>, vector<128x256xbf16>
    tpu.vector_store %arg4[%c0_6, %c0_7], %8 {strides = array<i32>} : memref<128x256xbf16, #tpu.memory_space<vmem>>, vector<128x256xbf16>,
    return
  }
  func.func @transform_0(%arg0: i32) -> (i32, i32) {
    %c0_i32 = arith.constant 0 : i32
    %c0_i32_0 = arith.constant 0 : i32
    return %arg0, %c0_i32 : i32, i32
  }
  func.func @transform_1(%arg0: i32) -> (i32, i32) {
    %c0_i32 = arith.constant 0 : i32
    %c0_i32_0 = arith.constant 0 : i32
    %c0_i32_1 = arith.constant 0 : i32
    return %c0_i32, %c0_i32_0 : i32, i32
  }
  func.func @transform_2(%arg0: i32) -> (i32, i32) {
    %c0_i32 = arith.constant 0 : i32
    %c0_i32_0 = arith.constant 0 : i32
    %c0_i32_1 = arith.constant 0 : i32
    return %c0_i32, %c0_i32_0 : i32, i32
  }
  func.func @transform_3(%arg0: i32) -> (i32, i32) {
    %c0_i32 = arith.constant 0 : i32
    %c0_i32_0 = arith.constant 0 : i32
    return %arg0, %c0_i32 : i32, i32
  }
}

module attributes {stable_mosaic.version = 11 : i64} {
  func.func @_conv3_fc_kernel(%arg0: i32, %arg1: memref<128x640xbf16, #tpu.memory_space<vmem>>, %arg2: memref<640x128xbf16, #tpu.memory_space<vmem>>, %arg3: memref<1x128xf32, #tpu.memory_space<vmem>>, %arg4: memref<16x128x256xbf16, #tpu.memory_space<vmem>>, %arg5: memref<1x256xf32, #tpu.memory_space<vmem>>, %arg6: memref<2x256xf32, #tpu.memory_space<vmem>>, %arg7: memref<8x256xf32, #tpu.memory_space<vmem>>) attributes {dimension_semantics = [#tpu.dimension_semantics<arbitrary>], iteration_bounds = array<i64: 4>, scalar_prefetch = 0 : i64, scratch_operands = 1 : i64, tpu.core_type = #tpu.core_type<tc>, window_params = [{transform_indices = @transform_0, window_bounds = array<i64: 128, 640>}, {pipeline_mode = #tpu.pipeline_mode<synchronous>, transform_indices = @transform_1, window_bounds = array<i64: 640, 128>}, {pipeline_mode = #tpu.pipeline_mode<synchronous>, transform_indices = @transform_2, window_bounds = array<i64: 1, 128>}, {transform_indices = @transform_3, window_bounds = array<i64: 16, 128, 256>}, {pipeline_mode = #tpu.pipeline_mode<synchronous>, transform_indices = @transform_4, window_bounds = array<i64: 1, 256>}, {pipeline_mode = #tpu.pipeline_mode<synchronous>, transform_indices = @transform_5, window_bounds = array<i64: 2, 256>}]} {
    %c0_i32 = arith.constant 0 : i32
    %0 = arith.cmpi eq, %arg0, %c0_i32 : i32
    %1 = arith.extui %0 : i1 to i32
    %c0_i32_0 = arith.constant 0 : i32
    %2 = arith.cmpi ne, %1, %c0_i32_0 : i32
    scf.if %2 {
      %cst_17 = arith.constant 0.000000e+00 : f32
      %22 = vector.broadcast %cst_17 : f32 to vector<8x256xf32>
      %c0_18 = arith.constant 0 : index
      %c0_19 = arith.constant 0 : index
      %23 = vector.load %arg7[%c0_18, %c0_19] : memref<8x256xf32, #tpu.memory_space<vmem>>, vector<8x256xf32>
      tpu.vector_store %arg7[%c0_18, %c0_19], %22 {strides = array<i32>} : memref<8x256xf32, #tpu.memory_space<vmem>>, vector<8x256xf32>,
    } else {
    }
    %c0 = arith.constant 0 : index
    %c0_1 = arith.constant 0 : index
    %3 = vector.load %arg1[%c0, %c0_1] : memref<128x640xbf16, #tpu.memory_space<vmem>>, vector<128x640xbf16>
    %c0_2 = arith.constant 0 : index
    %c0_3 = arith.constant 0 : index
    %4 = vector.load %arg2[%c0_2, %c0_3] : memref<640x128xbf16, #tpu.memory_space<vmem>>, vector<640x128xbf16>
    %cst = arith.constant dense<0.000000e+00> : vector<128x128xf32>
    %5 = tpu.matmul %3, %4, %cst {dimension_numbers = #tpu.dot_dimension_numbers<[1], [0], [0], [1], [0, 0, 1, 1], [], []>} : vector<128x640xbf16>, vector<640x128xbf16>, vector<128x128xf32> -> vector<128x128xf32>
    %c0_4 = arith.constant 0 : index
    %c0_5 = arith.constant 0 : index
    %6 = vector.load %arg3[%c0_4, %c0_5] : memref<1x128xf32, #tpu.memory_space<vmem>>, vector<1x128xf32>
    %7 = vector.broadcast %6 : vector<1x128xf32> to vector<128x128xf32>
    %8 = arith.addf %5, %7 : vector<128x128xf32>
    %cst_6 = arith.constant 0.000000e+00 : f32
    %9 = vector.broadcast %cst_6 : f32 to vector<128x128xf32>
    %10 = arith.maximumf %8, %9 : vector<128x128xf32>
    %11 = vector.shape_cast %10 : vector<128x128xf32> to vector<16x8x128xf32>
    %12 = arith.truncf %11 : vector<16x8x128xf32> to vector<16x8x128xbf16>
    %c0_7 = arith.constant 0 : index
    %c0_8 = arith.constant 0 : index
    %c0_9 = arith.constant 0 : index
    %13 = vector.load %arg4[%c0_7, %c0_8, %c0_9] : memref<16x128x256xbf16, #tpu.memory_space<vmem>>, vector<16x128x256xbf16>
    "tpu.trace_start"() <{level = 10 : i32, message = "snc,sco->sno"}> : () -> ()
    %cst_10 = arith.constant dense<0.000000e+00> : vector<16x8x256xf32>
    %14 = tpu.matmul %12, %13, %cst_10 {dimension_numbers = #tpu.dot_dimension_numbers<[2], [1], [1], [2], [0, 0, 0, 1, 1, 2], [0], [0]>} : vector<16x8x128xbf16>, vector<16x128x256xbf16>, vector<16x8x256xf32> -> vector<16x8x256xf32>
    "tpu.trace_stop"() : () -> ()
    %c0_11 = arith.constant 0 : index
    %c0_12 = arith.constant 0 : index
    %15 = vector.load %arg7[%c0_11, %c0_12] : memref<8x256xf32, #tpu.memory_space<vmem>>, vector<8x256xf32>
    %cst_13 = arith.constant dense<0.000000e+00> : vector<8x256xf32>
    %16 = vector.multi_reduction <add>, %14, %cst_13 [0] : vector<16x8x256xf32> to vector<8x256xf32>
    %17 = arith.addf %15, %16 : vector<8x256xf32>
    %c0_14 = arith.constant 0 : index
    %c0_15 = arith.constant 0 : index
    %18 = vector.load %arg7[%c0_14, %c0_15] : memref<8x256xf32, #tpu.memory_space<vmem>>, vector<8x256xf32>
    tpu.vector_store %arg7[%c0_14, %c0_15], %17 {strides = array<i32>} : memref<8x256xf32, #tpu.memory_space<vmem>>, vector<8x256xf32>,
    %c3_i32 = arith.constant 3 : i32
    %19 = arith.cmpi eq, %arg0, %c3_i32 : i32
    %20 = arith.extui %19 : i1 to i32
    %c0_i32_16 = arith.constant 0 : i32
    %21 = arith.cmpi ne, %20, %c0_i32_16 : i32
    scf.if %21 {
      %c0_17 = arith.constant 0 : index
      %c0_18 = arith.constant 0 : index
      %22 = vector.load %arg7[%c0_17, %c0_18] : memref<8x256xf32, #tpu.memory_space<vmem>>, vector<8x256xf32>
      %23 = vector.extract_strided_slice %22 {offsets = [0, 0], sizes = [2, 256], strides = [1, 1]} : vector<8x256xf32> to vector<2x256xf32>
      %c0_19 = arith.constant 0 : index
      %c0_20 = arith.constant 0 : index
      %24 = vector.load %arg5[%c0_19, %c0_20] : memref<1x256xf32, #tpu.memory_space<vmem>>, vector<1x256xf32>
      %25 = vector.broadcast %24 : vector<1x256xf32> to vector<2x256xf32>
      %26 = arith.addf %23, %25 : vector<2x256xf32>
      %c0_21 = arith.constant 0 : index
      %c0_22 = arith.constant 0 : index
      %27 = vector.load %arg6[%c0_21, %c0_22] : memref<2x256xf32, #tpu.memory_space<vmem>>, vector<2x256xf32>
      tpu.vector_store %arg6[%c0_21, %c0_22], %26 {strides = array<i32>} : memref<2x256xf32, #tpu.memory_space<vmem>>, vector<2x256xf32>,
    } else {
    }
    return
  }
  func.func @transform_0(%arg0: i32) -> (i32, i32) {
    %c0_i32 = arith.constant 0 : i32
    %c0_i32_0 = arith.constant 0 : i32
    return %arg0, %c0_i32 : i32, i32
  }
  func.func @transform_1(%arg0: i32) -> (i32, i32) {
    %c0_i32 = arith.constant 0 : i32
    %c0_i32_0 = arith.constant 0 : i32
    %c0_i32_1 = arith.constant 0 : i32
    return %c0_i32, %c0_i32_0 : i32, i32
  }
  func.func @transform_2(%arg0: i32) -> (i32, i32) {
    %c0_i32 = arith.constant 0 : i32
    %c0_i32_0 = arith.constant 0 : i32
    %c0_i32_1 = arith.constant 0 : i32
    return %c0_i32, %c0_i32_0 : i32, i32
  }
  func.func @transform_3(%arg0: i32) -> (i32, i32, i32) {
    %c0_i32 = arith.constant 0 : i32
    %c0_i32_0 = arith.constant 0 : i32
    %c0_i32_1 = arith.constant 0 : i32
    return %arg0, %c0_i32, %c0_i32_0 : i32, i32, i32
  }
  func.func @transform_4(%arg0: i32) -> (i32, i32) {
    %c0_i32 = arith.constant 0 : i32
    %c0_i32_0 = arith.constant 0 : i32
    %c0_i32_1 = arith.constant 0 : i32
    return %c0_i32, %c0_i32_0 : i32, i32
  }
  func.func @transform_5(%arg0: i32) -> (i32, i32) {
    %c0_i32 = arith.constant 0 : i32
    %c0_i32_0 = arith.constant 0 : i32
    %c0_i32_1 = arith.constant 0 : i32
    return %c0_i32, %c0_i32_0 : i32, i32
  }
}

</mosaic_0001>

<bundles_post_ra>
// kernel: semantic_encoder_forward.3
= control target key start
LH: loop header
LB: loop body
LE: loop exit
PB: predicated region body
PF: predicated region fallthrough
CT: control target
= control target key end

     0   :  { %s1530_s1 = inlined_call_operand.vmem [shape: bf16[256,256], index: 1, kind: input, shape index: {}]   ;;  %s1531_s0 = inlined_call_operand.vmem [shape: bf16[256,256], index: 0, kind: input, shape index: {}]   ;;  %s1532_s2 = inlined_call_operand.vmem [shape: f32[1,256], index: 2, kind: input, shape index: {}]   ;;  %s1533_s3 = inlined_call_operand.vmem [shape: bf16[256,256], index: 3, kind: output, shape index: {}]  }
   0x1   :  { %v1055_v0 = vld [vmem:[%s1530_s1 + $0x4] ss:$8 sps:$4 sm:$0xff]   ;;  %v1057_v1 = vld [vmem:[%s1530_s1] ss:$8 sps:$4 sm:$0xff]   ;;  %v1058_v2 = vld [vmem:[%s1530_s1 + $0x14] ss:$8 sps:$4 sm:$0xff]  }
   0x2   :  { %410 = vmatprep.subr.bf16.mxu0 %v1055_v0  ;;  %1023 = vmatprep.subr.bf16.mxu1 %v1055_v0  ;;  %v1060_v3 = vld [vmem:[%s1530_s1 + $0x10] ss:$8 sps:$4 sm:$0xff]   ;;  %v1061_v4 = vld [vmem:[%s1530_s1 + $0x24] ss:$8 sps:$4 sm:$0xff]   ;;  %v1063_v5 = vld [vmem:[%s1530_s1 + $0x20] ss:$8 sps:$4 sm:$0xff]   ;;  %v80_v0 = vlaneseq }
   0x3   :  { %411 = vmatpush1.bf16.msra.mxu0 %v1057_v1  ;;  %1039 = vmatpush1.bf16.msra.mxu1 %v1057_v1  ;;  %v1064_v6 = vld [vmem:[%s1530_s1 + $0x34] ss:$8 sps:$4 sm:$0xff]   ;;  %v1066_v7 = vld [vmem:[%s1530_s1 + $0x30] ss:$8 sps:$4 sm:$0xff]   ;;  %v1067_v8 = vld [vmem:[%s1530_s1 + $0x44] ss:$8 sps:$4 sm:$0xff]  }
   0x4   :  { %412 = vmatprep.subr.bf16.mxu0 %v1058_v2  ;;  %1024 = vmatprep.subr.bf16.mxu1 %v1058_v2  ;;  %v1069_v9 = vld [vmem:[%s1530_s1 + $0x40] ss:$8 sps:$4 sm:$0xff]   ;;  %v1070_v10 = vld [vmem:[%s1530_s1 + $0x54] ss:$8 sps:$4 sm:$0xff]   ;;  %v1072_v11 = vld [vmem:[%s1530_s1 + $0x50] ss:$8 sps:$4 sm:$0xff]  }
   0x5   :  { %v1073_v12 = vld [vmem:[%s1530_s1 + $0x64] ss:$8 sps:$4 sm:$0xff]   ;;  %v1075_v14 = vld [vmem:[%s1530_s1 + $0x60] ss:$8 sps:$4 sm:$0xff]   ;;  %v1076_v16 = vld [vmem:[%s1530_s1 + $0x74] ss:$8 sps:$4 sm:$0xff]  }
   0x6   :  { %v1105_v13 = vld [vmem:[%s1531_s0 + $0x4] ss:$8 sps:$4 sm:$0xff]   ;;  %v1078_v17 = vld [vmem:[%s1530_s1 + $0x70] ss:$8 sps:$4 sm:$0xff]   ;;  %v1081_v19 = vld [vmem:[%s1530_s1 + $0x80] ss:$8 sps:$4 sm:$0xff]  }
   0x7   :  { %413 = vmatpush1.bf16.msra.mxu0 %v1060_v3  ;;  %1040 = vmatpush1.bf16.msra.mxu1 %v1060_v3  ;;  %v1108_v15 = vld [vmem:[%s1531_s0 + $0x84] ss:$8 sps:$4 sm:$0xff]   ;;  %v1082_v20 = vld [vmem:[%s1530_s1 + $0x94] ss:$8 sps:$4 sm:$0xff]   ;;  %v1084_v21 = vld [vmem:[%s1530_s1 + $0x90] ss:$8 sps:$4 sm:$0xff]  }
   0x8   :  { %414 = vmatprep.subr.bf16.mxu0 %v1061_v4  ;;  %1025 = vmatprep.subr.bf16.mxu1 %v1061_v4  ;;  %v1079_v18 = vld [vmem:[%s1530_s1 + $0x84] ss:$8 sps:$4 sm:$0xff]   ;;  %v1087_v23 = vld [vmem:[%s1530_s1 + $0xa0] ss:$8 sps:$4 sm:$0xff]   ;;  %v1088_v24 = vld [vmem:[%s1530_s1 + $0xb4] ss:$8 sps:$4 sm:$0xff]  }
   0x9   :  { %442 = vmatprep.mubr.bf16.mxu0 %v1105_v13  ;;  %522 = vmatprep.mubr.bf16.mxu1 %v1108_v15  ;;  %v1085_v22 = vld [vmem:[%s1530_s1 + $0xa4] ss:$8 sps:$4 sm:$0xff]   ;;  %v1090_v25 = vld [vmem:[%s1530_s1 + $0xb0] ss:$8 sps:$4 sm:$0xff]   ;;  %v1093_v27 = vld [vmem:[%s1530_s1 + $0xc0] ss:$8 sps:$4 sm:$0xff]  }
   0xa   :  { %v1091_v26 = vld [vmem:[%s1530_s1 + $0xc4] ss:$8 sps:$4 sm:$0xff]   ;;  %v1094_v28 = vld [vmem:[%s1530_s1 + $0xd4] ss:$8 sps:$4 sm:$0xff]   ;;  %v1096_v29 = vld [vmem:[%s1530_s1 + $0xd0] ss:$8 sps:$4 sm:$0xff]  }
   0xb   :  { %415 = vmatpush1.bf16.msra.mxu0 %v1063_v5  ;;  %1041 = vmatpush1.bf16.msra.mxu1 %v1063_v5  ;;  %v1097_v30 = vld [vmem:[%s1530_s1 + $0xe4] ss:$8 sps:$4 sm:$0xff]   ;;  %v1099_v31 = vld [vmem:[%s1530_s1 + $0xe0] ss:$8 sps:$4 sm:$0xff]   ;;  %v1100_v32 = vld [vmem:[%s1530_s1 + $0xf4] ss:$8 sps:$4 sm:$0xff]  }
   0xc   :  { %416 = vmatprep.subr.bf16.mxu0 %v1064_v6  ;;  %1026 = vmatprep.subr.bf16.mxu1 %v1064_v6  ;;  %v1102_v33 = vld [vmem:[%s1530_s1 + $0xf0] ss:$8 sps:$4 sm:$0xff]   ;;  %v1103_v34 = vld [vmem:[%s1531_s0] ss:$8 sps:$4 sm:$0xff]   ;;  %v1109_v36 = vld [vmem:[%s1531_s0 + $0x14] ss:$8 sps:$4 sm:$0xff]  }
   0xd   :  { %v1106_v35 = vld [vmem:[%s1531_s0 + $0x80] ss:$8 sps:$4 sm:$0xff]   ;;  %v1111_v37 = vld [vmem:[%s1531_s0 + $0x94] ss:$8 sps:$4 sm:$0xff]   ;;  %v1113_v38 = vld [vmem:[%s1531_s0 + $0x10] ss:$8 sps:$4 sm:$0xff]  }
   0xe   :  { %v1114_v39 = vld [vmem:[%s1531_s0 + $0x90] ss:$8 sps:$4 sm:$0xff]   ;;  %v1115_v40 = vld [vmem:[%s1531_s0 + $0x24] ss:$8 sps:$4 sm:$0xff]   ;;  %v1119_v42 = vld [vmem:[%s1531_s0 + $0x20] ss:$8 sps:$4 sm:$0xff]  }
   0xf   :  { %417 = vmatpush1.bf16.msra.mxu0 %v1066_v7  ;;  %1042 = vmatpush1.bf16.msra.mxu1 %v1066_v7  ;;  %v1117_v41 = vld [vmem:[%s1531_s0 + $0xa4] ss:$8 sps:$4 sm:$0xff]   ;;  %v1120_v43 = vld [vmem:[%s1531_s0 + $0xa0] ss:$8 sps:$4 sm:$0xff]   ;;  %v1121_v44 = vld [vmem:[%s1531_s0 + $0x34] ss:$8 sps:$4 sm:$0xff]  }
  0x10   :  { %418 = vmatprep.subr.bf16.mxu0 %v1067_v8  ;;  %1027 = vmatprep.subr.bf16.mxu1 %v1067_v8  ;;  %v1123_v45 = vld [vmem:[%s1531_s0 + $0xb4] ss:$8 sps:$4 sm:$0xff]   ;;  %v1125_v46 = vld [vmem:[%s1531_s0 + $0x30] ss:$8 sps:$4 sm:$0xff]   ;;  %v1127_v48 = vld [vmem:[%s1531_s0 + $0x44] ss:$8 sps:$4 sm:$0xff]  }
  0x11   :  { %v1126_v47 = vld [vmem:[%s1531_s0 + $0xb0] ss:$8 sps:$4 sm:$0xff]   ;;  %v1129_v49 = vld [vmem:[%s1531_s0 + $0xc4] ss:$8 sps:$4 sm:$0xff]   ;;  %v1131_v50 = vld [vmem:[%s1531_s0 + $0x40] ss:$8 sps:$4 sm:$0xff]  }
  0x12   :  { %v1132_v51 = vld [vmem:[%s1531_s0 + $0xc0] ss:$8 sps:$4 sm:$0xff]   ;;  %v1133_v52 = vld [vmem:[%s1531_s0 + $0x54] ss:$8 sps:$4 sm:$0xff]   ;;  %v1137_v54 = vld [vmem:[%s1531_s0 + $0x50] ss:$8 sps:$4 sm:$0xff]  }
  0x13   :  { %419 = vmatpush1.bf16.msra.mxu0 %v1069_v9  ;;  %1043 = vmatpush1.bf16.msra.mxu1 %v1069_v9  ;;  %v1135_v53 = vld [vmem:[%s1531_s0 + $0xd4] ss:$8 sps:$4 sm:$0xff]   ;;  %v1138_v55 = vld [vmem:[%s1531_s0 + $0xd0] ss:$8 sps:$4 sm:$0xff]   ;;  %v1139_v56 = vld [vmem:[%s1531_s0 + $0x64] ss:$8 sps:$4 sm:$0xff]  }
  0x14   :  { %420 = vmatprep.subr.bf16.mxu0 %v1070_v10  ;;  %1028 = vmatprep.subr.bf16.mxu1 %v1070_v10  ;;  %v1141_v57 = vld [vmem:[%s1531_s0 + $0xe4] ss:$8 sps:$4 sm:$0xff]   ;;  %v1143_v58 = vld [vmem:[%s1531_s0 + $0x60] ss:$8 sps:$4 sm:$0xff]   ;;  %v1145_v60 = vld [vmem:[%s1531_s0 + $0x74] ss:$8 sps:$4 sm:$0xff]  }
  0x15   :  { %v1144_v59 = vld [vmem:[%s1531_s0 + $0xe0] ss:$8 sps:$4 sm:$0xff]   ;;  %v1147_v61 = vld [vmem:[%s1531_s0 + $0xf4] ss:$8 sps:$4 sm:$0xff]   ;;  %v1149_v62 = vld [vmem:[%s1531_s0 + $0x70] ss:$8 sps:$4 sm:$0xff]  }
  0x16   :  { %v1150_v63 = vld [vmem:[%s1531_s0 + $0xf0] ss:$8 sps:$4 sm:$0xff]   ;;  %v81_v1 = vshrl.u32 %v80_v0, 7  ;;  %v78_v3 = vld [vmem:[%s1532_s2] sm:$0x3] }
  0x17   :  { %421 = vmatpush1.bf16.msra.mxu0 %v1072_v11  ;;  %1044 = vmatpush1.bf16.msra.mxu1 %v1072_v11 }
  0x18   :  { %422 = vmatprep.subr.bf16.mxu0 %v1073_v12  ;;  %1029 = vmatprep.subr.bf16.mxu1 %v1073_v12  ;;  %v82_v2 = vsub.s32 0, %v81_v1  ;;  %v86_v4 = vsub.s32 1, %v81_v1 }
  0x1a   :  { %v1366_v5 = vrot.slane %v78_v3, %v82_v2  ;;  %v1368_v6 = vrot.slane %v78_v3, %v86_v4 }
  0x1b   :  { %423 = vmatpush1.bf16.msra.mxu0 %v1075_v14  ;;  %1045 = vmatpush1.bf16.msra.mxu1 %v1075_v14 }
  0x1c   :  { %424 = vmatprep.subr.bf16.mxu0 %v1076_v16  ;;  %1030 = vmatprep.subr.bf16.mxu1 %v1076_v16 }
  0x1f   :  { %425 = vmatpush1.bf16.msra.mxu0 %v1078_v17  ;;  %1046 = vmatpush1.bf16.msra.mxu1 %v1078_v17 }
  0x20   :  { %426 = vmatprep.subr.bf16.mxu0 %v1079_v18  ;;  %1031 = vmatprep.subr.bf16.mxu1 %v1079_v18 }
  0x23   :  { %427 = vmatpush1.bf16.msra.mxu0 %v1081_v19  ;;  %1047 = vmatpush1.bf16.msra.mxu1 %v1081_v19 }
  0x24   :  { %428 = vmatprep.subr.bf16.mxu0 %v1082_v20  ;;  %1032 = vmatprep.subr.bf16.mxu1 %v1082_v20 }
  0x27   :  { %429 = vmatpush1.bf16.msra.mxu0 %v1084_v21  ;;  %1048 = vmatpush1.bf16.msra.mxu1 %v1084_v21 }
  0x28   :  { %430 = vmatprep.subr.bf16.mxu0 %v1085_v22  ;;  %1033 = vmatprep.subr.bf16.mxu1 %v1085_v22 }
  0x2b   :  { %431 = vmatpush1.bf16.msra.mxu0 %v1087_v23  ;;  %1049 = vmatpush1.bf16.msra.mxu1 %v1087_v23 }
  0x2c   :  { %432 = vmatprep.subr.bf16.mxu0 %v1088_v24  ;;  %1034 = vmatprep.subr.bf16.mxu1 %v1088_v24 }
  0x2f   :  { %433 = vmatpush1.bf16.msra.mxu0 %v1090_v25  ;;  %1050 = vmatpush1.bf16.msra.mxu1 %v1090_v25 }
  0x30   :  { %434 = vmatprep.subr.bf16.mxu0 %v1091_v26  ;;  %1035 = vmatprep.subr.bf16.mxu1 %v1091_v26 }
  0x33   :  { %435 = vmatpush1.bf16.msra.mxu0 %v1093_v27  ;;  %1051 = vmatpush1.bf16.msra.mxu1 %v1093_v27 }
  0x34   :  { %436 = vmatprep.subr.bf16.mxu0 %v1094_v28  ;;  %1036 = vmatprep.subr.bf16.mxu1 %v1094_v28 }
  0x37   :  { %437 = vmatpush1.bf16.msra.mxu0 %v1096_v29  ;;  %1052 = vmatpush1.bf16.msra.mxu1 %v1096_v29 }
  0x38   :  { %438 = vmatprep.subr.bf16.mxu0 %v1097_v30  ;;  %1037 = vmatprep.subr.bf16.mxu1 %v1097_v30 }
  0x3b   :  { %439 = vmatpush1.bf16.msra.mxu0 %v1099_v31  ;;  %1053 = vmatpush1.bf16.msra.mxu1 %v1099_v31 }
  0x3c   :  { %440 = vmatprep.subr.bf16.mxu0 %v1100_v32  ;;  %1038 = vmatprep.subr.bf16.mxu1 %v1100_v32 }
  0x3f   :  { %441 = vmatpush1.bf16.msra.mxu0 %v1102_v33  ;;  %1054 = vmatpush1.bf16.msra.mxu1 %v1102_v33 }
  0x42   :  { %443 = vmatmul.mubr.bf16.vlgmr.msra.gmra.mrb[0].mxu0 %v1103_v34  ;;  %523 = vmatmul.mubr.bf16.vlgmr.msra.gmra.mrb[0].mxu1 %v1106_v35 }
  0x43   :  { %452 = vmatprep.mubr.bf16.mxu0 %v1109_v36  ;;  %532 = vmatprep.mubr.bf16.mxu1 %v1111_v37 }
  0x4a   :  { %453 = vmatmul.mubr.bf16.gmra.mrb[4].mxu0 %v1113_v38  ;;  %533 = vmatmul.mubr.bf16.gmra.mrb[4].mxu1 %v1114_v39 }
  0x4b   :  { %462 = vmatprep.mubr.bf16.mxu0 %v1115_v40  ;;  %542 = vmatprep.mubr.bf16.mxu1 %v1117_v41 }
  0x52   :  { %463 = vmatmul.mubr.bf16.gmra.mrb[8].mxu0 %v1119_v42  ;;  %543 = vmatmul.mubr.bf16.gmra.mrb[8].mxu1 %v1120_v43 }
  0x53   :  { %472 = vmatprep.mubr.bf16.mxu0 %v1121_v44  ;;  %552 = vmatprep.mubr.bf16.mxu1 %v1123_v45 }
  0x5a   :  { %473 = vmatmul.mubr.bf16.gmra.mrb[12].mxu0 %v1125_v46  ;;  %553 = vmatmul.mubr.bf16.gmra.mrb[12].mxu1 %v1126_v47 }
  0x5b   :  { %482 = vmatprep.mubr.bf16.mxu0 %v1127_v48  ;;  %562 = vmatprep.mubr.bf16.mxu1 %v1129_v49 }
  0x62   :  { %483 = vmatmul.mubr.bf16.gmra.mrb[16].mxu0 %v1131_v50  ;;  %563 = vmatmul.mubr.bf16.gmra.mrb[16].mxu1 %v1132_v51 }
  0x63   :  { %492 = vmatprep.mubr.bf16.mxu0 %v1133_v52  ;;  %572 = vmatprep.mubr.bf16.mxu1 %v1135_v53 }
  0x6a   :  { %493 = vmatmul.mubr.bf16.gmra.mrb[20].mxu0 %v1137_v54  ;;  %573 = vmatmul.mubr.bf16.gmra.mrb[20].mxu1 %v1138_v55 }
  0x6b   :  { %502 = vmatprep.mubr.bf16.mxu0 %v1139_v56  ;;  %582 = vmatprep.mubr.bf16.mxu1 %v1141_v57 }
  0x72   :  { %503 = vmatmul.mubr.bf16.gmra.mrb[24].mxu0 %v1143_v58  ;;  %583 = vmatmul.mubr.bf16.gmra.mrb[24].mxu1 %v1144_v59 }
  0x73   :  { %512 = vmatprep.mubr.bf16.mxu0 %v1145_v60  ;;  %592 = vmatprep.mubr.bf16.mxu1 %v1147_v61 }
  0x7a   :  { %513 = vmatmul.mubr.bf16.gmra.mrb[28].mxu0 %v1149_v62  ;;  %593 = vmatmul.mubr.bf16.gmra.mrb[28].mxu1 %v1150_v63 }
 0x115   :  { %v444_v7 = vpop.f32.mrb[0].mxu0  ;;  %v524_v8 = vpop.f32.mrb[0].mxu1 }
 0x116   :  { %v445_v9 = vadd.f32 %v444_v7, %v1366_v5  ;;  %v525_v10 = vadd.f32 %v524_v8, %v1366_v5  ;;  %v446_v11 = vpop.f32.mrb[1].mxu0  ;;  %v526_v12 = vpop.f32.mrb[1].mxu1 }
 0x117   :  { %v447_v13 = vadd.f32 %v446_v11, %v1368_v6  ;;  %v527_v14 = vadd.f32 %v526_v12, %v1368_v6  ;;  %v448_v15 = vpop.f32.mrb[2].mxu0  ;;  %v528_v16 = vpop.f32.mrb[2].mxu1 }
 0x118   :  { %v603_v17 = vmax.f32 %v445_v9, 0.0  ;;  %v635_v18 = vmax.f32 %v525_v10, 0.0  ;;  %v449_v19 = vadd.f32 %v448_v15, %v1366_v5  ;;  %v529_v20 = vadd.f32 %v528_v16, %v1366_v5  ;;  %v450_v21 = vpop.f32.mrb[3].mxu0  ;;  %v530_v22 = vpop.f32.mrb[3].mxu1 }
 0x119   :  { %v604_v23 = vmax.f32 %v447_v13, 0.0  ;;  %v636_v24 = vmax.f32 %v527_v14, 0.0  ;;  %v451_v25 = vadd.f32 %v450_v21, %v1368_v6  ;;  %v531_v26 = vadd.f32 %v530_v22, %v1368_v6 }
 0x11a   :  { %v605_v27 = vmax.f32 %v449_v19, 0.0  ;;  %v637_v28 = vmax.f32 %v529_v20, 0.0 }
 0x11b   :  { %v991_v29 = vpack.c.bf16 %v604_v23, %v603_v17  ;;  %v1007_v30 = vpack.c.bf16 %v636_v24, %v635_v18  ;;  %v606_v31 = vmax.f32 %v451_v25, 0.0  ;;  %v638_v32 = vmax.f32 %v531_v26, 0.0 }
 0x11d   :  { %859 = vst [vmem:[%s1533_s3] sm:$0xff] %v991_v29  ;;  %875 = vst [vmem:[%s1533_s3 + $0x80] sm:$0xff] %v1007_v30  ;;  %v992_v33 = vpack.c.bf16 %v606_v31, %v605_v27  ;;  %v1008_v34 = vpack.c.bf16 %v638_v32, %v637_v28  ;;  %v454_v35 = vpop.f32.mrb[4].mxu0  ;;  %v534_v36 = vpop.f32.mrb[4].mxu1 }
 0x11e   :  { %v455_v37 = vadd.f32 %v454_v35, %v1366_v5  ;;  %v535_v38 = vadd.f32 %v534_v36, %v1366_v5  ;;  %v456_v39 = vpop.f32.mrb[5].mxu0  ;;  %v536_v40 = vpop.f32.mrb[5].mxu1 }
 0x11f   :  { %860 = vst [vmem:[%s1533_s3 + $0x8] sm:$0xff] %v992_v33  ;;  %876 = vst [vmem:[%s1533_s3 + $0x88] sm:$0xff] %v1008_v34  ;;  %v457_v41 = vadd.f32 %v456_v39, %v1368_v6  ;;  %v537_v42 = vadd.f32 %v536_v40, %v1368_v6  ;;  %v458_v43 = vpop.f32.mrb[6].mxu0  ;;  %v538_v44 = vpop.f32.mrb[6].mxu1 }
 0x120   :  { %v607_v45 = vmax.f32 %v455_v37, 0.0  ;;  %v639_v46 = vmax.f32 %v535_v38, 0.0  ;;  %v459_v47 = vadd.f32 %v458_v43, %v1366_v5  ;;  %v539_v48 = vadd.f32 %v538_v44, %v1366_v5  ;;  %v460_v49 = vpop.f32.mrb[7].mxu0  ;;  %v540_v50 = vpop.f32.mrb[7].mxu1 }
 0x121   :  { %v608_v51 = vmax.f32 %v457_v41, 0.0  ;;  %v640_v52 = vmax.f32 %v537_v42, 0.0  ;;  %v461_v53 = vadd.f32 %v460_v49, %v1368_v6  ;;  %v541_v54 = vadd.f32 %v540_v50, %v1368_v6 }
 0x122   :  { %v609_v55 = vmax.f32 %v459_v47, 0.0  ;;  %v641_v56 = vmax.f32 %v539_v48, 0.0 }
 0x123   :  { %v993_v57 = vpack.c.bf16 %v608_v51, %v607_v45  ;;  %v1009_v58 = vpack.c.bf16 %v640_v52, %v639_v46  ;;  %v610_v59 = vmax.f32 %v461_v53, 0.0  ;;  %v642_v60 = vmax.f32 %v541_v54, 0.0 }
 0x125   :  { %861 = vst [vmem:[%s1533_s3 + $0x10] sm:$0xff] %v993_v57  ;;  %877 = vst [vmem:[%s1533_s3 + $0x90] sm:$0xff] %v1009_v58  ;;  %v994_v61 = vpack.c.bf16 %v610_v59, %v609_v55  ;;  %v1010_v62 = vpack.c.bf16 %v642_v60, %v641_v56  ;;  %v464_v63 = vpop.f32.mrb[8].mxu0  ;;  %v544_v0 = vpop.f32.mrb[8].mxu1 }
 0x126   :  { %v465_v1 = vadd.f32 %v464_v63, %v1366_v5  ;;  %v545_v2 = vadd.f32 %v544_v0, %v1366_v5  ;;  %v466_v3 = vpop.f32.mrb[9].mxu0  ;;  %v546_v4 = vpop.f32.mrb[9].mxu1 }
 0x127   :  { %862 = vst [vmem:[%s1533_s3 + $0x18] sm:$0xff] %v994_v61  ;;  %878 = vst [vmem:[%s1533_s3 + $0x98] sm:$0xff] %v1010_v62  ;;  %v467_v7 = vadd.f32 %v466_v3, %v1368_v6  ;;  %v547_v8 = vadd.f32 %v546_v4, %v1368_v6  ;;  %v468_v9 = vpop.f32.mrb[10].mxu0  ;;  %v548_v10 = vpop.f32.mrb[10].mxu1 }
 0x128   :  { %v611_v11 = vmax.f32 %v465_v1, 0.0  ;;  %v643_v12 = vmax.f32 %v545_v2, 0.0  ;;  %v469_v13 = vadd.f32 %v468_v9, %v1366_v5  ;;  %v549_v14 = vadd.f32 %v548_v10, %v1366_v5  ;;  %v470_v15 = vpop.f32.mrb[11].mxu0  ;;  %v550_v16 = vpop.f32.mrb[11].mxu1 }
 0x129   :  { %v612_v17 = vmax.f32 %v467_v7, 0.0  ;;  %v644_v18 = vmax.f32 %v547_v8, 0.0  ;;  %v471_v19 = vadd.f32 %v470_v15, %v1368_v6  ;;  %v551_v20 = vadd.f32 %v550_v16, %v1368_v6 }
 0x12a   :  { %v613_v21 = vmax.f32 %v469_v13, 0.0  ;;  %v645_v22 = vmax.f32 %v549_v14, 0.0 }
 0x12b   :  { %v995_v23 = vpack.c.bf16 %v612_v17, %v611_v11  ;;  %v1011_v24 = vpack.c.bf16 %v644_v18, %v643_v12  ;;  %v614_v25 = vmax.f32 %v471_v19, 0.0  ;;  %v646_v26 = vmax.f32 %v551_v20, 0.0 }
 0x12d   :  { %863 = vst [vmem:[%s1533_s3 + $0x20] sm:$0xff] %v995_v23  ;;  %879 = vst [vmem:[%s1533_s3 + $0xa0] sm:$0xff] %v1011_v24  ;;  %v996_v27 = vpack.c.bf16 %v614_v25, %v613_v21  ;;  %v1012_v28 = vpack.c.bf16 %v646_v26, %v645_v22  ;;  %v474_v29 = vpop.f32.mrb[12].mxu0  ;;  %v554_v30 = vpop.f32.mrb[12].mxu1 }
 0x12e   :  { %v475_v31 = vadd.f32 %v474_v29, %v1366_v5  ;;  %v555_v32 = vadd.f32 %v554_v30, %v1366_v5  ;;  %v476_v33 = vpop.f32.mrb[13].mxu0  ;;  %v556_v34 = vpop.f32.mrb[13].mxu1 }
 0x12f   :  { %864 = vst [vmem:[%s1533_s3 + $0x28] sm:$0xff] %v996_v27  ;;  %880 = vst [vmem:[%s1533_s3 + $0xa8] sm:$0xff] %v1012_v28  ;;  %v477_v35 = vadd.f32 %v476_v33, %v1368_v6  ;;  %v557_v36 = vadd.f32 %v556_v34, %v1368_v6  ;;  %v478_v37 = vpop.f32.mrb[14].mxu0  ;;  %v558_v38 = vpop.f32.mrb[14].mxu1 }
 0x130   :  { %v615_v39 = vmax.f32 %v475_v31, 0.0  ;;  %v647_v40 = vmax.f32 %v555_v32, 0.0  ;;  %v479_v41 = vadd.f32 %v478_v37, %v1366_v5  ;;  %v559_v42 = vadd.f32 %v558_v38, %v1366_v5  ;;  %v480_v43 = vpop.f32.mrb[15].mxu0  ;;  %v560_v44 = vpop.f32.mrb[15].mxu1 }
 0x131   :  { %v616_v45 = vmax.f32 %v477_v35, 0.0  ;;  %v648_v46 = vmax.f32 %v557_v36, 0.0  ;;  %v481_v47 = vadd.f32 %v480_v43, %v1368_v6  ;;  %v561_v48 = vadd.f32 %v560_v44, %v1368_v6 }
 0x132   :  { %v617_v49 = vmax.f32 %v479_v41, 0.0  ;;  %v649_v50 = vmax.f32 %v559_v42, 0.0 }
 0x133   :  { %v997_v51 = vpack.c.bf16 %v616_v45, %v615_v39  ;;  %v1013_v52 = vpack.c.bf16 %v648_v46, %v647_v40  ;;  %v618_v53 = vmax.f32 %v481_v47, 0.0  ;;  %v650_v54 = vmax.f32 %v561_v48, 0.0 }
 0x135   :  { %865 = vst [vmem:[%s1533_s3 + $0x30] sm:$0xff] %v997_v51  ;;  %881 = vst [vmem:[%s1533_s3 + $0xb0] sm:$0xff] %v1013_v52  ;;  %v998_v55 = vpack.c.bf16 %v618_v53, %v617_v49  ;;  %v1014_v56 = vpack.c.bf16 %v650_v54, %v649_v50  ;;  %v484_v57 = vpop.f32.mrb[16].mxu0  ;;  %v564_v58 = vpop.f32.mrb[16].mxu1 }
 0x136   :  { %v485_v59 = vadd.f32 %v484_v57, %v1366_v5  ;;  %v565_v60 = vadd.f32 %v564_v58, %v1366_v5  ;;  %v486_v61 = vpop.f32.mrb[17].mxu0  ;;  %v566_v62 = vpop.f32.mrb[17].mxu1 }
 0x137   :  { %866 = vst [vmem:[%s1533_s3 + $0x38] sm:$0xff] %v998_v55  ;;  %882 = vst [vmem:[%s1533_s3 + $0xb8] sm:$0xff] %v1014_v56  ;;  %v487_v63 = vadd.f32 %v486_v61, %v1368_v6  ;;  %v567_v0 = vadd.f32 %v566_v62, %v1368_v6  ;;  %v488_v1 = vpop.f32.mrb[18].mxu0  ;;  %v568_v2 = vpop.f32.mrb[18].mxu1 }
 0x138   :  { %v619_v3 = vmax.f32 %v485_v59, 0.0  ;;  %v651_v4 = vmax.f32 %v565_v60, 0.0  ;;  %v489_v7 = vadd.f32 %v488_v1, %v1366_v5  ;;  %v569_v8 = vadd.f32 %v568_v2, %v1366_v5  ;;  %v490_v9 = vpop.f32.mrb[19].mxu0  ;;  %v570_v10 = vpop.f32.mrb[19].mxu1 }
 0x139   :  { %v620_v11 = vmax.f32 %v487_v63, 0.0  ;;  %v652_v12 = vmax.f32 %v567_v0, 0.0  ;;  %v491_v13 = vadd.f32 %v490_v9, %v1368_v6  ;;  %v571_v14 = vadd.f32 %v570_v10, %v1368_v6 }
 0x13a   :  { %v621_v15 = vmax.f32 %v489_v7, 0.0  ;;  %v653_v16 = vmax.f32 %v569_v8, 0.0 }
 0x13b   :  { %v999_v17 = vpack.c.bf16 %v620_v11, %v619_v3  ;;  %v1015_v18 = vpack.c.bf16 %v652_v12, %v651_v4  ;;  %v622_v19 = vmax.f32 %v491_v13, 0.0  ;;  %v654_v20 = vmax.f32 %v571_v14, 0.0 }
 0x13d   :  { %867 = vst [vmem:[%s1533_s3 + $0x40] sm:$0xff] %v999_v17  ;;  %883 = vst [vmem:[%s1533_s3 + $0xc0] sm:$0xff] %v1015_v18  ;;  %v1000_v21 = vpack.c.bf16 %v622_v19, %v621_v15  ;;  %v1016_v22 = vpack.c.bf16 %v654_v20, %v653_v16  ;;  %v494_v23 = vpop.f32.mrb[20].mxu0  ;;  %v574_v24 = vpop.f32.mrb[20].mxu1 }
 0x13e   :  { %v495_v25 = vadd.f32 %v494_v23, %v1366_v5  ;;  %v575_v26 = vadd.f32 %v574_v24, %v1366_v5  ;;  %v496_v27 = vpop.f32.mrb[21].mxu0  ;;  %v576_v28 = vpop.f32.mrb[21].mxu1 }
 0x13f   :  { %868 = vst [vmem:[%s1533_s3 + $0x48] sm:$0xff] %v1000_v21  ;;  %884 = vst [vmem:[%s1533_s3 + $0xc8] sm:$0xff] %v1016_v22  ;;  %v497_v29 = vadd.f32 %v496_v27, %v1368_v6  ;;  %v577_v30 = vadd.f32 %v576_v28, %v1368_v6  ;;  %v498_v31 = vpop.f32.mrb[22].mxu0  ;;  %v578_v32 = vpop.f32.mrb[22].mxu1 }
 0x140   :  { %v623_v33 = vmax.f32 %v495_v25, 0.0  ;;  %v655_v34 = vmax.f32 %v575_v26, 0.0  ;;  %v499_v35 = vadd.f32 %v498_v31, %v1366_v5  ;;  %v579_v36 = vadd.f32 %v578_v32, %v1366_v5  ;;  %v500_v37 = vpop.f32.mrb[23].mxu0  ;;  %v580_v38 = vpop.f32.mrb[23].mxu1 }
 0x141   :  { %v624_v39 = vmax.f32 %v497_v29, 0.0  ;;  %v656_v40 = vmax.f32 %v577_v30, 0.0  ;;  %v501_v41 = vadd.f32 %v500_v37, %v1368_v6  ;;  %v581_v42 = vadd.f32 %v580_v38, %v1368_v6 }
 0x142   :  { %v625_v43 = vmax.f32 %v499_v35, 0.0  ;;  %v657_v44 = vmax.f32 %v579_v36, 0.0 }
 0x143   :  { %v1001_v45 = vpack.c.bf16 %v624_v39, %v623_v33  ;;  %v1017_v46 = vpack.c.bf16 %v656_v40, %v655_v34  ;;  %v626_v47 = vmax.f32 %v501_v41, 0.0  ;;  %v658_v48 = vmax.f32 %v581_v42, 0.0 }
 0x145   :  { %869 = vst [vmem:[%s1533_s3 + $0x50] sm:$0xff] %v1001_v45  ;;  %885 = vst [vmem:[%s1533_s3 + $0xd0] sm:$0xff] %v1017_v46  ;;  %v1002_v49 = vpack.c.bf16 %v626_v47, %v625_v43  ;;  %v1018_v50 = vpack.c.bf16 %v658_v48, %v657_v44  ;;  %v504_v51 = vpop.f32.mrb[24].mxu0  ;;  %v584_v52 = vpop.f32.mrb[24].mxu1 }
 0x146   :  { %v505_v53 = vadd.f32 %v504_v51, %v1366_v5  ;;  %v585_v54 = vadd.f32 %v584_v52, %v1366_v5  ;;  %v506_v55 = vpop.f32.mrb[25].mxu0  ;;  %v586_v56 = vpop.f32.mrb[25].mxu1 }
 0x147   :  { %870 = vst [vmem:[%s1533_s3 + $0x58] sm:$0xff] %v1002_v49  ;;  %886 = vst [vmem:[%s1533_s3 + $0xd8] sm:$0xff] %v1018_v50  ;;  %v507_v57 = vadd.f32 %v506_v55, %v1368_v6  ;;  %v587_v58 = vadd.f32 %v586_v56, %v1368_v6  ;;  %v508_v59 = vpop.f32.mrb[26].mxu0  ;;  %v588_v60 = vpop.f32.mrb[26].mxu1 }
 0x148   :  { %v627_v61 = vmax.f32 %v505_v53, 0.0  ;;  %v659_v62 = vmax.f32 %v585_v54, 0.0  ;;  %v509_v63 = vadd.f32 %v508_v59, %v1366_v5  ;;  %v589_v0 = vadd.f32 %v588_v60, %v1366_v5  ;;  %v510_v1 = vpop.f32.mrb[27].mxu0  ;;  %v590_v2 = vpop.f32.mrb[27].mxu1 }
 0x149   :  { %v628_v3 = vmax.f32 %v507_v57, 0.0  ;;  %v660_v4 = vmax.f32 %v587_v58, 0.0  ;;  %v511_v7 = vadd.f32 %v510_v1, %v1368_v6  ;;  %v591_v8 = vadd.f32 %v590_v2, %v1368_v6 }
 0x14a   :  { %v629_v9 = vmax.f32 %v509_v63, 0.0  ;;  %v661_v10 = vmax.f32 %v589_v0, 0.0 }
 0x14b   :  { %v1003_v11 = vpack.c.bf16 %v628_v3, %v627_v61  ;;  %v1019_v12 = vpack.c.bf16 %v660_v4, %v659_v62  ;;  %v630_v13 = vmax.f32 %v511_v7, 0.0  ;;  %v662_v14 = vmax.f32 %v591_v8, 0.0 }
 0x14d   :  { %871 = vst [vmem:[%s1533_s3 + $0x60] sm:$0xff] %v1003_v11  ;;  %887 = vst [vmem:[%s1533_s3 + $0xe0] sm:$0xff] %v1019_v12  ;;  %v1004_v15 = vpack.c.bf16 %v630_v13, %v629_v9  ;;  %v1020_v16 = vpack.c.bf16 %v662_v14, %v661_v10  ;;  %v514_v17 = vpop.f32.mrb[28].mxu0  ;;  %v594_v18 = vpop.f32.mrb[28].mxu1 }
 0x14e   :  { %v515_v19 = vadd.f32 %v514_v17, %v1366_v5  ;;  %v595_v20 = vadd.f32 %v594_v18, %v1366_v5  ;;  %v516_v21 = vpop.f32.mrb[29].mxu0  ;;  %v596_v22 = vpop.f32.mrb[29].mxu1 }
 0x14f   :  { %872 = vst [vmem:[%s1533_s3 + $0x68] sm:$0xff] %v1004_v15  ;;  %888 = vst [vmem:[%s1533_s3 + $0xe8] sm:$0xff] %v1020_v16  ;;  %v517_v23 = vadd.f32 %v516_v21, %v1368_v6  ;;  %v597_v24 = vadd.f32 %v596_v22, %v1368_v6  ;;  %v518_v25 = vpop.f32.mrb[30].mxu0  ;;  %v598_v26 = vpop.f32.mrb[30].mxu1 }
 0x150   :  { %v631_v27 = vmax.f32 %v515_v19, 0.0  ;;  %v663_v28 = vmax.f32 %v595_v20, 0.0  ;;  %v519_v29 = vadd.f32 %v518_v25, %v1366_v5  ;;  %v599_v30 = vadd.f32 %v598_v26, %v1366_v5  ;;  %v520_v31 = vpop.f32.mrb[31].mxu0  ;;  %v600_v32 = vpop.f32.mrb[31].mxu1 }
 0x151   :  { %v632_v33 = vmax.f32 %v517_v23, 0.0  ;;  %v664_v34 = vmax.f32 %v597_v24, 0.0  ;;  %v521_v35 = vadd.f32 %v520_v31, %v1368_v6  ;;  %v601_v36 = vadd.f32 %v600_v32, %v1368_v6 }
 0x152   :  { %v633_v37 = vmax.f32 %v519_v29, 0.0  ;;  %v665_v38 = vmax.f32 %v599_v30, 0.0 }
 0x153   :  { %v1005_v39 = vpack.c.bf16 %v632_v33, %v631_v27  ;;  %v1021_v40 = vpack.c.bf16 %v664_v34, %v663_v28  ;;  %v634_v41 = vmax.f32 %v521_v35, 0.0  ;;  %v666_v42 = vmax.f32 %v601_v36, 0.0 }
 0x155   :  { %873 = vst [vmem:[%s1533_s3 + $0x70] sm:$0xff] %v1005_v39  ;;  %889 = vst [vmem:[%s1533_s3 + $0xf0] sm:$0xff] %v1021_v40  ;;  %v1006_v5 = vpack.c.bf16 %v634_v41, %v633_v37  ;;  %v1022_v43 = vpack.c.bf16 %v666_v42, %v665_v38 }
 0x157   :  { %874 = vst [vmem:[%s1533_s3 + $0x78] sm:$0xff] %v1006_v5  ;;  %890 = vst [vmem:[%s1533_s3 + $0xf8] sm:$0xff] %v1022_v43 }

// kernel: semantic_encoder_forward.4
= control target key start
LH: loop header
LB: loop body
LE: loop exit
PB: predicated region body
PF: predicated region fallthrough
CT: control target
= control target key end

     0   :  { %s3819_s1 = inlined_call_operand.vmem [shape: bf16[1152,256], index: 1, kind: input, shape index: {}]   ;;  %s3820_s0 = inlined_call_operand.vmem [shape: bf16[128,1152], index: 0, kind: input, shape index: {}]   ;;  %s3821_s2 = inlined_call_operand.vmem [shape: f32[1,256], index: 2, kind: input, shape index: {}]   ;;  %s3822_s3 = inlined_call_operand.vmem [shape: bf16[128,256], index: 3, kind: output, shape index: {}]  }
   0x1   :  { %v2493_v0 = vld [vmem:[%s3819_s1 + $0x4] ss:$8 sps:$4 sm:$0xff]   ;;  %v2497_v2 = vld [vmem:[%s3819_s1] ss:$8 sps:$4 sm:$0xff]   ;;  %v2499_v4 = vld [vmem:[%s3819_s1 + $0x14] ss:$8 sps:$4 sm:$0xff]  }
   0x2   :  { %v2495_v1 = vld [vmem:[%s3819_s1 + $0x204] ss:$8 sps:$4 sm:$0xff]   ;;  %1339 = vmatprep.subr.bf16.mxu1 %v2493_v0  ;;  %v2498_v3 = vld [vmem:[%s3819_s1 + $0x200] ss:$8 sps:$4 sm:$0xff]   ;;  %v2501_v5 = vld [vmem:[%s3819_s1 + $0x214] ss:$8 sps:$4 sm:$0xff]  }
   0x3   :  { %1565 = vmatprep.subr.bf16.mxu0 %v2495_v1  ;;  %1340 = vmatpush1.bf16.msra.mxu1 %v2497_v2  ;;  %v2503_v6 = vld [vmem:[%s3819_s1 + $0x10] ss:$8 sps:$4 sm:$0xff]   ;;  %v2505_v8 = vld [vmem:[%s3819_s1 + $0x24] ss:$8 sps:$4 sm:$0xff]   ;;  %v2509_v10 = vld [vmem:[%s3819_s1 + $0x20] ss:$8 sps:$4 sm:$0xff]  }
   0x4   :  { %1566 = vmatpush1.bf16.msra.mxu0 %v2498_v3  ;;  %1341 = vmatprep.subr.bf16.mxu1 %v2499_v4  ;;  %v2504_v7 = vld [vmem:[%s3819_s1 + $0x210] ss:$8 sps:$4 sm:$0xff]   ;;  %v2507_v9 = vld [vmem:[%s3819_s1 + $0x224] ss:$8 sps:$4 sm:$0xff]   ;;  %v2510_v11 = vld [vmem:[%s3819_s1 + $0x220] ss:$8 sps:$4 sm:$0xff]  }
   0x5   :  { %1567 = vmatprep.subr.bf16.mxu0 %v2501_v5  ;;  %v2511_v12 = vld [vmem:[%s3819_s1 + $0x34] ss:$8 sps:$4 sm:$0xff]   ;;  %v2515_v14 = vld [vmem:[%s3819_s1 + $0x30] ss:$8 sps:$4 sm:$0xff]   ;;  %v2517_v16 = vld [vmem:[%s3819_s1 + $0x44] ss:$8 sps:$4 sm:$0xff]  }
   0x6   :  { %v2513_v13 = vld [vmem:[%s3819_s1 + $0x234] ss:$8 sps:$4 sm:$0xff]   ;;  %v2516_v15 = vld [vmem:[%s3819_s1 + $0x230] ss:$8 sps:$4 sm:$0xff]   ;;  %v2519_v17 = vld [vmem:[%s3819_s1 + $0x244] ss:$8 sps:$4 sm:$0xff]  }
   0x7   :  { %1342 = vmatpush1.bf16.msra.mxu1 %v2503_v6  ;;  %v2521_v18 = vld [vmem:[%s3819_s1 + $0x40] ss:$8 sps:$4 sm:$0xff]   ;;  %v2523_v20 = vld [vmem:[%s3819_s1 + $0x54] ss:$8 sps:$4 sm:$0xff]   ;;  %v2527_v22 = vld [vmem:[%s3819_s1 + $0x50] ss:$8 sps:$4 sm:$0xff]  }
   0x8   :  { %1568 = vmatpush1.bf16.msra.mxu0 %v2504_v7  ;;  %1343 = vmatprep.subr.bf16.mxu1 %v2505_v8  ;;  %v2522_v19 = vld [vmem:[%s3819_s1 + $0x240] ss:$8 sps:$4 sm:$0xff]   ;;  %v2525_v21 = vld [vmem:[%s3819_s1 + $0x254] ss:$8 sps:$4 sm:$0xff]   ;;  %v2528_v23 = vld [vmem:[%s3819_s1 + $0x250] ss:$8 sps:$4 sm:$0xff]  }
   0x9   :  { %1569 = vmatprep.subr.bf16.mxu0 %v2507_v9  ;;  %v2529_v24 = vld [vmem:[%s3819_s1 + $0x64] ss:$8 sps:$4 sm:$0xff]   ;;  %v2533_v26 = vld [vmem:[%s3819_s1 + $0x60] ss:$8 sps:$4 sm:$0xff]   ;;  %v2535_v28 = vld [vmem:[%s3819_s1 + $0x74] ss:$8 sps:$4 sm:$0xff]  }
   0xa   :  { %v2531_v25 = vld [vmem:[%s3819_s1 + $0x264] ss:$8 sps:$4 sm:$0xff]   ;;  %v2534_v27 = vld [vmem:[%s3819_s1 + $0x260] ss:$8 sps:$4 sm:$0xff]   ;;  %v2537_v29 = vld [vmem:[%s3819_s1 + $0x274] ss:$8 sps:$4 sm:$0xff]  }
   0xb   :  { %1344 = vmatpush1.bf16.msra.mxu1 %v2509_v10  ;;  %v2539_v30 = vld [vmem:[%s3819_s1 + $0x70] ss:$8 sps:$4 sm:$0xff]   ;;  %v2541_v32 = vld [vmem:[%s3819_s1 + $0x84] ss:$8 sps:$4 sm:$0xff]   ;;  %v2545_v34 = vld [vmem:[%s3819_s1 + $0x80] ss:$8 sps:$4 sm:$0xff]  }
   0xc   :  { %1570 = vmatpush1.bf16.msra.mxu0 %v2510_v11  ;;  %1345 = vmatprep.subr.bf16.mxu1 %v2511_v12  ;;  %v2540_v31 = vld [vmem:[%s3819_s1 + $0x270] ss:$8 sps:$4 sm:$0xff]   ;;  %v2543_v33 = vld [vmem:[%s3819_s1 + $0x284] ss:$8 sps:$4 sm:$0xff]   ;;  %v2546_v35 = vld [vmem:[%s3819_s1 + $0x280] ss:$8 sps:$4 sm:$0xff]  }
   0xd   :  { %1571 = vmatprep.subr.bf16.mxu0 %v2513_v13  ;;  %v2547_v36 = vld [vmem:[%s3819_s1 + $0x94] ss:$8 sps:$4 sm:$0xff]   ;;  %v2551_v38 = vld [vmem:[%s3819_s1 + $0x90] ss:$8 sps:$4 sm:$0xff]   ;;  %v2553_v40 = vld [vmem:[%s3819_s1 + $0xa4] ss:$8 sps:$4 sm:$0xff]  }
   0xe   :  { %v2549_v37 = vld [vmem:[%s3819_s1 + $0x294] ss:$8 sps:$4 sm:$0xff]   ;;  %v2552_v39 = vld [vmem:[%s3819_s1 + $0x290] ss:$8 sps:$4 sm:$0xff]   ;;  %v2555_v41 = vld [vmem:[%s3819_s1 + $0x2a4] ss:$8 sps:$4 sm:$0xff]  }
   0xf   :  { %1346 = vmatpush1.bf16.msra.mxu1 %v2515_v14  ;;  %v2557_v42 = vld [vmem:[%s3819_s1 + $0xa0] ss:$8 sps:$4 sm:$0xff]   ;;  %v2559_v44 = vld [vmem:[%s3819_s1 + $0xb4] ss:$8 sps:$4 sm:$0xff]   ;;  %v2563_v46 = vld [vmem:[%s3819_s1 + $0xb0] ss:$8 sps:$4 sm:$0xff]  }
  0x10   :  { %1572 = vmatpush1.bf16.msra.mxu0 %v2516_v15  ;;  %1347 = vmatprep.subr.bf16.mxu1 %v2517_v16  ;;  %v2558_v43 = vld [vmem:[%s3819_s1 + $0x2a0] ss:$8 sps:$4 sm:$0xff]   ;;  %v2561_v45 = vld [vmem:[%s3819_s1 + $0x2b4] ss:$8 sps:$4 sm:$0xff]   ;;  %v2564_v47 = vld [vmem:[%s3819_s1 + $0x2b0] ss:$8 sps:$4 sm:$0xff]  }
  0x11   :  { %1573 = vmatprep.subr.bf16.mxu0 %v2519_v17  ;;  %v2565_v48 = vld [vmem:[%s3819_s1 + $0xc4] ss:$8 sps:$4 sm:$0xff]   ;;  %v2594_v51 = vld [vmem:[%s3820_s0 + $0x14] ss:$36 sps:$4 sm:$0xff]   ;;  %v2569_v52 = vld [vmem:[%s3819_s1 + $0xc0] ss:$8 sps:$4 sm:$0xff]  }
  0x12   :  { %v2591_v49 = vld [vmem:[%s3820_s0 + $0x4] ss:$36 sps:$4 sm:$0xff]   ;;  %1597 = vmatprep.mubr.bf16.mxu0 %v2594_v51  ;;  %v2571_v54 = vld [vmem:[%s3819_s1 + $0xd4] ss:$8 sps:$4 sm:$0xff]   ;;  %v2575_v56 = vld [vmem:[%s3819_s1 + $0xd0] ss:$8 sps:$4 sm:$0xff]  }
  0x13   :  { %1348 = vmatpush1.bf16.msra.mxu1 %v2521_v18  ;;  %v2567_v50 = vld [vmem:[%s3819_s1 + $0x2c4] ss:$8 sps:$4 sm:$0xff]   ;;  %1371 = vmatprep.mubr.bf16.mxu1 %v2591_v49  ;;  %v2570_v53 = vld [vmem:[%s3819_s1 + $0x2c0] ss:$8 sps:$4 sm:$0xff]   ;;  %v2573_v55 = vld [vmem:[%s3819_s1 + $0x2d4] ss:$8 sps:$4 sm:$0xff]  }
  0x14   :  { %1574 = vmatpush1.bf16.msra.mxu0 %v2522_v19  ;;  %1349 = vmatprep.subr.bf16.mxu1 %v2523_v20  ;;  %v2576_v57 = vld [vmem:[%s3819_s1 + $0x2d0] ss:$8 sps:$4 sm:$0xff]   ;;  %v2577_v58 = vld [vmem:[%s3819_s1 + $0xe4] ss:$8 sps:$4 sm:$0xff]   ;;  %v2581_v60 = vld [vmem:[%s3819_s1 + $0xe0] ss:$8 sps:$4 sm:$0xff]  }
  0x15   :  { %1575 = vmatprep.subr.bf16.mxu0 %v2525_v21  ;;  %v2579_v59 = vld [vmem:[%s3819_s1 + $0x2e4] ss:$8 sps:$4 sm:$0xff]   ;;  %v2582_v61 = vld [vmem:[%s3819_s1 + $0x2e0] ss:$8 sps:$4 sm:$0xff]   ;;  %v2583_v62 = vld [vmem:[%s3819_s1 + $0xf4] ss:$8 sps:$4 sm:$0xff]  }
  0x16   :  { %v2585_v63 = vld [vmem:[%s3819_s1 + $0x2f4] ss:$8 sps:$4 sm:$0xff]   ;;  %v2587_v0 = vld [vmem:[%s3819_s1 + $0xf0] ss:$8 sps:$4 sm:$0xff]   ;;  %v2597_v2 = vld [vmem:[%s3819_s1 + $0x104] ss:$8 sps:$4 sm:$0xff]  }
  0x17   :  { %1350 = vmatpush1.bf16.msra.mxu1 %v2527_v22  ;;  %v2588_v1 = vld [vmem:[%s3819_s1 + $0x2f0] ss:$8 sps:$4 sm:$0xff]   ;;  %v3038_v3 = vld [vmem:[%s3819_s1 + $0x304] ss:$8 sps:$4 sm:$0xff]   ;;  %v2595_v6 = vld [vmem:[%s3819_s1 + $0x100] ss:$8 sps:$4 sm:$0xff]  }
  0x18   :  { %1576 = vmatpush1.bf16.msra.mxu0 %v2528_v23  ;;  %1351 = vmatprep.subr.bf16.mxu1 %v2529_v24  ;;  %v2589_v4 = vld [vmem:[%s3820_s0] ss:$36 sps:$4 sm:$0xff]   ;;  %v2592_v5 = vld [vmem:[%s3820_s0 + $0x10] ss:$36 sps:$4 sm:$0xff]   ;;  %v2611_v16 = vld [vmem:[%s3820_s0 + $0x48] ss:$36 sps:$4 sm:$0xff]  }
  0x19   :  { %1577 = vmatprep.subr.bf16.mxu0 %v2531_v25  ;;  %v3052_v7 = vld [vmem:[%s3819_s1 + $0x300] ss:$8 sps:$4 sm:$0xff]   ;;  %v2603_v8 = vld [vmem:[%s3819_s1 + $0x114] ss:$8 sps:$4 sm:$0xff]   ;;  %v2607_v10 = vld [vmem:[%s3820_s0 + $0x4c] ss:$36 sps:$4 sm:$0xff]  }
  0x1a   :  { %v3061_v9 = vld [vmem:[%s3819_s1 + $0x314] ss:$8 sps:$4 sm:$0xff]   ;;  %v2601_v12 = vld [vmem:[%s3819_s1 + $0x110] ss:$8 sps:$4 sm:$0xff]   ;;  %v2614_v14 = vld [vmem:[%s3819_s1 + $0x124] ss:$8 sps:$4 sm:$0xff]  }
  0x1b   :  { %1352 = vmatpush1.bf16.msra.mxu1 %v2533_v26  ;;  %v2609_v11 = vld [vmem:[%s3820_s0 + $0x5c] ss:$36 sps:$4 sm:$0xff]   ;;  %v3076_v13 = vld [vmem:[%s3819_s1 + $0x310] ss:$8 sps:$4 sm:$0xff]   ;;  %v3085_v15 = vld [vmem:[%s3819_s1 + $0x324] ss:$8 sps:$4 sm:$0xff]  }
  0x1c   :  { %1578 = vmatpush1.bf16.msra.mxu0 %v2534_v27  ;;  %1353 = vmatprep.subr.bf16.mxu1 %v2535_v28  ;;  %v2612_v17 = vld [vmem:[%s3819_s1 + $0x120] ss:$8 sps:$4 sm:$0xff]   ;;  %v2615_v18 = vld [vmem:[%s3820_s0 + $0x58] ss:$36 sps:$4 sm:$0xff]   ;;  %v2632_v26 = vld [vmem:[%s3819_s1 + $0x144] ss:$8 sps:$4 sm:$0xff]  }
  0x1d   :  { %1579 = vmatprep.subr.bf16.mxu0 %v2537_v29  ;;  %v3099_v19 = vld [vmem:[%s3819_s1 + $0x320] ss:$8 sps:$4 sm:$0xff]   ;;  %v2621_v20 = vld [vmem:[%s3819_s1 + $0x134] ss:$8 sps:$4 sm:$0xff]   ;;  %v2619_v24 = vld [vmem:[%s3819_s1 + $0x130] ss:$8 sps:$4 sm:$0xff]  }
  0x1e   :  { %v3109_v21 = vld [vmem:[%s3819_s1 + $0x334] ss:$8 sps:$4 sm:$0xff]   ;;  %v2627_v23 = vld [vmem:[%s3820_s0 + $0xa4] ss:$36 sps:$4 sm:$0xff]   ;;  %v3124_v25 = vld [vmem:[%s3819_s1 + $0x330] ss:$8 sps:$4 sm:$0xff]  }
  0x1f   :  { %1354 = vmatpush1.bf16.msra.mxu1 %v2539_v30  ;;  %v2625_v22 = vld [vmem:[%s3820_s0 + $0x94] ss:$36 sps:$4 sm:$0xff]   ;;  %v3133_v27 = vld [vmem:[%s3819_s1 + $0x344] ss:$8 sps:$4 sm:$0xff]   ;;  %v2630_v29 = vld [vmem:[%s3819_s1 + $0x140] ss:$8 sps:$4 sm:$0xff]  }
  0x20   :  { %1580 = vmatpush1.bf16.msra.mxu0 %v2540_v31  ;;  %1355 = vmatprep.subr.bf16.mxu1 %v2541_v32  ;;  %v2629_v28 = vld [vmem:[%s3820_s0 + $0x90] ss:$36 sps:$4 sm:$0xff]   ;;  %v2633_v30 = vld [vmem:[%s3820_s0 + $0xa0] ss:$36 sps:$4 sm:$0xff]  }
  0x21   :  { %1581 = vmatprep.subr.bf16.mxu0 %v2543_v33  ;;  %v3147_v31 = vld [vmem:[%s3819_s1 + $0x340] ss:$8 sps:$4 sm:$0xff]   ;;  %v2639_v32 = vld [vmem:[%s3819_s1 + $0x154] ss:$8 sps:$4 sm:$0xff]   ;;  %v3220_v49 = vld [vmem:[%s3819_s1 + $0x370] ss:$8 sps:$4 sm:$0xff]  }
  0x22   :  { %v3157_v33 = vld [vmem:[%s3819_s1 + $0x354] ss:$8 sps:$4 sm:$0xff]   ;;  %v3229_v51 = vld [vmem:[%s3819_s1 + $0x384] ss:$8 sps:$4 sm:$0xff]  }
  0x23   :  { %1356 = vmatpush1.bf16.msra.mxu1 %v2545_v34  ;;  %v2643_v34 = vld [vmem:[%s3820_s0 + $0xdc] ss:$36 sps:$4 sm:$0xff]  }
  0x24   :  { %1582 = vmatpush1.bf16.msra.mxu0 %v2546_v35  ;;  %1357 = vmatprep.subr.bf16.mxu1 %v2547_v36  ;;  %v2645_v35 = vld [vmem:[%s3820_s0 + $0xec] ss:$36 sps:$4 sm:$0xff]  }
  0x25   :  { %1583 = vmatprep.subr.bf16.mxu0 %v2549_v37  ;;  %v2637_v36 = vld [vmem:[%s3819_s1 + $0x150] ss:$8 sps:$4 sm:$0xff]  }
  0x26   :  { %v3172_v37 = vld [vmem:[%s3819_s1 + $0x350] ss:$8 sps:$4 sm:$0xff]  }
  0x27   :  { %1358 = vmatpush1.bf16.msra.mxu1 %v2551_v38  ;;  %v2650_v38 = vld [vmem:[%s3819_s1 + $0x164] ss:$8 sps:$4 sm:$0xff]  }
  0x28   :  { %1584 = vmatpush1.bf16.msra.mxu0 %v2552_v39  ;;  %1359 = vmatprep.subr.bf16.mxu1 %v2553_v40  ;;  %v3181_v39 = vld [vmem:[%s3819_s1 + $0x364] ss:$8 sps:$4 sm:$0xff]   ;;  %v2647_v40 = vld [vmem:[%s3820_s0 + $0xd8] ss:$36 sps:$4 sm:$0xff]  }
  0x29   :  { %1585 = vmatprep.subr.bf16.mxu0 %v2555_v41  ;;  %v2648_v41 = vld [vmem:[%s3819_s1 + $0x160] ss:$8 sps:$4 sm:$0xff]  }
  0x2b   :  { %1360 = vmatpush1.bf16.msra.mxu1 %v2557_v42  ;;  %v2651_v42 = vld [vmem:[%s3820_s0 + $0xe8] ss:$36 sps:$4 sm:$0xff]  }
  0x2c   :  { %1586 = vmatpush1.bf16.msra.mxu0 %v2558_v43  ;;  %1361 = vmatprep.subr.bf16.mxu1 %v2559_v44  ;;  %v3195_v43 = vld [vmem:[%s3819_s1 + $0x360] ss:$8 sps:$4 sm:$0xff]   ;;  %v2657_v44 = vld [vmem:[%s3819_s1 + $0x174] ss:$8 sps:$4 sm:$0xff]  }
  0x2d   :  { %1587 = vmatprep.subr.bf16.mxu0 %v2561_v45  ;;  %v3205_v45 = vld [vmem:[%s3819_s1 + $0x374] ss:$8 sps:$4 sm:$0xff]  }
  0x2f   :  { %1362 = vmatpush1.bf16.msra.mxu1 %v2563_v46  ;;  %v2661_v46 = vld [vmem:[%s3820_s0 + $0x124] ss:$36 sps:$4 sm:$0xff]  }
  0x30   :  { %1588 = vmatpush1.bf16.msra.mxu0 %v2564_v47  ;;  %1363 = vmatprep.subr.bf16.mxu1 %v2565_v48  ;;  %v2663_v47 = vld [vmem:[%s3820_s0 + $0x134] ss:$36 sps:$4 sm:$0xff]  }
  0x31   :  { %1589 = vmatprep.subr.bf16.mxu0 %v2567_v50  ;;  %v2655_v48 = vld [vmem:[%s3819_s1 + $0x170] ss:$8 sps:$4 sm:$0xff]   ;;  %v2668_v50 = vld [vmem:[%s3819_s1 + $0x184] ss:$8 sps:$4 sm:$0xff]  }
  0x33   :  { %1364 = vmatpush1.bf16.msra.mxu1 %v2569_v52  ;;  %v2665_v52 = vld [vmem:[%s3820_s0 + $0x120] ss:$36 sps:$4 sm:$0xff]  }
  0x34   :  { %1590 = vmatpush1.bf16.msra.mxu0 %v2570_v53  ;;  %1365 = vmatprep.subr.bf16.mxu1 %v2571_v54  ;;  %v2666_v53 = vld [vmem:[%s3819_s1 + $0x180] ss:$8 sps:$4 sm:$0xff]   ;;  %v2669_v54 = vld [vmem:[%s3820_s0 + $0x130] ss:$36 sps:$4 sm:$0xff]  }
  0x35   :  { %1591 = vmatprep.subr.bf16.mxu0 %v2573_v55  ;;  %v3243_v55 = vld [vmem:[%s3819_s1 + $0x380] ss:$8 sps:$4 sm:$0xff]  }
  0x37   :  { %1366 = vmatpush1.bf16.msra.mxu1 %v2575_v56  ;;  %v2675_v56 = vld [vmem:[%s3819_s1 + $0x194] ss:$8 sps:$4 sm:$0xff]  }
  0x38   :  { %1592 = vmatpush1.bf16.msra.mxu0 %v2576_v57  ;;  %1367 = vmatprep.subr.bf16.mxu1 %v2577_v58  ;;  %v3253_v57 = vld [vmem:[%s3819_s1 + $0x394] ss:$8 sps:$4 sm:$0xff]   ;;  %v2679_v58 = vld [vmem:[%s3820_s0 + $0x16c] ss:$36 sps:$4 sm:$0xff]  }
  0x39   :  { %1593 = vmatprep.subr.bf16.mxu0 %v2579_v59  ;;  %v2681_v59 = vld [vmem:[%s3820_s0 + $0x17c] ss:$36 sps:$4 sm:$0xff]  }
  0x3b   :  { %1368 = vmatpush1.bf16.msra.mxu1 %v2581_v60  ;;  %v2673_v60 = vld [vmem:[%s3819_s1 + $0x190] ss:$8 sps:$4 sm:$0xff]  }
  0x3c   :  { %1594 = vmatpush1.bf16.msra.mxu0 %v2582_v61  ;;  %1369 = vmatprep.subr.bf16.mxu1 %v2583_v62  ;;  %v3268_v61 = vld [vmem:[%s3819_s1 + $0x390] ss:$8 sps:$4 sm:$0xff]   ;;  %v2686_v62 = vld [vmem:[%s3819_s1 + $0x1a4] ss:$8 sps:$4 sm:$0xff]  }
  0x3d   :  { %1595 = vmatprep.subr.bf16.mxu0 %v2585_v63  ;;  %v3277_v63 = vld [vmem:[%s3819_s1 + $0x3a4] ss:$8 sps:$4 sm:$0xff]  }
  0x3f   :  { %1370 = vmatpush1.bf16.msra.mxu1 %v2587_v0  ;;  %v2683_v0 = vld [vmem:[%s3820_s0 + $0x168] ss:$36 sps:$4 sm:$0xff]  }
  0x40   :  { %1596 = vmatpush1.bf16.msra.mxu0 %v2588_v1  ;;  %1452 = vmatprep.subr.bf16.mxu1 %v2597_v2  ;;  %v2684_v1 = vld [vmem:[%s3819_s1 + $0x1a0] ss:$8 sps:$4 sm:$0xff]   ;;  %v2687_v2 = vld [vmem:[%s3820_s0 + $0x178] ss:$36 sps:$4 sm:$0xff]  }
  0x41   :  { %1678 = vmatprep.subr.bf16.mxu0 %v3038_v3 }
  0x42   :  { %1372 = vmatmul.mubr.bf16.vlgmr.msra.gmra.mrb[0].mxu1 %v2589_v4  ;;  %v3291_v4 = vld [vmem:[%s3819_s1 + $0x3a0] ss:$8 sps:$4 sm:$0xff]  }
  0x43   :  { %1598 = vmatmul.mubr.bf16.vlgmr.msra.gmra.mrb[0].mxu0 %v2592_v5  ;;  %1453 = vmatpush1.bf16.msra.mxu1 %v2595_v6  ;;  %v2693_v5 = vld [vmem:[%s3819_s1 + $0x1b4] ss:$8 sps:$4 sm:$0xff]  }
  0x44   :  { %1679 = vmatpush1.bf16.msra.mxu0 %v3052_v7  ;;  %1454 = vmatprep.subr.bf16.mxu1 %v2603_v8  ;;  %v3301_v6 = vld [vmem:[%s3819_s1 + $0x3b4] ss:$8 sps:$4 sm:$0xff]  }
  0x45   :  { %1680 = vmatprep.subr.bf16.mxu0 %v3061_v9  ;;  %1381 = vmatprep.mubr.bf16.mxu1 %v2607_v10  ;;  %v2697_v8 = vld [vmem:[%s3820_s0 + $0x1b4] ss:$36 sps:$4 sm:$0xff]   ;;  %v2699_v10 = vld [vmem:[%s3820_s0 + $0x1c4] ss:$36 sps:$4 sm:$0xff]  }
  0x46   :  { %1607 = vmatprep.mubr.bf16.mxu0 %v2609_v11  ;;  %v2691_v11 = vld [vmem:[%s3819_s1 + $0x1b0] ss:$8 sps:$4 sm:$0xff]  }
  0x47   :  { %1455 = vmatpush1.bf16.msra.mxu1 %v2601_v12  ;;  %v3315_v12 = vld [vmem:[%s3819_s1 + $0x3b0] ss:$8 sps:$4 sm:$0xff]  }
  0x48   :  { %1681 = vmatpush1.bf16.msra.mxu0 %v3076_v13  ;;  %1456 = vmatprep.subr.bf16.mxu1 %v2614_v14  ;;  %v2704_v14 = vld [vmem:[%s3819_s1 + $0x1c4] ss:$8 sps:$4 sm:$0xff]  }
  0x49   :  { %1682 = vmatprep.subr.bf16.mxu0 %v3085_v15 }
  0x4a   :  { %1382 = vmatmul.mubr.bf16.gmra.mrb[4].mxu1 %v2611_v16  ;;  %v3325_v16 = vld [vmem:[%s3819_s1 + $0x3c4] ss:$8 sps:$4 sm:$0xff]  }
  0x4b   :  { %1608 = vmatmul.mubr.bf16.gmra.mrb[4].mxu0 %v2615_v18  ;;  %1457 = vmatpush1.bf16.msra.mxu1 %v2612_v17  ;;  %v2701_v17 = vld [vmem:[%s3820_s0 + $0x1b0] ss:$36 sps:$4 sm:$0xff]   ;;  %v2702_v18 = vld [vmem:[%s3819_s1 + $0x1c0] ss:$8 sps:$4 sm:$0xff]  }
  0x4c   :  { %1683 = vmatpush1.bf16.msra.mxu0 %v3099_v19  ;;  %1458 = vmatprep.subr.bf16.mxu1 %v2621_v20  ;;  %v2705_v20 = vld [vmem:[%s3820_s0 + $0x1c0] ss:$36 sps:$4 sm:$0xff]  }
  0x4d   :  { %1684 = vmatprep.subr.bf16.mxu0 %v3109_v21  ;;  %1391 = vmatprep.mubr.bf16.mxu1 %v2625_v22  ;;  %v3339_v22 = vld [vmem:[%s3819_s1 + $0x3c0] ss:$8 sps:$4 sm:$0xff]  }
  0x4e   :  { %1617 = vmatprep.mubr.bf16.mxu0 %v2627_v23  ;;  %v2711_v23 = vld [vmem:[%s3819_s1 + $0x1d4] ss:$8 sps:$4 sm:$0xff]  }
  0x4f   :  { %1459 = vmatpush1.bf16.msra.mxu1 %v2619_v24  ;;  %v3349_v24 = vld [vmem:[%s3819_s1 + $0x3d4] ss:$8 sps:$4 sm:$0xff]  }
  0x50   :  { %1685 = vmatpush1.bf16.msra.mxu0 %v3124_v25  ;;  %1460 = vmatprep.subr.bf16.mxu1 %v2632_v26  ;;  %v2715_v26 = vld [vmem:[%s3820_s0 + $0x1fc] ss:$36 sps:$4 sm:$0xff]  }
  0x51   :  { %1686 = vmatprep.subr.bf16.mxu0 %v3133_v27 }
  0x52   :  { %1392 = vmatmul.mubr.bf16.gmra.mrb[8].mxu1 %v2629_v28  ;;  %v2717_v28 = vld [vmem:[%s3820_s0 + $0x20c] ss:$36 sps:$4 sm:$0xff]  }
  0x53   :  { %1618 = vmatmul.mubr.bf16.gmra.mrb[8].mxu0 %v2633_v30  ;;  %1461 = vmatpush1.bf16.msra.mxu1 %v2630_v29  ;;  %v2709_v29 = vld [vmem:[%s3819_s1 + $0x1d0] ss:$8 sps:$4 sm:$0xff]  }
  0x54   :  { %1687 = vmatpush1.bf16.msra.mxu0 %v3147_v31  ;;  %1462 = vmatprep.subr.bf16.mxu1 %v2639_v32  ;;  %v3363_v30 = vld [vmem:[%s3819_s1 + $0x3d0] ss:$8 sps:$4 sm:$0xff]   ;;  %v2722_v32 = vld [vmem:[%s3819_s1 + $0x1e4] ss:$8 sps:$4 sm:$0xff]  }
  0x55   :  { %1688 = vmatprep.subr.bf16.mxu0 %v3157_v33  ;;  %1401 = vmatprep.mubr.bf16.mxu1 %v2643_v34  ;;  %v3373_v34 = vld [vmem:[%s3819_s1 + $0x3e4] ss:$8 sps:$4 sm:$0xff]  }
  0x56   :  { %1627 = vmatprep.mubr.bf16.mxu0 %v2645_v35  ;;  %v2719_v35 = vld [vmem:[%s3820_s0 + $0x1f8] ss:$36 sps:$4 sm:$0xff]  }
  0x57   :  { %1463 = vmatpush1.bf16.msra.mxu1 %v2637_v36  ;;  %v2720_v36 = vld [vmem:[%s3819_s1 + $0x1e0] ss:$8 sps:$4 sm:$0xff]  }
  0x58   :  { %1689 = vmatpush1.bf16.msra.mxu0 %v3172_v37  ;;  %1464 = vmatprep.subr.bf16.mxu1 %v2650_v38  ;;  %v2723_v38 = vld [vmem:[%s3820_s0 + $0x208] ss:$36 sps:$4 sm:$0xff]  }
  0x59   :  { %1690 = vmatprep.subr.bf16.mxu0 %v3181_v39 }
  0x5a   :  { %1402 = vmatmul.mubr.bf16.gmra.mrb[12].mxu1 %v2647_v40  ;;  %v3387_v40 = vld [vmem:[%s3819_s1 + $0x3e0] ss:$8 sps:$4 sm:$0xff]  }
  0x5b   :  { %1628 = vmatmul.mubr.bf16.gmra.mrb[12].mxu0 %v2651_v42  ;;  %1465 = vmatpush1.bf16.msra.mxu1 %v2648_v41  ;;  %v2729_v41 = vld [vmem:[%s3819_s1 + $0x1f4] ss:$8 sps:$4 sm:$0xff]  }
  0x5c   :  { %1691 = vmatpush1.bf16.msra.mxu0 %v3195_v43  ;;  %1466 = vmatprep.subr.bf16.mxu1 %v2657_v44  ;;  %v3397_v42 = vld [vmem:[%s3819_s1 + $0x3f4] ss:$8 sps:$4 sm:$0xff]   ;;  %v2735_v44 = vld [vmem:[%s3820_s0 + $0xc] ss:$36 sps:$4 sm:$0xff]  }
  0x5d   :  { %1692 = vmatprep.subr.bf16.mxu0 %v3205_v45  ;;  %1411 = vmatprep.mubr.bf16.mxu1 %v2661_v46  ;;  %v2738_v46 = vld [vmem:[%s3820_s0 + $0x1c] ss:$36 sps:$4 sm:$0xff]  }
  0x5e   :  { %1637 = vmatprep.mubr.bf16.mxu0 %v2663_v47  ;;  %v2727_v47 = vld [vmem:[%s3819_s1 + $0x1f0] ss:$8 sps:$4 sm:$0xff]  }
  0x5f   :  { %1467 = vmatpush1.bf16.msra.mxu1 %v2655_v48  ;;  %v3412_v48 = vld [vmem:[%s3819_s1 + $0x3f0] ss:$8 sps:$4 sm:$0xff]  }
  0x60   :  { %1693 = vmatpush1.bf16.msra.mxu0 %v3220_v49  ;;  %1468 = vmatprep.subr.bf16.mxu1 %v2668_v50  ;;  %v2741_v50 = vld [vmem:[%s3819_s1 + $0x404] ss:$8 sps:$4 sm:$0xff]  }
  0x61   :  { %1694 = vmatprep.subr.bf16.mxu0 %v3229_v51 }
  0x62   :  { %1412 = vmatmul.mubr.bf16.gmra.mrb[16].mxu1 %v2665_v52  ;;  %v2733_v52 = vld [vmem:[%s3820_s0 + $0x8] ss:$36 sps:$4 sm:$0xff]  }
  0x63   :  { %1638 = vmatmul.mubr.bf16.gmra.mrb[16].mxu0 %v2669_v54  ;;  %1469 = vmatpush1.bf16.msra.mxu1 %v2666_v53  ;;  %v2736_v53 = vld [vmem:[%s3820_s0 + $0x18] ss:$36 sps:$4 sm:$0xff]   ;;  %v2739_v54 = vld [vmem:[%s3819_s1 + $0x400] ss:$8 sps:$4 sm:$0xff]  }
  0x64   :  { %1695 = vmatpush1.bf16.msra.mxu0 %v3243_v55  ;;  %1470 = vmatprep.subr.bf16.mxu1 %v2675_v56  ;;  %v2744_v56 = vld [vmem:[%s3819_s1 + $0x414] ss:$8 sps:$4 sm:$0xff]  }
  0x65   :  { %1696 = vmatprep.subr.bf16.mxu0 %v3253_v57  ;;  %1421 = vmatprep.mubr.bf16.mxu1 %v2679_v58  ;;  %v2745_v58 = vld [vmem:[%s3820_s0 + $0x54] ss:$36 sps:$4 sm:$0xff]  }
  0x66   :  { %1647 = vmatprep.mubr.bf16.mxu0 %v2681_v59  ;;  %v2747_v59 = vld [vmem:[%s3820_s0 + $0x64] ss:$36 sps:$4 sm:$0xff]  }
  0x67   :  { %1471 = vmatpush1.bf16.msra.mxu1 %v2673_v60  ;;  %v2742_v60 = vld [vmem:[%s3819_s1 + $0x410] ss:$8 sps:$4 sm:$0xff]  }
  0x68   :  { %1697 = vmatpush1.bf16.msra.mxu0 %v3268_v61  ;;  %1472 = vmatprep.subr.bf16.mxu1 %v2686_v62  ;;  %v2749_v62 = vld [vmem:[%s3820_s0 + $0x50] ss:$36 sps:$4 sm:$0xff]  }
  0x69   :  { %1698 = vmatprep.subr.bf16.mxu0 %v3277_v63 }
  0x6a   :  { %1422 = vmatmul.mubr.bf16.gmra.mrb[20].mxu1 %v2683_v0  ;;  %v2756_v0 = vld [vmem:[%s3819_s1 + $0x434] ss:$8 sps:$4 sm:$0xff]  }
  0x6b   :  { %1648 = vmatmul.mubr.bf16.gmra.mrb[20].mxu0 %v2687_v2  ;;  %1473 = vmatpush1.bf16.msra.mxu1 %v2684_v1  ;;  %v2757_v1 = vld [vmem:[%s3820_s0 + $0x9c] ss:$36 sps:$4 sm:$0xff]   ;;  %v2765_v2 = vld [vmem:[%s3819_s1 + $0x444] ss:$8 sps:$4 sm:$0xff]  }
  0x6c   :  { %1699 = vmatpush1.bf16.msra.mxu0 %v3291_v4  ;;  %1474 = vmatprep.subr.bf16.mxu1 %v2693_v5  ;;  %v2761_v5 = vld [vmem:[%s3820_s0 + $0x98] ss:$36 sps:$4 sm:$0xff]  }
  0x6d   :  { %1700 = vmatprep.subr.bf16.mxu0 %v3301_v6  ;;  %1431 = vmatprep.mubr.bf16.mxu1 %v2697_v8  ;;  %v2768_v8 = vld [vmem:[%s3819_s1 + $0x454] ss:$8 sps:$4 sm:$0xff]  }
  0x6e   :  { %1657 = vmatprep.mubr.bf16.mxu0 %v2699_v10  ;;  %v2769_v10 = vld [vmem:[%s3820_s0 + $0xe4] ss:$36 sps:$4 sm:$0xff]  }
  0x6f   :  { %1475 = vmatpush1.bf16.msra.mxu1 %v2691_v11  ;;  %v2777_v11 = vld [vmem:[%s3819_s1 + $0x464] ss:$8 sps:$4 sm:$0xff]  }
  0x70   :  { %1701 = vmatpush1.bf16.msra.mxu0 %v3315_v12  ;;  %1476 = vmatprep.subr.bf16.mxu1 %v2704_v14  ;;  %v2773_v14 = vld [vmem:[%s3820_s0 + $0xe0] ss:$36 sps:$4 sm:$0xff]  }
  0x71   :  { %1702 = vmatprep.subr.bf16.mxu0 %v3325_v16 }
  0x72   :  { %1432 = vmatmul.mubr.bf16.gmra.mrb[24].mxu1 %v2701_v17  ;;  %v2780_v17 = vld [vmem:[%s3819_s1 + $0x474] ss:$8 sps:$4 sm:$0xff]  }
  0x73   :  { %1658 = vmatmul.mubr.bf16.gmra.mrb[24].mxu0 %v2705_v20  ;;  %1477 = vmatpush1.bf16.msra.mxu1 %v2702_v18  ;;  %v2781_v18 = vld [vmem:[%s3820_s0 + $0x12c] ss:$36 sps:$4 sm:$0xff]  }
  0x74   :  { %1703 = vmatpush1.bf16.msra.mxu0 %v3339_v22  ;;  %1478 = vmatprep.subr.bf16.mxu1 %v2711_v23  ;;  %v2783_v20 = vld [vmem:[%s3820_s0 + $0x128] ss:$36 sps:$4 sm:$0xff]  }
  0x75   :  { %1704 = vmatprep.subr.bf16.mxu0 %v3349_v24  ;;  %1441 = vmatprep.mubr.bf16.mxu1 %v2715_v26  ;;  %v2788_v23 = vld [vmem:[%s3820_s0 + $0x68] ss:$36 sps:$4 sm:$0xff]  }
  0x76   :  { %1667 = vmatprep.mubr.bf16.mxu0 %v2717_v28  ;;  %v2804_v26 = vld [vmem:[%s3820_s0 + $0x188] ss:$36 sps:$4 sm:$0xff]  }
  0x77   :  { %1479 = vmatpush1.bf16.msra.mxu1 %v2709_v29  ;;  %v2805_v28 = vld [vmem:[%s3820_s0 + $0x1cc] ss:$36 sps:$4 sm:$0xff]  }
  0x78   :  { %1705 = vmatpush1.bf16.msra.mxu0 %v3363_v30  ;;  %1480 = vmatprep.subr.bf16.mxu1 %v2722_v32  ;;  %v2807_v29 = vld [vmem:[%s3820_s0 + $0x1c8] ss:$36 sps:$4 sm:$0xff]   ;;  %v2809_v32 = vld [vmem:[%s3820_s0 + $0x214] ss:$36 sps:$4 sm:$0xff]  }
  0x79   :  { %1706 = vmatprep.subr.bf16.mxu0 %v3373_v34 }
  0x7a   :  { %1442 = vmatmul.mubr.bf16.gmra.mrb[28].mxu1 %v2719_v35  ;;  %v2812_v35 = vld [vmem:[%s3820_s0 + $0x218] ss:$36 sps:$4 sm:$0xff]  }
  0x7b   :  { %1668 = vmatmul.mubr.bf16.gmra.mrb[28].mxu0 %v2723_v38  ;;  %1481 = vmatpush1.bf16.msra.mxu1 %v2720_v36 }
  0x7c   :  { %1707 = vmatpush1.bf16.msra.mxu0 %v3387_v40  ;;  %1482 = vmatprep.subr.bf16.mxu1 %v2729_v41 }
  0x7d   :  { %1708 = vmatprep.subr.bf16.mxu0 %v3397_v42  ;;  %1484 = vmatprep.mubr.bf16.mxu1 %v2735_v44 }
  0x7e   :  { %1710 = vmatprep.mubr.bf16.mxu0 %v2738_v46 }
  0x7f   :  { %1483 = vmatpush1.bf16.msra.mxu1 %v2727_v47 }
  0x80   :  { %1709 = vmatpush1.bf16.msra.mxu0 %v3412_v48  ;;  %2300 = vmatprep.subr.bf16.mxu1 %v3038_v3  ;;  %v2753_v3 = vld [vmem:[%s3819_s1 + $0x424] ss:$8 sps:$4 sm:$0xff]  }
  0x81   :  { %1791 = vmatprep.subr.bf16.mxu0 %v2741_v50 }
  0x82   :  { %1485 = vmatmul.mubr.bf16.vlgmr.msra.gmra.mrb[0].mxu1 %v2733_v52 }
  0x83   :  { %1711 = vmatmul.mubr.bf16.vlgmr.msra.gmra.mrb[0].mxu0 %v2736_v53  ;;  %2316 = vmatpush1.bf16.msra.mxu1 %v3052_v7  ;;  %v2750_v7 = vld [vmem:[%s3820_s0 + $0x60] ss:$36 sps:$4 sm:$0xff]  }
  0x84   :  { %1792 = vmatpush1.bf16.msra.mxu0 %v2739_v54  ;;  %2301 = vmatprep.subr.bf16.mxu1 %v3061_v9  ;;  %v2751_v9 = vld [vmem:[%s3819_s1 + $0x420] ss:$8 sps:$4 sm:$0xff]  }
  0x85   :  { %1793 = vmatprep.subr.bf16.mxu0 %v2744_v56  ;;  %1494 = vmatprep.mubr.bf16.mxu1 %v2745_v58 }
  0x86   :  { %1720 = vmatprep.mubr.bf16.mxu0 %v2747_v59 }
  0x87   :  { %2317 = vmatpush1.bf16.msra.mxu1 %v3076_v13  ;;  %v2759_v13 = vld [vmem:[%s3820_s0 + $0xac] ss:$36 sps:$4 sm:$0xff]  }
  0x88   :  { %1794 = vmatpush1.bf16.msra.mxu0 %v2742_v60  ;;  %2302 = vmatprep.subr.bf16.mxu1 %v3085_v15  ;;  %v2754_v15 = vld [vmem:[%s3819_s1 + $0x430] ss:$8 sps:$4 sm:$0xff]  }
  0x89   :  { %1795 = vmatprep.subr.bf16.mxu0 %v2753_v3 }
  0x8a   :  { %1495 = vmatmul.mubr.bf16.gmra.mrb[4].mxu1 %v2749_v62 }
  0x8b   :  { %1721 = vmatmul.mubr.bf16.gmra.mrb[4].mxu0 %v2750_v7  ;;  %2318 = vmatpush1.bf16.msra.mxu1 %v3099_v19  ;;  %v2762_v19 = vld [vmem:[%s3820_s0 + $0xa8] ss:$36 sps:$4 sm:$0xff]  }
  0x8c   :  { %1796 = vmatpush1.bf16.msra.mxu0 %v2751_v9  ;;  %2303 = vmatprep.subr.bf16.mxu1 %v3109_v21  ;;  %v2763_v21 = vld [vmem:[%s3819_s1 + $0x440] ss:$8 sps:$4 sm:$0xff]  }
  0x8d   :  { %1797 = vmatprep.subr.bf16.mxu0 %v2756_v0  ;;  %1504 = vmatprep.mubr.bf16.mxu1 %v2757_v1 }
  0x8e   :  { %1730 = vmatprep.mubr.bf16.mxu0 %v2759_v13 }
  0x8f   :  { %2319 = vmatpush1.bf16.msra.mxu1 %v3124_v25  ;;  %v2771_v25 = vld [vmem:[%s3820_s0 + $0xf4] ss:$36 sps:$4 sm:$0xff]  }
  0x90   :  { %1798 = vmatpush1.bf16.msra.mxu0 %v2754_v15  ;;  %2304 = vmatprep.subr.bf16.mxu1 %v3133_v27  ;;  %v2766_v27 = vld [vmem:[%s3819_s1 + $0x450] ss:$8 sps:$4 sm:$0xff]   ;;  %v241_v15 = vlaneseq }
  0x91   :  { %1799 = vmatprep.subr.bf16.mxu0 %v2765_v2 }
  0x92   :  { %1505 = vmatmul.mubr.bf16.gmra.mrb[8].mxu1 %v2761_v5 }
  0x93   :  { %1731 = vmatmul.mubr.bf16.gmra.mrb[8].mxu0 %v2762_v19  ;;  %2320 = vmatpush1.bf16.msra.mxu1 %v3147_v31  ;;  %v2774_v31 = vld [vmem:[%s3820_s0 + $0xf0] ss:$36 sps:$4 sm:$0xff]  }
  0x94   :  { %1800 = vmatpush1.bf16.msra.mxu0 %v2763_v21  ;;  %2305 = vmatprep.subr.bf16.mxu1 %v3157_v33  ;;  %v2775_v33 = vld [vmem:[%s3819_s1 + $0x460] ss:$8 sps:$4 sm:$0xff]   ;;  %v242_v21 = vshrl.u32 %v241_v15, 7 }
  0x95   :  { %1801 = vmatprep.subr.bf16.mxu0 %v2768_v8  ;;  %1514 = vmatprep.mubr.bf16.mxu1 %v2769_v10 }
  0x96   :  { %1740 = vmatprep.mubr.bf16.mxu0 %v2771_v25  ;;  %v243_v10 = vsub.s32 0, %v242_v21  ;;  %v239_v25 = vld [vmem:[%s3821_s2] sm:$0x3] }
  0x97   :  { %2321 = vmatpush1.bf16.msra.mxu1 %v3172_v37  ;;  %v2778_v37 = vld [vmem:[%s3819_s1 + $0x470] ss:$8 sps:$4 sm:$0xff]  }
  0x98   :  { %1802 = vmatpush1.bf16.msra.mxu0 %v2766_v27  ;;  %2306 = vmatprep.subr.bf16.mxu1 %v3181_v39  ;;  %v2813_v39 = vmov 0   ;;  %v247_v27 = vsub.s32 1, %v242_v21 }
  0x99   :  { %1803 = vmatprep.subr.bf16.mxu0 %v2777_v11 }
  0x9a   :  { %1515 = vmatmul.mubr.bf16.gmra.mrb[12].mxu1 %v2773_v14 }
  0x9b   :  { %1741 = vmatmul.mubr.bf16.gmra.mrb[12].mxu0 %v2774_v31  ;;  %2322 = vmatpush1.bf16.msra.mxu1 %v3195_v43  ;;  %v2784_v43 = vld [vmem:[%s3820_s0 + $0x20] ss:$36 sps:$4 sm:$0xff]  }
  0x9c   :  { %1804 = vmatpush1.bf16.msra.mxu0 %v2775_v33  ;;  %2307 = vmatprep.subr.bf16.mxu1 %v3205_v45  ;;  %v2785_v45 = vld [vmem:[%s3820_s0 + $0x174] ss:$36 sps:$4 sm:$0xff]   ;;  %v3663_v33 = vrot.slane %v239_v25, %v243_v10 }
  0x9d   :  { %1805 = vmatprep.subr.bf16.mxu0 %v2780_v17  ;;  %1524 = vmatprep.mubr.bf16.mxu1 %v2781_v18  ;;  %v3667_v18 = vrot.slane %v239_v25, %v247_v27 }
  0x9e   :  { %1823 = vmatprep.mubr.bf16.mxu0 %v2813_v39 }
  0x9f   :  { %2323 = vmatpush1.bf16.msra.mxu1 %v3220_v49  ;;  %v2787_v49 = vld [vmem:[%s3820_s0 + $0x170] ss:$36 sps:$4 sm:$0xff]  }
  0xa0   :  { %1806 = vmatpush1.bf16.msra.mxu0 %v2778_v37  ;;  %2308 = vmatprep.subr.bf16.mxu1 %v3229_v51  ;;  %v2789_v51 = vld [vmem:[%s3820_s0 + $0x1bc] ss:$36 sps:$4 sm:$0xff]  }
  0xa2   :  { %1525 = vmatmul.mubr.bf16.gmra.mrb[16].mxu1 %v2783_v20 }
  0xa3   :  { %1824 = vmatmul.mubr.bf16.vlgmr.msra.gmra.mrb[0].mxu0 %v2784_v43  ;;  %2324 = vmatpush1.bf16.msra.mxu1 %v3243_v55  ;;  %v2791_v55 = vld [vmem:[%s3820_s0 + $0x1b8] ss:$36 sps:$4 sm:$0xff]  }
  0xa4   :  { %1534 = vmatprep.mubr.bf16.mxu1 %v2785_v45  ;;  %2309 = vmatprep.subr.bf16.mxu1 %v3253_v57  ;;  %v2792_v57 = vld [vmem:[%s3820_s0 + $0xb0] ss:$36 sps:$4 sm:$0xff]  }
  0xa5   :  { %1833 = vmatprep.mubr.bf16.mxu0 %v2813_v39 }
  0xa7   :  { %2325 = vmatpush1.bf16.msra.mxu1 %v3268_v61  ;;  %v2793_v61 = vld [vmem:[%s3820_s0 + $0x204] ss:$36 sps:$4 sm:$0xff]  }
  0xa8   :  { %2310 = vmatprep.subr.bf16.mxu1 %v3277_v63  ;;  %v2795_v63 = vld [vmem:[%s3820_s0 + $0x200] ss:$36 sps:$4 sm:$0xff]  }
  0xaa   :  { %1535 = vmatmul.mubr.bf16.gmra.mrb[20].mxu1 %v2787_v49 }
  0xab   :  { %1834 = vmatmul.mubr.bf16.gmra.mrb[4].mxu0 %v2788_v23  ;;  %2326 = vmatpush1.bf16.msra.mxu1 %v3291_v4  ;;  %v2796_v4 = vld [vmem:[%s3820_s0 + $0xf8] ss:$36 sps:$4 sm:$0xff]  }
  0xac   :  { %1544 = vmatprep.mubr.bf16.mxu1 %v2789_v51  ;;  %2311 = vmatprep.subr.bf16.mxu1 %v3301_v6  ;;  %v2799_v6 = vld [vmem:[%s3820_s0 + $0x13c] ss:$36 sps:$4 sm:$0xff]  }
  0xad   :  { %1843 = vmatprep.mubr.bf16.mxu0 %v2813_v39 }
  0xaf   :  { %2327 = vmatpush1.bf16.msra.mxu1 %v3315_v12  ;;  %v2797_v12 = vld [vmem:[%s3820_s0 + $0x138] ss:$36 sps:$4 sm:$0xff]  }
  0xb0   :  { %2312 = vmatprep.subr.bf16.mxu1 %v3325_v16  ;;  %v2800_v16 = vld [vmem:[%s3820_s0 + $0x140] ss:$36 sps:$4 sm:$0xff]  }
  0xb2   :  { %1545 = vmatmul.mubr.bf16.gmra.mrb[24].mxu1 %v2791_v55 }
  0xb3   :  { %1844 = vmatmul.mubr.bf16.gmra.mrb[8].mxu0 %v2792_v57  ;;  %2328 = vmatpush1.bf16.msra.mxu1 %v3339_v22  ;;  %v2801_v22 = vld [vmem:[%s3820_s0 + $0x184] ss:$36 sps:$4 sm:$0xff]  }
  0xb4   :  { %1554 = vmatprep.mubr.bf16.mxu1 %v2793_v61  ;;  %2313 = vmatprep.subr.bf16.mxu1 %v3349_v24  ;;  %v2803_v24 = vld [vmem:[%s3820_s0 + $0x180] ss:$36 sps:$4 sm:$0xff]  }
  0xb5   :  { %1853 = vmatprep.mubr.bf16.mxu0 %v2813_v39 }
  0xb7   :  { %2329 = vmatpush1.bf16.msra.mxu1 %v3363_v30  ;;  %v2808_v30 = vld [vmem:[%s3820_s0 + $0x1d0] ss:$36 sps:$4 sm:$0xff]  }
  0xb8   :  { %2314 = vmatprep.subr.bf16.mxu1 %v3373_v34  ;;  %v2811_v34 = vld [vmem:[%s3820_s0 + $0x210] ss:$36 sps:$4 sm:$0xff]  }
  0xba   :  { %1555 = vmatmul.mubr.bf16.gmra.mrb[28].mxu1 %v2795_v63 }
  0xbb   :  { %1854 = vmatmul.mubr.bf16.gmra.mrb[12].mxu0 %v2796_v4  ;;  %2330 = vmatpush1.bf16.msra.mxu1 %v3387_v40 }
  0xbc   :  { %1750 = vmatprep.mubr.bf16.mxu1 %v2799_v6  ;;  %2315 = vmatprep.subr.bf16.mxu1 %v3397_v42 }
  0xbd   :  { %1863 = vmatprep.mubr.bf16.mxu0 %v2813_v39 }
  0xbf   :  { %2331 = vmatpush1.bf16.msra.mxu1 %v3412_v48 }
  0xc2   :  { %1751 = vmatmul.mubr.bf16.vlgmr.msra.gmra.mrb[32].mxu1 %v2797_v12 }
  0xc3   :  { %1864 = vmatmul.mubr.bf16.gmra.mrb[32].mxu0 %v2800_v16  ;;  %1760 = vmatprep.mubr.bf16.mxu1 %v2801_v22 }
  0xc4   :  { %1873 = vmatprep.mubr.bf16.mxu0 %v2813_v39 }
  0xca   :  { %1761 = vmatmul.mubr.bf16.gmra.mrb[36].mxu1 %v2803_v24 }
  0xcb   :  { %1874 = vmatmul.mubr.bf16.gmra.mrb[36].mxu0 %v2804_v26  ;;  %1770 = vmatprep.mubr.bf16.mxu1 %v2805_v28 }
  0xcc   :  { %1883 = vmatprep.mubr.bf16.mxu0 %v2813_v39 }
  0xd2   :  { %1771 = vmatmul.mubr.bf16.gmra.mrb[40].mxu1 %v2807_v29 }
  0xd3   :  { %1884 = vmatmul.mubr.bf16.gmra.mrb[40].mxu0 %v2808_v30  ;;  %1780 = vmatprep.mubr.bf16.mxu1 %v2809_v32 }
  0xd4   :  { %1893 = vmatprep.mubr.bf16.mxu0 %v2813_v39 }
  0xda   :  { %1781 = vmatmul.mubr.bf16.gmra.mrb[44].mxu1 %v2811_v34 }
  0xdb   :  { %1894 = vmatmul.mubr.bf16.gmra.mrb[44].mxu0 %v2812_v35 }
 0x136   :  { %v1639_v36 = vpop.f32.mrb[16].mxu0 }
 0x137   :  { %v1641_v38 = vpop.f32.mrb[17].mxu0 }
 0x138   :  { %v3618_v40 = vpop.f32.mrb[18].mxu0 }
 0x139   :  { %v3620_v41 = vpop.f32.mrb[19].mxu0 }
 0x13e   :  { %v3622_v42 = vpop.f32.mrb[20].mxu0 }
 0x13f   :  { %v3624_v44 = vpop.f32.mrb[21].mxu0 }
 0x140   :  { %v3626_v46 = vpop.f32.mrb[22].mxu0 }
 0x141   :  { %v3628_v47 = vpop.f32.mrb[23].mxu0 }
 0x146   :  { %v3630_v48 = vpop.f32.mrb[24].mxu0 }
 0x147   :  { %v3632_v50 = vpop.f32.mrb[25].mxu0 }
 0x148   :  { %v3634_v52 = vpop.f32.mrb[26].mxu0 }
 0x149   :  { %v3636_v53 = vpop.f32.mrb[27].mxu0 }
 0x14e   :  { %v3638_v54 = vpop.f32.mrb[28].mxu0 }
 0x14f   :  { %v3640_v56 = vpop.f32.mrb[29].mxu0 }
 0x150   :  { %v3642_v58 = vpop.f32.mrb[30].mxu0 }
 0x151   :  { %v3644_v59 = vpop.f32.mrb[31].mxu0 }
 0x155   :  { %v1486_v60 = vpop.f32.mrb[0].mxu1 }
 0x156   :  { %v1488_v3 = vpop.f32.mrb[1].mxu1  ;;  %v2332_v37 = vadd.f32 %v1486_v60, %v3663_v33 }
 0x157   :  { %v1490_v62 = vpop.f32.mrb[2].mxu1  ;;  %v2334_v39 = vadd.f32 %v1488_v3, %v3667_v18 }
 0x158   :  { %v1492_v7 = vpop.f32.mrb[3].mxu1  ;;  %v2336_v45 = vadd.f32 %v1490_v62, %v3663_v33 }
 0x159   :  { %v2338_v57 = vadd.f32 %v1492_v7, %v3667_v18 }
 0x15d   :  { %v1496_v9 = vpop.f32.mrb[4].mxu1 }
 0x15e   :  { %v1498_v0 = vpop.f32.mrb[5].mxu1  ;;  %v2340_v15 = vadd.f32 %v1496_v9, %v3663_v33 }
 0x15f   :  { %v1500_v1 = vpop.f32.mrb[6].mxu1 }
 0x160   :  { %v1502_v13 = vpop.f32.mrb[7].mxu1  ;;  %v2344_v25 = vadd.f32 %v1500_v1, %v3663_v33 }
 0x165   :  { %v3646_v2 = vpop.f32.mrb[8].mxu1 }
 0x166   :  { %v3648_v5 = vpop.f32.mrb[9].mxu1 }
 0x167   :  { %v3650_v19 = vpop.f32.mrb[10].mxu1 }
 0x168   :  { %v3652_v8 = vpop.f32.mrb[11].mxu1 }
 0x16d   :  { %v3657_v11 = vpop.f32.mrb[12].mxu1 }
 0x16e   :  { %v3659_v14 = vpop.f32.mrb[13].mxu1 }
 0x16f   :  { %v3661_v31 = vpop.f32.mrb[14].mxu1 }
 0x170   :  { %v3665_v17 = vpop.f32.mrb[15].mxu1 }
 0x175   :  { %v1526_v20 = vpop.f32.mrb[16].mxu1 }
 0x176   :  { %v1825_v43 = vpop.f32.mrb[0].mxu0  ;;  %v2364_v49 = vadd.f32 %v1526_v20, %v3663_v33  ;;  %v1528_v51 = vpop.f32.mrb[17].mxu1 }
 0x177   :  { %v2333_v23 = vadd.f32 %v2332_v37, %v1825_v43  ;;  %v1827_v55 = vpop.f32.mrb[1].mxu0  ;;  %v2368_v61 = vadd.f32 %v1528_v51, %v3667_v18  ;;  %v1530_v4 = vpop.f32.mrb[18].mxu1 }
 0x178   :  { %v2335_v63 = vadd.f32 %v2334_v39, %v1827_v55  ;;  %v1829_v6 = vpop.f32.mrb[2].mxu0  ;;  %v2372_v16 = vadd.f32 %v1530_v4, %v3663_v33  ;;  %v1532_v24 = vpop.f32.mrb[19].mxu1  ;;  %v3676_v28 = vadd.f32 %v2364_v49, %v1639_v36  ;;  %v2342_v36 = vadd.f32 %v1498_v0, %v3667_v18 }
 0x179   :  { %v1904_v12 = vmax.f32 %v2333_v23, 0.0  ;;  %v2337_v22 = vadd.f32 %v2336_v45, %v1829_v6  ;;  %v1831_v26 = vpop.f32.mrb[3].mxu0  ;;  %v2376_v30 = vadd.f32 %v1532_v24, %v3667_v18  ;;  %v3679_v34 = vadd.f32 %v2368_v61, %v1641_v38 }
 0x17a   :  { %v1905_v29 = vmax.f32 %v2335_v63, 0.0  ;;  %v2339_v32 = vadd.f32 %v2338_v57, %v1831_v26  ;;  %v3682_v60 = vadd.f32 %v2372_v16, %v3618_v40  ;;  %v2350_v24 = vadd.f32 %v3648_v5, %v3667_v18 }
 0x17b   :  { %v1906_v35 = vmax.f32 %v2337_v22, 0.0  ;;  %v3685_v7 = vadd.f32 %v2376_v30, %v3620_v41  ;;  %v2346_v41 = vadd.f32 %v1502_v13, %v3667_v18 }
 0x17c   :  { %v2284_v3 = vpack.c.bf16 %v1905_v29, %v1904_v12  ;;  %v1907_v62 = vmax.f32 %v2339_v32, 0.0 }
 0x17d   :  { %v1536_v38 = vpop.f32.mrb[20].mxu1 }
 0x17e   :  { %2032 = vst [vmem:[%s3822_s3] sm:$0xff] %v2284_v3  ;;  %v2285_v21 = vpack.c.bf16 %v1907_v62, %v1906_v35  ;;  %v1835_v10 = vpop.f32.mrb[4].mxu0  ;;  %v2380_v40 = vadd.f32 %v1536_v38, %v3663_v33  ;;  %v1538_v37 = vpop.f32.mrb[21].mxu1 }
 0x17f   :  { %v2341_v27 = vadd.f32 %v2340_v15, %v1835_v10  ;;  %v1837_v39 = vpop.f32.mrb[5].mxu0  ;;  %v2384_v9 = vadd.f32 %v1538_v37, %v3667_v18  ;;  %v1540_v20 = vpop.f32.mrb[22].mxu1 }
 0x180   :  { %2033 = vst [vmem:[%s3822_s3 + $0x8] sm:$0xff] %v2285_v21  ;;  %v2343_v0 = vadd.f32 %v2342_v36, %v1837_v39  ;;  %v1839_v43 = vpop.f32.mrb[6].mxu0  ;;  %v2388_v49 = vadd.f32 %v1540_v20, %v3663_v33  ;;  %v1542_v23 = vpop.f32.mrb[23].mxu1  ;;  %v3701_v55 = vadd.f32 %v2380_v40, %v3622_v42  ;;  %v2348_v42 = vadd.f32 %v3646_v2, %v3663_v33 }
 0x181   :  { %v1908_v45 = vmax.f32 %v2341_v27, 0.0  ;;  %v2345_v1 = vadd.f32 %v2344_v25, %v1839_v43  ;;  %v1841_v51 = vpop.f32.mrb[7].mxu0  ;;  %v2392_v13 = vadd.f32 %v1542_v23, %v3667_v18  ;;  %v3705_v63 = vadd.f32 %v2384_v9, %v3624_v44 }
 0x182   :  { %v1909_v57 = vmax.f32 %v2343_v0, 0.0  ;;  %v2347_v61 = vadd.f32 %v2346_v41, %v1841_v51  ;;  %v3708_v6 = vadd.f32 %v2388_v49, %v3626_v46  ;;  %v2352_v46 = vadd.f32 %v3650_v19, %v3663_v33 }
 0x183   :  { %v1910_v4 = vmax.f32 %v2345_v1, 0.0  ;;  %v3711_v22 = vadd.f32 %v2392_v13, %v3628_v47  ;;  %v2354_v2 = vadd.f32 %v3652_v8, %v3667_v18  ;;  %v2358_v43 = vadd.f32 %v3659_v14, %v3667_v18 }
 0x184   :  { %v2286_v12 = vpack.c.bf16 %v1909_v57, %v1908_v45  ;;  %v1911_v16 = vmax.f32 %v2347_v61, 0.0 }
 0x185   :  { %v1546_v26 = vpop.f32.mrb[24].mxu1 }
 0x186   :  { %2034 = vst [vmem:[%s3822_s3 + $0x10] sm:$0xff] %v2286_v12  ;;  %v2287_v44 = vpack.c.bf16 %v1911_v16, %v1910_v4  ;;  %v1845_v29 = vpop.f32.mrb[8].mxu0  ;;  %v2396_v30 = vadd.f32 %v1546_v26, %v3663_v33  ;;  %v1548_v32 = vpop.f32.mrb[25].mxu1 }
 0x187   :  { %v2349_v47 = vadd.f32 %v2348_v42, %v1845_v29  ;;  %v1847_v35 = vpop.f32.mrb[9].mxu0  ;;  %v2400_v5 = vadd.f32 %v1548_v32, %v3667_v18  ;;  %v1550_v62 = vpop.f32.mrb[26].mxu1 }
 0x188   :  { %2035 = vst [vmem:[%s3822_s3 + $0x18] sm:$0xff] %v2287_v44  ;;  %v2351_v3 = vadd.f32 %v2350_v24, %v1847_v35  ;;  %v1849_v15 = vpop.f32.mrb[10].mxu0  ;;  %v2404_v19 = vadd.f32 %v1550_v62, %v3663_v33  ;;  %v1552_v38 = vpop.f32.mrb[27].mxu1  ;;  %v3731_v25 = vadd.f32 %v2396_v30, %v3630_v48  ;;  %v2356_v48 = vadd.f32 %v3657_v11, %v3663_v33 }
 0x189   :  { %v1912_v36 = vmax.f32 %v2349_v47, 0.0  ;;  %v2353_v21 = vadd.f32 %v2352_v46, %v1849_v15  ;;  %v1851_v10 = vpop.f32.mrb[11].mxu0  ;;  %v2408_v8 = vadd.f32 %v1552_v38, %v3667_v18  ;;  %v3735_v37 = vadd.f32 %v2400_v5, %v3632_v50 }
 0x18a   :  { %v1913_v40 = vmax.f32 %v2351_v3, 0.0  ;;  %v2355_v27 = vadd.f32 %v2354_v2, %v1851_v10  ;;  %v3738_v41 = vadd.f32 %v2404_v19, %v3634_v52  ;;  %v2360_v52 = vadd.f32 %v3661_v31, %v3663_v33 }
 0x18b   :  { %v1914_v39 = vmax.f32 %v2353_v21, 0.0  ;;  %v3741_v20 = vadd.f32 %v2408_v8, %v3636_v53  ;;  %v2362_v11 = vadd.f32 %v3665_v17, %v3667_v18 }
 0x18c   :  { %v2288_v9 = vpack.c.bf16 %v1913_v40, %v1912_v36  ;;  %v1915_v0 = vmax.f32 %v2355_v27, 0.0 }
 0x18d   :  { %v1556_v45 = vpop.f32.mrb[28].mxu1 }
 0x18e   :  { %2036 = vst [vmem:[%s3822_s3 + $0x20] sm:$0xff] %v2288_v9  ;;  %v2289_v50 = vpack.c.bf16 %v1915_v0, %v1914_v39  ;;  %v1855_v49 = vpop.f32.mrb[12].mxu0  ;;  %v2412_v1 = vadd.f32 %v1556_v45, %v3663_v33  ;;  %v1558_v23 = vpop.f32.mrb[29].mxu1 }
 0x18f   :  { %v2357_v53 = vadd.f32 %v2356_v48, %v1855_v49  ;;  %v1857_v51 = vpop.f32.mrb[13].mxu0  ;;  %v2416_v14 = vadd.f32 %v1558_v23, %v3667_v18  ;;  %v1560_v13 = vpop.f32.mrb[30].mxu1 }
 0x190   :  { %2037 = vst [vmem:[%s3822_s3 + $0x28] sm:$0xff] %v2289_v50  ;;  %v2359_v57 = vadd.f32 %v2358_v43, %v1857_v51  ;;  %v1859_v61 = vpop.f32.mrb[14].mxu0  ;;  %v2420_v31 = vadd.f32 %v1560_v13, %v3663_v33  ;;  %v1562_v16 = vpop.f32.mrb[31].mxu1  ;;  %v3761_v24 = vadd.f32 %v2412_v1, %v3638_v54 }
 0x191   :  { %v1916_v4 = vmax.f32 %v2357_v53, 0.0  ;;  %v2361_v12 = vadd.f32 %v2360_v52, %v1859_v61  ;;  %v1861_v42 = vpop.f32.mrb[15].mxu0  ;;  %v2424_v17 = vadd.f32 %v1562_v16, %v3667_v18  ;;  %v3765_v29 = vadd.f32 %v2416_v14, %v3640_v56 }
 0x192   :  { %v1917_v44 = vmax.f32 %v2359_v57, 0.0  ;;  %v2363_v26 = vadd.f32 %v2362_v11, %v1861_v42  ;;  %v3768_v30 = vadd.f32 %v2420_v31, %v3642_v58 }
 0x193   :  { %v1918_v46 = vmax.f32 %v2361_v12, 0.0  ;;  %v3771_v33 = vadd.f32 %v2424_v17, %v3644_v59 }
 0x194   :  { %v2290_v47 = vpack.c.bf16 %v1917_v44, %v1916_v4  ;;  %v1919_v32 = vmax.f32 %v2363_v26, 0.0 }
 0x195   :  { %v1752_v35 = vpop.f32.mrb[32].mxu1 }
 0x196   :  { %2038 = vst [vmem:[%s3822_s3 + $0x30] sm:$0xff] %v2290_v47  ;;  %v2291_v54 = vpack.c.bf16 %v1919_v32, %v1918_v46  ;;  %v1865_v18 = vpop.f32.mrb[32].mxu0  ;;  %v2366_v2 = vadd.f32 %v3676_v28, %v1752_v35  ;;  %v1754_v56 = vpop.f32.mrb[33].mxu1 }
 0x197   :  { %v1867_v5 = vpop.f32.mrb[33].mxu0  ;;  %v2370_v58 = vadd.f32 %v3679_v34, %v1754_v56  ;;  %v1756_v3 = vpop.f32.mrb[34].mxu1 }
 0x198   :  { %2039 = vst [vmem:[%s3822_s3 + $0x38] sm:$0xff] %v2291_v54  ;;  %v1869_v59 = vpop.f32.mrb[34].mxu0  ;;  %v2367_v62 = vadd.f32 %v2366_v2, %v1865_v18  ;;  %v2374_v15 = vadd.f32 %v3682_v60, %v1756_v3  ;;  %v1758_v36 = vpop.f32.mrb[35].mxu1 }
 0x199   :  { %v1871_v19 = vpop.f32.mrb[35].mxu0  ;;  %v2371_v21 = vadd.f32 %v2370_v58, %v1867_v5  ;;  %v2378_v38 = vadd.f32 %v3685_v7, %v1758_v36 }
 0x19a   :  { %v1920_v10 = vmax.f32 %v2367_v62, 0.0  ;;  %v2375_v28 = vadd.f32 %v2374_v15, %v1869_v59 }
 0x19b   :  { %v1921_v40 = vmax.f32 %v2371_v21, 0.0  ;;  %v2379_v8 = vadd.f32 %v2378_v38, %v1871_v19 }
 0x19c   :  { %v1922_v27 = vmax.f32 %v2375_v28, 0.0 }
 0x19d   :  { %v2292_v39 = vpack.c.bf16 %v1921_v40, %v1920_v10  ;;  %v1923_v9 = vmax.f32 %v2379_v8, 0.0  ;;  %v1762_v0 = vpop.f32.mrb[36].mxu1 }
 0x19e   :  { %v1875_v48 = vpop.f32.mrb[36].mxu0  ;;  %v2382_v34 = vadd.f32 %v3701_v55, %v1762_v0  ;;  %v1764_v43 = vpop.f32.mrb[37].mxu1 }
 0x19f   :  { %v1877_v50 = vpop.f32.mrb[37].mxu0  ;;  %2040 = vst [vmem:[%s3822_s3 + $0x40] sm:$0xff] %v2292_v39  ;;  %v2293_v60 = vpack.c.bf16 %v1923_v9, %v1922_v27  ;;  %v2386_v7 = vadd.f32 %v3705_v63, %v1764_v43  ;;  %v1766_v45 = vpop.f32.mrb[38].mxu1 }
 0x1a0   :  { %v1879_v49 = vpop.f32.mrb[38].mxu0  ;;  %v2383_v52 = vadd.f32 %v2382_v34, %v1875_v48  ;;  %v2390_v1 = vadd.f32 %v3708_v6, %v1766_v45  ;;  %v1768_v53 = vpop.f32.mrb[39].mxu1 }
 0x1a1   :  { %v1881_v23 = vpop.f32.mrb[39].mxu0  ;;  %2041 = vst [vmem:[%s3822_s3 + $0x48] sm:$0xff] %v2293_v60  ;;  %v2387_v55 = vadd.f32 %v2386_v7, %v1877_v50  ;;  %v2394_v51 = vadd.f32 %v3711_v22, %v1768_v53 }
 0x1a2   :  { %v1924_v11 = vmax.f32 %v2383_v52, 0.0  ;;  %v2391_v14 = vadd.f32 %v2390_v1, %v1879_v49 }
 0x1a3   :  { %v1925_v57 = vmax.f32 %v2387_v55, 0.0  ;;  %v2395_v13 = vadd.f32 %v2394_v51, %v1881_v23 }
 0x1a4   :  { %v1926_v61 = vmax.f32 %v2391_v14, 0.0 }
 0x1a5   :  { %v2294_v63 = vpack.c.bf16 %v1925_v57, %v1924_v11  ;;  %v1927_v4 = vmax.f32 %v2395_v13, 0.0  ;;  %v1772_v31 = vpop.f32.mrb[40].mxu1 }
 0x1a6   :  { %v1885_v12 = vpop.f32.mrb[40].mxu0  ;;  %v2398_v6 = vadd.f32 %v3731_v25, %v1772_v31  ;;  %v1774_v16 = vpop.f32.mrb[41].mxu1 }
 0x1a7   :  { %v1887_v42 = vpop.f32.mrb[41].mxu0  ;;  %2042 = vst [vmem:[%s3822_s3 + $0x50] sm:$0xff] %v2294_v63  ;;  %v2295_v44 = vpack.c.bf16 %v1927_v4, %v1926_v61  ;;  %v2402_v22 = vadd.f32 %v3735_v37, %v1774_v16  ;;  %v1776_v17 = vpop.f32.mrb[42].mxu1 }
 0x1a8   :  { %v1889_v26 = vpop.f32.mrb[42].mxu0  ;;  %v2399_v46 = vadd.f32 %v2398_v6, %v1885_v12  ;;  %v2406_v47 = vadd.f32 %v3738_v41, %v1776_v17  ;;  %v1778_v32 = vpop.f32.mrb[43].mxu1 }
 0x1a9   :  { %v1891_v54 = vpop.f32.mrb[43].mxu0  ;;  %2043 = vst [vmem:[%s3822_s3 + $0x58] sm:$0xff] %v2295_v44  ;;  %v2403_v25 = vadd.f32 %v2402_v22, %v1887_v42  ;;  %v2410_v35 = vadd.f32 %v3741_v20, %v1778_v32 }
 0x1aa   :  { %v1928_v18 = vmax.f32 %v2399_v46, 0.0  ;;  %v2407_v2 = vadd.f32 %v2406_v47, %v1889_v26 }
 0x1ab   :  { %v1929_v56 = vmax.f32 %v2403_v25, 0.0  ;;  %v2411_v5 = vadd.f32 %v2410_v35, %v1891_v54 }
 0x1ac   :  { %v1930_v58 = vmax.f32 %v2407_v2, 0.0 }
 0x1ad   :  { %v2296_v37 = vpack.c.bf16 %v1929_v56, %v1928_v18  ;;  %v1931_v3 = vmax.f32 %v2411_v5, 0.0  ;;  %v1782_v59 = vpop.f32.mrb[44].mxu1 }
 0x1ae   :  { %v1895_v62 = vpop.f32.mrb[44].mxu0  ;;  %v2414_v41 = vadd.f32 %v3761_v24, %v1782_v59  ;;  %v1784_v15 = vpop.f32.mrb[45].mxu1 }
 0x1af   :  { %v1897_v36 = vpop.f32.mrb[45].mxu0  ;;  %2044 = vst [vmem:[%s3822_s3 + $0x60] sm:$0xff] %v2296_v37  ;;  %v2297_v19 = vpack.c.bf16 %v1931_v3, %v1930_v58  ;;  %v2418_v20 = vadd.f32 %v3765_v29, %v1784_v15  ;;  %v1786_v21 = vpop.f32.mrb[46].mxu1 }
 0x1b0   :  { %v1899_v38 = vpop.f32.mrb[46].mxu0  ;;  %v2415_v10 = vadd.f32 %v2414_v41, %v1895_v62  ;;  %v2422_v28 = vadd.f32 %v3768_v30, %v1786_v21  ;;  %v1788_v40 = vpop.f32.mrb[47].mxu1 }
 0x1b1   :  { %v1901_v8 = vpop.f32.mrb[47].mxu0  ;;  %2045 = vst [vmem:[%s3822_s3 + $0x68] sm:$0xff] %v2297_v19  ;;  %v2419_v24 = vadd.f32 %v2418_v20, %v1897_v36  ;;  %v2426_v27 = vadd.f32 %v3771_v33, %v1788_v40 }
 0x1b2   :  { %v1932_v39 = vmax.f32 %v2415_v10, 0.0  ;;  %v2423_v9 = vadd.f32 %v2422_v28, %v1899_v38 }
 0x1b3   :  { %v1933_v0 = vmax.f32 %v2419_v24, 0.0  ;;  %v2427_v48 = vadd.f32 %v2426_v27, %v1901_v8 }
 0x1b4   :  { %v1934_v34 = vmax.f32 %v2423_v9, 0.0 }
 0x1b5   :  { %v2298_v29 = vpack.c.bf16 %v1933_v0, %v1932_v39  ;;  %v1935_v43 = vmax.f32 %v2427_v48, 0.0 }
 0x1b7   :  { %2046 = vst [vmem:[%s3822_s3 + $0x70] sm:$0xff] %v2298_v29  ;;  %v2299_v30 = vpack.c.bf16 %v1935_v43, %v1934_v34 }
 0x1b9   :  { %2047 = vst [vmem:[%s3822_s3 + $0x78] sm:$0xff] %v2299_v30 }

// kernel: semantic_encoder_forward.5
= control target key start
LH: loop header
LB: loop body
LE: loop exit
PB: predicated region body
PF: predicated region fallthrough
CT: control target
= control target key end

     0   :  { %10 = vsyncpa [#allocation4], 0  ;;  %s4571_s18 = smov 0   ;;  %s5166_s0 = inlined_call_operand.vmem [shape: bf16[512,640], index: 0, kind: input, shape index: {}]   ;;  %s5167_s1 = inlined_call_operand.vmem [shape: bf16[640,128], index: 1, kind: input, shape index: {}]   ;;  %s5168_s2 = inlined_call_operand.vmem [shape: f32[1,128], index: 2, kind: input, shape index: {}]   ;;  %s5169_s3 = inlined_call_operand.vmem [shape: bf16[64,128,256], index: 3, kind: input, shape index: {}]   ;;  %s5170_s4 = inlined_call_operand.vmem [shape: f32[1,256], index: 4, kind: input, shape index: {}]   ;;  %s5171_s5 = inlined_call_operand.hbm [shape: f32[2,256], index: 5, kind: output, shape index: {}]  }
   0x1 LB: > { %s4577_s19 = sadd.s32 4294967295, %s4536_s18   ;;  %p3475_p0 = scmp.ge.s32.totalorder %s4536_s18, 1  ;;  %s4536_s18 = sphi %s4571_s18, %s16_s18  }
   0x2   : > { %p197_p1 = scmp.lt.s32.totalorder %s4536_s18, 5 }
   0x4   : > { %p198_p2 = pnand %p3475_p0, %p197_p1 }
   0x5   : > { %s3476_s20 = sshll.u32 (!%p198_p2), %s4577_s19, 4  ;;  %p3481_p4 = scmp.ne.s32.totalorder (!%p198_p2), %s4577_s19, 0 }
   0x6   : > { %201 = sbr.rel (%p198_p2) target bundleno = 817 (0x331), region = 40  ;;  %p228_p3 = scmp.lt.s32.totalorder (!%p198_p2), %s3476_s20, 63 }
   0xd   : > { %s5173_s20 = smov (!%p228_p3, %s3476_s20), 63  ;;  %245 = sbr.rel (%p3481_p4) target bundleno = 20 (0x14), region = 44 }
   0xe   : > { %s4002_s21 = smul.u32 20, %s5173_s20  ;;  %s3825_s22 = sshll.u32 %s5173_s20, 7  ;;  %v4538_v0 = vmov (!%p3481_p4), 0.0  }
   0xf   : > { %s4585_s25 = scalar_lea.vmem %s5169_s3, %s3825_s22  ;;  %246 = vst [vmem:[#allocation2] sm:$0xff] (!%p3481_p4), %v4538_v0  ;;  %247 = vst [vmem:[#allocation2 + $0x8] sm:$0xff] (!%p3481_p4), %v4538_v0 }
  0x10   : > { %s4590_s28 = scalar_lea.vmem %s5166_s0, %s4002_s21 }
  0x14 PF: > { %v4020_v1 = vld [vmem:[%s5167_s1 + $0x40] sm:$0xff]   ;;  %v4024_v5 = vld [vmem:[%s5167_s1 + $0x48] sm:$0xff]   ;;  %v4028_v9 = vld [vmem:[%s5167_s1 + $0x50] sm:$0xff]   ;;  %p3819_p5 = scmp.ne.s32.totalorder %s4577_s19, 3 }
  0x15   : > { %v4021_v2 = vld [vmem:[%s5167_s1] sm:$0xff]   ;;  %3826 = vmatprep.subr.bf16.mxu0 %v4020_v1  ;;  %v4025_v6 = vld [vmem:[%s5167_s1 + $0x8] sm:$0xff]   ;;  %v4029_v10 = vld [vmem:[%s5167_s1 + $0x10] sm:$0xff]  }
  0x16   : > { %v4022_v3 = vld [vmem:[%s5167_s1 + $0xc0] sm:$0xff]   ;;  %3827 = vmatpush3.bf16.msra.mxu0 %v4021_v2  ;;  %v4026_v7 = vld [vmem:[%s5167_s1 + $0xc8] sm:$0xff]   ;;  %v4030_v11 = vld [vmem:[%s5167_s1 + $0xd0] sm:$0xff]  }
  0x17   : > { %v4023_v4 = vld [vmem:[%s5167_s1 + $0x80] sm:$0xff]   ;;  %3890 = vmatprep.subr.bf16.mxu1 %v4022_v3  ;;  %3828 = vmatprep.subr.bf16.mxu0 %v4024_v5  ;;  %v4027_v8 = vld [vmem:[%s5167_s1 + $0x88] sm:$0xff]   ;;  %v4031_v12 = vld [vmem:[%s5167_s1 + $0x90] sm:$0xff]  }
  0x18   : > { %3891 = vmatpush3.bf16.msra.mxu1 %v4023_v4  ;;  %v4032_v13 = vld [vmem:[%s5167_s1 + $0x58] sm:$0xff]   ;;  %v4036_v17 = vld [vmem:[%s5167_s1 + $0x60] sm:$0xff]   ;;  %v4040_v21 = vld [vmem:[%s5167_s1 + $0x68] sm:$0xff]  }
  0x19   : > { %3892 = vmatprep.subr.bf16.mxu1 %v4026_v7  ;;  %v4033_v14 = vld [vmem:[%s5167_s1 + $0x18] sm:$0xff]   ;;  %v4037_v18 = vld [vmem:[%s5167_s1 + $0x20] sm:$0xff]   ;;  %v4041_v22 = vld [vmem:[%s5167_s1 + $0x28] sm:$0xff]  }
  0x1a   : > { %3829 = vmatpush3.bf16.msra.mxu0 %v4025_v6  ;;  %v4034_v15 = vld [vmem:[%s5167_s1 + $0xd8] sm:$0xff]   ;;  %v4038_v19 = vld [vmem:[%s5167_s1 + $0xe0] sm:$0xff]   ;;  %v4042_v23 = vld [vmem:[%s5167_s1 + $0xe8] sm:$0xff]  }
  0x1b   : > { %3830 = vmatprep.subr.bf16.mxu0 %v4028_v9  ;;  %v4035_v16 = vld [vmem:[%s5167_s1 + $0x98] sm:$0xff]   ;;  %v4039_v20 = vld [vmem:[%s5167_s1 + $0xa0] sm:$0xff]   ;;  %v4043_v24 = vld [vmem:[%s5167_s1 + $0xa8] sm:$0xff]  }
  0x1c   : > { %3893 = vmatpush3.bf16.msra.mxu1 %v4027_v8  ;;  %v4044_v25 = vld [vmem:[%s5167_s1 + $0x70] sm:$0xff]   ;;  %v4048_v29 = vld [vmem:[%s5167_s1 + $0x78] sm:$0xff]   ;;  %v4055_v35 = vld [vmem:[%s5167_s1 + $0x100] sm:$0xff]  }
  0x1d   : > { %3894 = vmatprep.subr.bf16.mxu1 %v4030_v11  ;;  %v4045_v26 = vld [vmem:[%s5167_s1 + $0x30] sm:$0xff]   ;;  %v4049_v30 = vld [vmem:[%s5167_s1 + $0x38] sm:$0xff]   ;;  %v4058_v37 = vld [vmem:[%s4590_s28 + $0xc] ss:$20 sps:$4 sm:$0xff]  }
  0x1e   : > { %3831 = vmatpush3.bf16.msra.mxu0 %v4029_v10  ;;  %v4046_v27 = vld [vmem:[%s5167_s1 + $0xf0] sm:$0xff]   ;;  %v4050_v31 = vld [vmem:[%s5167_s1 + $0xf8] sm:$0xff]   ;;  %v4059_v38 = vld [vmem:[%s4590_s28 + $0x2c] ss:$20 sps:$4 sm:$0xff]   ;;  %960 = vmatprep.mubr.bf16.mxu1 %v4058_v37 }
  0x1f   : > { %3832 = vmatprep.subr.bf16.mxu0 %v4032_v13  ;;  %v4047_v28 = vld [vmem:[%s5167_s1 + $0xb0] sm:$0xff]   ;;  %v4053_v33 = vld [vmem:[%s4590_s28 + $0x4] ss:$20 sps:$4 sm:$0xff]   ;;  %v4056_v36 = vld [vmem:[%s4590_s28 + $0x8] ss:$20 sps:$4 sm:$0xff]  }
  0x20   : > { %3895 = vmatpush3.bf16.msra.mxu1 %v4031_v12  ;;  %v4051_v32 = vld [vmem:[%s4590_s28] ss:$20 sps:$4 sm:$0xff]   ;;  %v4054_v34 = vld [vmem:[%s5167_s1 + $0xb8] sm:$0xff]   ;;  %863 = vmatprep.mubr.bf16.mxu0 %v4053_v33  ;;  %v4062_v39 = vld [vmem:[%s5167_s1 + $0x108] sm:$0xff]  }
  0x21   : > { %3896 = vmatprep.subr.bf16.mxu1 %v4034_v15  ;;  %v4063_v40 = vld [vmem:[%s4590_s28 + $0x34] ss:$20 sps:$4 sm:$0xff]   ;;  %v4065_v44 = vld [vmem:[%s4590_s28 + $0x30] ss:$20 sps:$4 sm:$0xff]   ;;  %v4076_v46 = vld [vmem:[%s5167_s1 + $0x118] sm:$0xff]  }
  0x22   : > { %3833 = vmatpush3.bf16.msra.mxu0 %v4033_v14  ;;  %v4061_v41 = vld [vmem:[%s4590_s28 + $0x28] ss:$20 sps:$4 sm:$0xff]   ;;  %v4069_v43 = vld [vmem:[%s5167_s1 + $0x110] sm:$0xff]   ;;  %v4083_v49 = vld [vmem:[%s5167_s1 + $0x120] sm:$0xff]  }
  0x23   : > { %3834 = vmatprep.subr.bf16.mxu0 %v4036_v17  ;;  %v4066_v42 = vld [vmem:[%s4590_s28 + $0x54] ss:$20 sps:$4 sm:$0xff]   ;;  %v4070_v45 = vld [vmem:[%s4590_s28 + $0x5c] ss:$20 sps:$4 sm:$0xff]   ;;  %v4072_v50 = vld [vmem:[%s4590_s28 + $0x58] ss:$20 sps:$4 sm:$0xff]  }
  0x24   : > { %3897 = vmatpush3.bf16.msra.mxu1 %v4035_v16  ;;  %v4068_v47 = vld [vmem:[%s4590_s28 + $0x50] ss:$20 sps:$4 sm:$0xff]   ;;  %v4090_v52 = vld [vmem:[%s5167_s1 + $0x128] sm:$0xff]   ;;  %v4079_v56 = vld [vmem:[%s4590_s28 + $0x80] ss:$20 sps:$4 sm:$0xff]  }
  0x25   : > { %3898 = vmatprep.subr.bf16.mxu1 %v4038_v19  ;;  %v4073_v48 = vld [vmem:[%s4590_s28 + $0x7c] ss:$20 sps:$4 sm:$0xff]   ;;  %v4077_v51 = vld [vmem:[%s4590_s28 + $0x84] ss:$20 sps:$4 sm:$0xff]   ;;  %v4084_v57 = vld [vmem:[%s4590_s28 + $0xac] ss:$20 sps:$4 sm:$0xff]  }
  0x26   : > { %3835 = vmatpush3.bf16.msra.mxu0 %v4037_v18  ;;  %v4075_v53 = vld [vmem:[%s4590_s28 + $0x78] ss:$20 sps:$4 sm:$0xff]   ;;  %v4097_v55 = vld [vmem:[%s5167_s1 + $0x130] sm:$0xff]   ;;  %v4086_v61 = vld [vmem:[%s4590_s28 + $0xa8] ss:$20 sps:$4 sm:$0xff]  }
  0x27   : > { %3836 = vmatprep.subr.bf16.mxu0 %v4040_v21  ;;  %v4080_v54 = vld [vmem:[%s4590_s28 + $0xa4] ss:$20 sps:$4 sm:$0xff]   ;;  %v4082_v59 = vld [vmem:[%s4590_s28 + $0xa0] ss:$20 sps:$4 sm:$0xff]   ;;  %v4089_v63 = vld [vmem:[%s4590_s28 + $0xc8] ss:$20 sps:$4 sm:$0xff]  }
  0x28   : > { %3899 = vmatpush3.bf16.msra.mxu1 %v4039_v20  ;;  %v4104_v58 = vld [vmem:[%s5167_s1 + $0x138] sm:$0xff]   ;;  %v4087_v60 = vld [vmem:[%s4590_s28 + $0xcc] ss:$20 sps:$4 sm:$0xff]   ;;  %v4091_v62 = vld [vmem:[%s4590_s28 + $0xd4] ss:$20 sps:$4 sm:$0xff]  }
  0x29   : > { %3900 = vmatprep.subr.bf16.mxu1 %v4042_v23  ;;  %v4094_v0 = vld [vmem:[%s4590_s28 + $0xf4] ss:$20 sps:$4 sm:$0xff]   ;;  %v4093_v1 = vld [vmem:[%s4590_s28 + $0xd0] ss:$20 sps:$4 sm:$0xff]   ;;  %v4100_v5 = vld [vmem:[%s4590_s28 + $0xf8] ss:$20 sps:$4 sm:$0xff]  }
  0x2a   : > { %3837 = vmatpush3.bf16.msra.mxu0 %v4041_v22  ;;  %v4098_v2 = vld [vmem:[%s4590_s28 + $0xfc] ss:$20 sps:$4 sm:$0xff]   ;;  %v4105_v6 = vld [vmem:[%s4590_s28 + $0x124] ss:$20 sps:$4 sm:$0xff]   ;;  %v4107_v9 = vld [vmem:[%s4590_s28 + $0x120] ss:$20 sps:$4 sm:$0xff]  }
  0x2b   : > { %3838 = vmatprep.subr.bf16.mxu0 %v4044_v25  ;;  %v4096_v3 = vld [vmem:[%s4590_s28 + $0xf0] ss:$20 sps:$4 sm:$0xff]   ;;  %v4103_v7 = vld [vmem:[%s4590_s28 + $0x118] ss:$20 sps:$4 sm:$0xff]   ;;  %v4110_v11 = vld [vmem:[%s4590_s28 + $0x60] ss:$20 sps:$4 sm:$0xff]  }
  0x2c   : > { %3901 = vmatpush3.bf16.msra.mxu1 %v4043_v24  ;;  %v4101_v4 = vld [vmem:[%s4590_s28 + $0x11c] ss:$20 sps:$4 sm:$0xff]   ;;  %v4109_v10 = vld [vmem:[%s4590_s28 + $0x38] ss:$20 sps:$4 sm:$0xff]   ;;  %v4114_v15 = vld [vmem:[%s4590_s28 + $0x100] ss:$20 sps:$4 sm:$0xff]  }
  0x2d   : > { %3902 = vmatprep.subr.bf16.mxu1 %v4046_v27  ;;  %v4108_v8 = vld [vmem:[%s4590_s28 + $0x10] ss:$20 sps:$4 sm:$0xff]   ;;  %v4111_v12 = vld [vmem:[%s4590_s28 + $0x88] ss:$20 sps:$4 sm:$0xff]   ;;  %v4113_v14 = vld [vmem:[%s4590_s28 + $0xd8] ss:$20 sps:$4 sm:$0xff]  }
  0x2e   : > { %3839 = vmatpush3.bf16.msra.mxu0 %v4045_v26  ;;  %v4112_v13 = vld [vmem:[%s4590_s28 + $0xb0] ss:$20 sps:$4 sm:$0xff]   ;;  %v4115_v16 = vld [vmem:[%s4590_s28 + $0x128] ss:$20 sps:$4 sm:$0xff]  }
  0x2f   : > { %3840 = vmatprep.subr.bf16.mxu0 %v4048_v29  ;;  %v4116_v17 = vld [vmem:[%s4585_s25] ss:$8 sps:$4 sm:$0xff]   ;;  %v4118_v18 = vld [vmem:[%s4585_s25 + $0x4] ss:$8 sps:$4 sm:$0xff]   ;;  %v4119_v19 = vld [vmem:[%s4585_s25 + $0x10] ss:$8 sps:$4 sm:$0xff]  }
  0x30   : > { %3903 = vmatpush3.bf16.msra.mxu1 %v4047_v28  ;;  %v4121_v20 = vld [vmem:[%s4585_s25 + $0x14] ss:$8 sps:$4 sm:$0xff]   ;;  %v4122_v21 = vld [vmem:[%s4585_s25 + $0x20] ss:$8 sps:$4 sm:$0xff]   ;;  %v4124_v22 = vld [vmem:[%s4585_s25 + $0x24] ss:$8 sps:$4 sm:$0xff]  }
  0x31   : > { %3904 = vmatprep.subr.bf16.mxu1 %v4050_v31  ;;  %v4125_v23 = vld [vmem:[%s4585_s25 + $0x30] ss:$8 sps:$4 sm:$0xff]   ;;  %v4127_v24 = vld [vmem:[%s4585_s25 + $0x34] ss:$8 sps:$4 sm:$0xff]   ;;  %v4128_v25 = vld [vmem:[%s4585_s25 + $0x40] ss:$8 sps:$4 sm:$0xff]  }
  0x32   : > { %3841 = vmatpush3.bf16.msra.mxu0 %v4049_v30  ;;  %v4130_v26 = vld [vmem:[%s4585_s25 + $0x44] ss:$8 sps:$4 sm:$0xff]   ;;  %v4131_v28 = vld [vmem:[%s4585_s25 + $0x80] ss:$8 sps:$4 sm:$0xff]   ;;  %v4136_v29 = vld [vmem:[%s4585_s25 + $0x94] ss:$8 sps:$4 sm:$0xff]  }
  0x33   : > { %3970 = vmatprep.subr.bf16.mxu0 %v4055_v35  ;;  %v4133_v27 = vld [vmem:[%s4585_s25 + $0x84] ss:$8 sps:$4 sm:$0xff]   ;;  %v4134_v30 = vld [vmem:[%s4585_s25 + $0x90] ss:$8 sps:$4 sm:$0xff]   ;;  %v4146_v37 = vld [vmem:[%s4585_s25 + $0x60] ss:$8 sps:$4 sm:$0xff]  }
  0x34   : > { %3905 = vmatpush3.bf16.msra.mxu1 %v4054_v34  ;;  %v4137_v31 = vld [vmem:[%s4585_s25 + $0x50] ss:$8 sps:$4 sm:$0xff]   ;;  %v4142_v33 = vld [vmem:[%s4585_s25 + $0xa4] ss:$8 sps:$4 sm:$0xff]   ;;  %v4140_v34 = vld [vmem:[%s4585_s25 + $0xa0] ss:$8 sps:$4 sm:$0xff]  }
  0x35   : > { %864 = vmatmul.mubr.bf16.vlgmr.msra.gmra.mrb[0].mxu0 %v4051_v32  ;;  %1490 = vmatprep.subr.bf16.mxu1 %v4118_v18  ;;  %v4139_v32 = vld [vmem:[%s4585_s25 + $0x54] ss:$8 sps:$4 sm:$0xff]  }
  0x36   : > { %3971 = vmatpush3.bf16.msra.mxu0 %v4055_v35  ;;  %871 = vmatprep.mubr.bf16.mxu0 %v4059_v38  ;;  %v4145_v35 = vld [vmem:[%s4585_s25 + $0xb4] ss:$8 sps:$4 sm:$0xff]   ;;  %v4148_v38 = vld [vmem:[%s4585_s25 + $0x64] ss:$8 sps:$4 sm:$0xff]  }
  0x37   : > { %961 = vmatmul.mubr.bf16.vlgmr.msra.gmra.mrb[0].mxu1 %v4056_v36  ;;  %3972 = vmatprep.subr.bf16.mxu0 %v4062_v39  ;;  %v4143_v36 = vld [vmem:[%s4585_s25 + $0xb0] ss:$8 sps:$4 sm:$0xff]  }
  0x38   : > { %968 = vmatprep.mubr.bf16.mxu1 %v4063_v40  ;;  %1491 = vmatpush1.bf16.msra.mxu1 %v4116_v17  ;;  %v4149_v40 = vld [vmem:[%s4585_s25 + $0xc0] ss:$8 sps:$4 sm:$0xff]  }
  0x39   : > { %1492 = vmatprep.subr.bf16.mxu1 %v4121_v20 }
  0x3a   : > { %3973 = vmatpush3.bf16.msra.mxu0 %v4062_v39  ;;  %v4151_v39 = vld [vmem:[%s4585_s25 + $0xc4] ss:$8 sps:$4 sm:$0xff]  }
  0x3b   : > { %3974 = vmatprep.subr.bf16.mxu0 %v4069_v43 }
  0x3c   : > { %1493 = vmatpush1.bf16.msra.mxu1 %v4119_v19 }
  0x3d   : > { %872 = vmatmul.mubr.bf16.gmra.mrb[4].mxu0 %v4061_v41  ;;  %1494 = vmatprep.subr.bf16.mxu1 %v4124_v22  ;;  %v4154_v41 = vld [vmem:[%s4585_s25 + $0xd4] ss:$8 sps:$4 sm:$0xff]  }
  0x3e   : > { %879 = vmatprep.mubr.bf16.mxu0 %v4066_v42  ;;  %3975 = vmatpush3.bf16.msra.mxu0 %v4069_v43  ;;  %v4152_v42 = vld [vmem:[%s4585_s25 + $0xd0] ss:$8 sps:$4 sm:$0xff]   ;;  %v4160_v43 = vld [vmem:[%s4585_s25 + $0xe4] ss:$8 sps:$4 sm:$0xff]  }
  0x3f   : > { %969 = vmatmul.mubr.bf16.gmra.mrb[4].mxu1 %v4065_v44  ;;  %3976 = vmatprep.subr.bf16.mxu0 %v4076_v46  ;;  %v4158_v44 = vld [vmem:[%s4585_s25 + $0xe0] ss:$8 sps:$4 sm:$0xff]  }
  0x40   : > { %976 = vmatprep.mubr.bf16.mxu1 %v4070_v45  ;;  %1495 = vmatpush1.bf16.msra.mxu1 %v4122_v21  ;;  %v4157_v45 = vld [vmem:[%s4585_s25 + $0x74] ss:$8 sps:$4 sm:$0xff]  }
  0x41   : > { %1496 = vmatprep.subr.bf16.mxu1 %v4127_v24 }
  0x42   : > { %3977 = vmatpush3.bf16.msra.mxu0 %v4076_v46  ;;  %v4155_v46 = vld [vmem:[%s4585_s25 + $0x70] ss:$8 sps:$4 sm:$0xff]  }
  0x43   : > { %3978 = vmatprep.subr.bf16.mxu0 %v4083_v49 }
  0x44   : > { %1497 = vmatpush1.bf16.msra.mxu1 %v4125_v23 }
  0x45   : > { %880 = vmatmul.mubr.bf16.gmra.mrb[8].mxu0 %v4068_v47  ;;  %1498 = vmatprep.subr.bf16.mxu1 %v4130_v26  ;;  %v4163_v47 = vld [vmem:[%s4585_s25 + $0xf4] ss:$8 sps:$4 sm:$0xff]  }
  0x46   : > { %887 = vmatprep.mubr.bf16.mxu0 %v4073_v48  ;;  %3979 = vmatpush3.bf16.msra.mxu0 %v4083_v49  ;;  %v4161_v48 = vld [vmem:[%s4585_s25 + $0xf0] ss:$8 sps:$4 sm:$0xff]   ;;  %v4166_v49 = vld [vmem:[%s4585_s25 + $0x104] ss:$8 sps:$4 sm:$0xff]  }
  0x47   : > { %977 = vmatmul.mubr.bf16.gmra.mrb[8].mxu1 %v4072_v50  ;;  %3980 = vmatprep.subr.bf16.mxu0 %v4090_v52  ;;  %v4539_v50 = vmov 0  }
  0x48   : > { %984 = vmatprep.mubr.bf16.mxu1 %v4077_v51  ;;  %1499 = vmatpush1.bf16.msra.mxu1 %v4128_v25  ;;  %v4169_v51 = vld [vmem:[%s4585_s25 + $0x184] ss:$8 sps:$4 sm:$0xff]  }
  0x49   : > { %1500 = vmatprep.subr.bf16.mxu1 %v4139_v32 }
  0x4a   : > { %3981 = vmatpush3.bf16.msra.mxu0 %v4090_v52 }
  0x4b   : > { %3982 = vmatprep.subr.bf16.mxu0 %v4097_v55 }
  0x4c   : > { %1501 = vmatpush1.bf16.msra.mxu1 %v4137_v31 }
  0x4d   : > { %888 = vmatmul.mubr.bf16.gmra.mrb[12].mxu0 %v4075_v53  ;;  %1502 = vmatprep.subr.bf16.mxu1 %v4148_v38  ;;  %v4792_v53 = vld [vmem:[%s5168_s2] ss:$0 sm:$0xff] }
  0x4e   : > { %895 = vmatprep.mubr.bf16.mxu0 %v4080_v54  ;;  %3983 = vmatpush3.bf16.msra.mxu0 %v4097_v55 }
  0x4f   : > { %985 = vmatmul.mubr.bf16.gmra.mrb[12].mxu1 %v4079_v56  ;;  %3984 = vmatprep.subr.bf16.mxu0 %v4104_v58 }
  0x50   : > { %992 = vmatprep.mubr.bf16.mxu1 %v4084_v57  ;;  %1503 = vmatpush1.bf16.msra.mxu1 %v4146_v37 }
  0x51   : > { %1504 = vmatprep.subr.bf16.mxu1 %v4157_v45 }
  0x52   : > { %3985 = vmatpush3.bf16.msra.mxu0 %v4104_v58 }
  0x53   : > { %1611 = vmatprep.subr.bf16.mxu0 %v4133_v27 }
  0x54   : > { %1505 = vmatpush1.bf16.msra.mxu1 %v4155_v46 }
  0x55   : > { %896 = vmatmul.mubr.bf16.gmra.mrb[16].mxu0 %v4082_v59  ;;  %1732 = vmatprep.subr.bf16.mxu1 %v4166_v49 }
  0x56   : > { %903 = vmatprep.mubr.bf16.mxu0 %v4087_v60 }
  0x57   : > { %993 = vmatmul.mubr.bf16.gmra.mrb[16].mxu1 %v4086_v61 }
  0x58   : > { %1000 = vmatprep.mubr.bf16.mxu1 %v4091_v62 }
  0x5d   : > { %904 = vmatmul.mubr.bf16.gmra.mrb[20].mxu0 %v4089_v63 }
  0x5e   : > { %911 = vmatprep.mubr.bf16.mxu0 %v4094_v0 }
  0x5f   : > { %1001 = vmatmul.mubr.bf16.gmra.mrb[20].mxu1 %v4093_v1 }
  0x60   : > { %1008 = vmatprep.mubr.bf16.mxu1 %v4098_v2 }
  0x65   : > { %912 = vmatmul.mubr.bf16.gmra.mrb[24].mxu0 %v4096_v3 }
  0x66   : > { %919 = vmatprep.mubr.bf16.mxu0 %v4101_v4 }
  0x67   : > { %1009 = vmatmul.mubr.bf16.gmra.mrb[24].mxu1 %v4100_v5 }
  0x68   : > { %1016 = vmatprep.mubr.bf16.mxu1 %v4105_v6 }
  0x6d   : > { %920 = vmatmul.mubr.bf16.gmra.mrb[28].mxu0 %v4103_v7 }
  0x6e   : > { %3986 = vmatprep.mubr.bf16.mxu0 %v4108_v8 }
  0x6f   : > { %1017 = vmatmul.mubr.bf16.gmra.mrb[28].mxu1 %v4107_v9 }
  0x70   : > { %1522 = vmatprep.mubr.bf16.mxu1 %v4539_v50 }
  0x75   : > { %3987 = vmatmul.mubr.bf16.vlgmr.msra.gmra.mrb[32].mxu0 %v4109_v10 }
  0x76   : > { %3990 = vmatprep.mubr.bf16.mxu0 %v4110_v11  ;;  %1612 = vmatpush1.bf16.msra.mxu0 %v4131_v28 }
  0x77   : > { %1613 = vmatprep.subr.bf16.mxu0 %v4136_v29 }
  0x7a   : > { %1614 = vmatpush1.bf16.msra.mxu0 %v4134_v30 }
  0x7b   : > { %1615 = vmatprep.subr.bf16.mxu0 %v4142_v33 }
  0x7d   : > { %3991 = vmatmul.mubr.bf16.gmra.mrb[36].mxu0 %v4111_v12 }
  0x7e   : > { %3994 = vmatprep.mubr.bf16.mxu0 %v4112_v13  ;;  %1616 = vmatpush1.bf16.msra.mxu0 %v4140_v34 }
  0x7f   : > { %1617 = vmatprep.subr.bf16.mxu0 %v4145_v35 }
  0x82   : > { %1618 = vmatpush1.bf16.msra.mxu0 %v4143_v36 }
  0x83   : > { %1619 = vmatprep.subr.bf16.mxu0 %v4151_v39 }
  0x85   : > { %3995 = vmatmul.mubr.bf16.gmra.mrb[40].mxu0 %v4113_v14 }
  0x86   : > { %3998 = vmatprep.mubr.bf16.mxu0 %v4114_v15  ;;  %1620 = vmatpush1.bf16.msra.mxu0 %v4149_v40 }
  0x87   : > { %1621 = vmatprep.subr.bf16.mxu0 %v4154_v41 }
  0x8a   : > { %1622 = vmatpush1.bf16.msra.mxu0 %v4152_v42 }
  0x8b   : > { %1623 = vmatprep.subr.bf16.mxu0 %v4160_v43 }
  0x8d   : > { %3999 = vmatmul.mubr.bf16.gmra.mrb[44].mxu0 %v4115_v16 }
  0x8e   : > { %1624 = vmatpush1.bf16.msra.mxu0 %v4158_v44  ;;  %1643 = vmatprep.mubr.bf16.mxu0 %v4539_v50 }
  0x8f   : > { %1625 = vmatprep.subr.bf16.mxu0 %v4163_v47 }
  0x92   : > { %1626 = vmatpush1.bf16.msra.mxu0 %v4161_v48 }
  0x93   : > { %1853 = vmatprep.subr.bf16.mxu0 %v4169_v51 }
 0x108   : > { %v3842_v52 = vpop.f32.mrb[0].mxu0 }
 0x109   : > { %v3843_v54 = vpop.f32.mrb[1].mxu0 }
 0x10a   : > { %v3844_v55 = vadd.f32 %v3843_v54, %v3842_v52  ;;  %v3845_v56 = vpop.f32.mrb[2].mxu0  ;;  %v3906_v57 = vpop.f32.mrb[0].mxu1 }
 0x10b   : > { %v3846_v58 = vpop.f32.mrb[3].mxu0  ;;  %v3907_v61 = vpop.f32.mrb[1].mxu1 }
 0x10c   : > { %v866_v59 = vadd.f32 %v3844_v55, %v4792_v53  ;;  %v3847_v60 = vadd.f32 %v3846_v58, %v3845_v56  ;;  %v3908_v62 = vadd.f32 %v3907_v61, %v3906_v57  ;;  %v3909_v63 = vpop.f32.mrb[2].mxu1 }
 0x10d   : > { %v3910_v1 = vpop.f32.mrb[3].mxu1 }
 0x10e   : > { %v869_v0 = vadd.f32 %v3847_v60, %v4792_v53  ;;  %v3911_v2 = vadd.f32 %v3910_v1, %v3909_v63  ;;  %v4796_v3 = vadd.f32 %v3908_v62, %v866_v59 }
 0x110   : > { %v3848_v4 = vpop.f32.mrb[4].mxu0  ;;  %v4798_v6 = vadd.f32 %v3911_v2, %v869_v0 }
 0x111   : > { %v3849_v5 = vpop.f32.mrb[5].mxu0 }
 0x112   : > { %v3850_v7 = vadd.f32 %v3849_v5, %v3848_v4  ;;  %v3851_v8 = vpop.f32.mrb[6].mxu0  ;;  %v3912_v9 = vpop.f32.mrb[4].mxu1 }
 0x113   : > { %v3852_v10 = vpop.f32.mrb[7].mxu0  ;;  %v3913_v13 = vpop.f32.mrb[5].mxu1 }
 0x114   : > { %v874_v11 = vadd.f32 %v3850_v7, %v4792_v53  ;;  %v3853_v12 = vadd.f32 %v3852_v10, %v3851_v8  ;;  %v3914_v14 = vadd.f32 %v3913_v13, %v3912_v9  ;;  %v3915_v15 = vpop.f32.mrb[6].mxu1 }
 0x115   : > { %v3916_v17 = vpop.f32.mrb[7].mxu1 }
 0x116   : > { %v877_v16 = vadd.f32 %v3853_v12, %v4792_v53  ;;  %v3917_v18 = vadd.f32 %v3916_v17, %v3915_v15  ;;  %v4802_v19 = vadd.f32 %v3914_v14, %v874_v11 }
 0x118   : > { %v3854_v20 = vpop.f32.mrb[8].mxu0  ;;  %v4804_v22 = vadd.f32 %v3917_v18, %v877_v16 }
 0x119   : > { %v3855_v21 = vpop.f32.mrb[9].mxu0 }
 0x11a   : > { %v3856_v23 = vadd.f32 %v3855_v21, %v3854_v20  ;;  %v3857_v24 = vpop.f32.mrb[10].mxu0  ;;  %v3918_v25 = vpop.f32.mrb[8].mxu1 }
 0x11b   : > { %v3858_v26 = vpop.f32.mrb[11].mxu0  ;;  %v3919_v29 = vpop.f32.mrb[9].mxu1 }
 0x11c   : > { %v882_v27 = vadd.f32 %v3856_v23, %v4792_v53  ;;  %v3859_v28 = vadd.f32 %v3858_v26, %v3857_v24  ;;  %v3920_v30 = vadd.f32 %v3919_v29, %v3918_v25  ;;  %v3921_v31 = vpop.f32.mrb[10].mxu1 }
 0x11d   : > { %v3922_v33 = vpop.f32.mrb[11].mxu1 }
 0x11e   : > { %v885_v32 = vadd.f32 %v3859_v28, %v4792_v53  ;;  %v3923_v34 = vadd.f32 %v3922_v33, %v3921_v31  ;;  %v4808_v35 = vadd.f32 %v3920_v30, %v882_v27 }
 0x120   : > { %v3860_v36 = vpop.f32.mrb[12].mxu0  ;;  %v4810_v38 = vadd.f32 %v3923_v34, %v885_v32 }
 0x121   : > { %v3861_v37 = vpop.f32.mrb[13].mxu0 }
 0x122   : > { %v3862_v39 = vadd.f32 %v3861_v37, %v3860_v36  ;;  %v3863_v40 = vpop.f32.mrb[14].mxu0  ;;  %v3924_v41 = vpop.f32.mrb[12].mxu1 }
 0x123   : > { %v3864_v42 = vpop.f32.mrb[15].mxu0  ;;  %v3925_v45 = vpop.f32.mrb[13].mxu1 }
 0x124   : > { %v890_v43 = vadd.f32 %v3862_v39, %v4792_v53  ;;  %v3865_v44 = vadd.f32 %v3864_v42, %v3863_v40  ;;  %v3926_v46 = vadd.f32 %v3925_v45, %v3924_v41  ;;  %v3927_v47 = vpop.f32.mrb[14].mxu1 }
 0x125   : > { %v3928_v49 = vpop.f32.mrb[15].mxu1 }
 0x126   : > { %v893_v48 = vadd.f32 %v3865_v44, %v4792_v53  ;;  %v3929_v51 = vadd.f32 %v3928_v49, %v3927_v47  ;;  %v4814_v52 = vadd.f32 %v3926_v46, %v890_v43 }
 0x128   : > { %v3866_v54 = vpop.f32.mrb[16].mxu0  ;;  %v4816_v56 = vadd.f32 %v3929_v51, %v893_v48 }
 0x129   : > { %v3867_v55 = vpop.f32.mrb[17].mxu0 }
 0x12a   : > { %v3868_v57 = vadd.f32 %v3867_v55, %v3866_v54  ;;  %v3869_v58 = vpop.f32.mrb[18].mxu0  ;;  %v3930_v59 = vpop.f32.mrb[16].mxu1 }
 0x12b   : > { %v3870_v60 = vpop.f32.mrb[19].mxu0  ;;  %v3931_v63 = vpop.f32.mrb[17].mxu1 }
 0x12c   : > { %v898_v61 = vadd.f32 %v3868_v57, %v4792_v53  ;;  %v3871_v62 = vadd.f32 %v3870_v60, %v3869_v58  ;;  %v3932_v0 = vadd.f32 %v3931_v63, %v3930_v59  ;;  %v3933_v1 = vpop.f32.mrb[18].mxu1 }
 0x12d   : > { %v3934_v4 = vpop.f32.mrb[19].mxu1 }
 0x12e   : > { %v901_v2 = vadd.f32 %v3871_v62, %v4792_v53  ;;  %v3935_v5 = vadd.f32 %v3934_v4, %v3933_v1  ;;  %v4820_v7 = vadd.f32 %v3932_v0, %v898_v61 }
 0x130   : > { %v3872_v8 = vpop.f32.mrb[20].mxu0  ;;  %v4822_v10 = vadd.f32 %v3935_v5, %v901_v2 }
 0x131   : > { %v3873_v9 = vpop.f32.mrb[21].mxu0 }
 0x132   : > { %v3874_v11 = vadd.f32 %v3873_v9, %v3872_v8  ;;  %v3875_v12 = vpop.f32.mrb[22].mxu0  ;;  %v3936_v13 = vpop.f32.mrb[20].mxu1 }
 0x133   : > { %v3876_v14 = vpop.f32.mrb[23].mxu0  ;;  %v3937_v17 = vpop.f32.mrb[21].mxu1 }
 0x134   : > { %v906_v15 = vadd.f32 %v3874_v11, %v4792_v53  ;;  %v3877_v16 = vadd.f32 %v3876_v14, %v3875_v12  ;;  %v3938_v18 = vadd.f32 %v3937_v17, %v3936_v13  ;;  %v3939_v20 = vpop.f32.mrb[22].mxu1  ;;  %v4164_v13 = vld [vmem:[%s4585_s25 + $0x100] ss:$8 sps:$4 sm:$0xff]  }
 0x135   : > { %v3940_v23 = vpop.f32.mrb[23].mxu1 }
 0x136   : > { %v909_v21 = vadd.f32 %v3877_v16, %v4792_v53  ;;  %v3941_v24 = vadd.f32 %v3940_v23, %v3939_v20  ;;  %v4826_v25 = vadd.f32 %v3938_v18, %v906_v15  ;;  %v4167_v16 = vld [vmem:[%s4585_s25 + $0x180] ss:$8 sps:$4 sm:$0xff]  }
 0x138   : > { %v3878_v26 = vpop.f32.mrb[24].mxu0  ;;  %v4828_v28 = vadd.f32 %v3941_v24, %v909_v21  ;;  %v4170_v21 = vld [vmem:[%s4585_s25 + $0x110] ss:$8 sps:$4 sm:$0xff]   ;;  %v4178_v24 = vld [vmem:[%s4585_s25 + $0x124] ss:$8 sps:$4 sm:$0xff]  }
 0x139   : > { %v3879_v27 = vpop.f32.mrb[25].mxu0 }
 0x13a   : > { %v3880_v29 = vadd.f32 %v3879_v27, %v3878_v26  ;;  %v3881_v30 = vpop.f32.mrb[26].mxu0  ;;  %v3942_v31 = vpop.f32.mrb[24].mxu1  ;;  %v4173_v27 = vld [vmem:[%s4585_s25 + $0x190] ss:$8 sps:$4 sm:$0xff]  }
 0x13b   : > { %v3882_v32 = vpop.f32.mrb[27].mxu0  ;;  %v3943_v36 = vpop.f32.mrb[25].mxu1 }
 0x13c   : > { %v914_v33 = vadd.f32 %v3880_v29, %v4792_v53  ;;  %v3883_v34 = vadd.f32 %v3882_v32, %v3881_v30  ;;  %v3944_v37 = vadd.f32 %v3943_v36, %v3942_v31  ;;  %v3945_v39 = vpop.f32.mrb[26].mxu1  ;;  %v4176_v30 = vld [vmem:[%s4585_s25 + $0x120] ss:$8 sps:$4 sm:$0xff]   ;;  %v4184_v31 = vld [vmem:[%s4585_s25 + $0x134] ss:$8 sps:$4 sm:$0xff]  }
 0x13d   : > { %v3946_v41 = vpop.f32.mrb[27].mxu1  ;;  %v4182_v36 = vld [vmem:[%s4585_s25 + $0x130] ss:$8 sps:$4 sm:$0xff]  }
 0x13e   : > { %v917_v40 = vadd.f32 %v3883_v34, %v4792_v53  ;;  %v3947_v42 = vadd.f32 %v3946_v41, %v3945_v39  ;;  %v4832_v43 = vadd.f32 %v3944_v37, %v914_v33  ;;  %v4187_v33 = vld [vmem:[%s4585_s25 + $0x1b4] ss:$8 sps:$4 sm:$0xff]  }
 0x140   : > { %v3884_v44 = vpop.f32.mrb[28].mxu0  ;;  %v4834_v46 = vadd.f32 %v3947_v42, %v917_v40  ;;  %v4190_v40 = vld [vmem:[%s4585_s25 + $0x144] ss:$8 sps:$4 sm:$0xff]  }
 0x141   : > { %v3885_v45 = vpop.f32.mrb[29].mxu0 }
 0x142   : > { %v3886_v47 = vadd.f32 %v3885_v45, %v3884_v44  ;;  %v3887_v48 = vpop.f32.mrb[30].mxu0  ;;  %v3948_v49 = vpop.f32.mrb[28].mxu1  ;;  %v4193_v45 = vld [vmem:[%s4585_s25 + $0x1c4] ss:$8 sps:$4 sm:$0xff]  }
 0x143   : > { %v3888_v51 = vpop.f32.mrb[31].mxu0  ;;  %v3949_v57 = vpop.f32.mrb[29].mxu1 }
 0x144   : > { %v922_v54 = vadd.f32 %v3886_v47, %v4792_v53  ;;  %v3889_v55 = vadd.f32 %v3888_v51, %v3887_v48  ;;  %v3950_v58 = vadd.f32 %v3949_v57, %v3948_v49  ;;  %v3951_v59 = vpop.f32.mrb[30].mxu1  ;;  %v4196_v47 = vld [vmem:[%s4585_s25 + $0x154] ss:$8 sps:$4 sm:$0xff]   ;;  %v4191_v48 = vld [vmem:[%s4585_s25 + $0x1c0] ss:$8 sps:$4 sm:$0xff]  }
 0x145   : > { %v3952_v61 = vpop.f32.mrb[31].mxu1 }
 0x146   : > { %v925_v60 = vadd.f32 %v3889_v55, %v4792_v53  ;;  %v3953_v62 = vadd.f32 %v3952_v61, %v3951_v59  ;;  %v4838_v63 = vadd.f32 %v3950_v58, %v922_v54  ;;  %v4194_v54 = vld [vmem:[%s4585_s25 + $0x150] ss:$8 sps:$4 sm:$0xff]   ;;  %v4202_v58 = vld [vmem:[%s4585_s25 + $0x164] ss:$8 sps:$4 sm:$0xff]  }
 0x147   : > { %v4197_v61 = vld [vmem:[%s4585_s25 + $0x1d0] ss:$8 sps:$4 sm:$0xff]  }
 0x148   : > { %v3988_v0 = vpop.f32.mrb[32].mxu0  ;;  %v4843_v4 = vadd.f32 %v3953_v62, %v925_v60 }
 0x149   : > { %v4841_v1 = vadd.f32 %v3988_v0, %v4802_v19  ;;  %v1059_v2 = vpop.f32.mrb[33].mxu0  ;;  %v4172_v19 = vld [vmem:[%s4585_s25 + $0x114] ss:$8 sps:$4 sm:$0xff]  }
 0x14a   : > { %v1060_v5 = vadd.f32 %v1059_v2, %v4796_v3  ;;  %v3989_v8 = vpop.f32.mrb[34].mxu0  ;;  %v4175_v3 = vld [vmem:[%s4585_s25 + $0x194] ss:$8 sps:$4 sm:$0xff]   ;;  %v4203_v2 = vld [vmem:[%s4585_s25 + $0x1e0] ss:$8 sps:$4 sm:$0xff]  }
 0x14b   : > { %v4847_v9 = vadd.f32 %v3989_v8, %v4804_v22  ;;  %v1062_v53 = vpop.f32.mrb[35].mxu0  ;;  %v4208_v0 = vld [vmem:[%s4585_s25 + $0x174] ss:$8 sps:$4 sm:$0xff]   ;;  %v4214_v8 = vld [vmem:[%s4585_s25 + $0x204] ss:$8 sps:$4 sm:$0xff]  }
 0x14c   : > { %v1122_v11 = vmax.f32 %v1060_v5, 0.0  ;;  %v1063_v12 = vadd.f32 %v1062_v53, %v4798_v6  ;;  %v4206_v5 = vld [vmem:[%s4585_s25 + $0x170] ss:$8 sps:$4 sm:$0xff]  }
 0x14d   : > { %v4209_v53 = vld [vmem:[%s4585_s25 + $0x1f0] ss:$8 sps:$4 sm:$0xff]  }
 0x14e   : > { %v1138_v14 = vpack.c.bf16 %v1122_v11, %v1122_v11  ;;  %v1123_v15 = vmax.f32 %v1063_v12, 0.0  ;;  %v1125_v11 = vmax.f32 %v4847_v9, 0.0  ;;  %v4217_v12 = vld [vmem:[%s4585_s25 + $0x284] ss:$8 sps:$4 sm:$0xff]   ;;  %v4218_v9 = vld [vmem:[%s4585_s25 + $0x210] ss:$8 sps:$4 sm:$0xff]  }
 0x150   : > { %v1139_v17 = vpack.c.bf16 %v1123_v15, %v1123_v15  ;;  %v3992_v18 = vpop.f32.mrb[36].mxu0  ;;  %1523 = vmatmul.mubr.bf16.vlgmr.msra.gmra.mrb[32].mxu1 %v1138_v14  ;;  %v4220_v15 = vld [vmem:[%s4585_s25 + $0x214] ss:$8 sps:$4 sm:$0xff]  }
 0x151   : > { %v4855_v20 = vadd.f32 %v3992_v18, %v4814_v52  ;;  %1733 = vmatpush1.bf16.msra.mxu1 %v4164_v13  ;;  %v1075_v22 = vpop.f32.mrb[37].mxu0  ;;  %1764 = vmatprep.mubr.bf16.mxu1 %v4539_v50  ;;  %v4212_v13 = vld [vmem:[%s4585_s25 + $0x200] ss:$8 sps:$4 sm:$0xff]   ;;  %v4221_v18 = vld [vmem:[%s4585_s25 + $0x290] ss:$8 sps:$4 sm:$0xff]  }
 0x152   : > { %v4860_v6 = vadd.f32 %v1075_v22, %v4808_v35  ;;  %v3993_v23 = vpop.f32.mrb[38].mxu0  ;;  %1644 = vmatmul.mubr.bf16.vlgmr.msra.gmra.mrb[48].mxu0 %v1139_v17  ;;  %1734 = vmatprep.subr.bf16.mxu1 %v4172_v19  ;;  %v4181_v35 = vld [vmem:[%s4585_s25 + $0x1a4] ss:$8 sps:$4 sm:$0xff]   ;;  %v1141_v19 = vpack.c.bf16 %v1125_v11, %v1125_v11  ;;  %v4224_v22 = vld [vmem:[%s4585_s25 + $0x220] ss:$8 sps:$4 sm:$0xff]  }
 0x153   : > { %v4864_v26 = vadd.f32 %v3993_v23, %v4816_v56  ;;  %1854 = vmatpush1.bf16.msra.mxu0 %v4167_v16  ;;  %v1078_v52 = vpop.f32.mrb[39].mxu0  ;;  %1885 = vmatprep.mubr.bf16.mxu0 %v4539_v50  ;;  %v4179_v56 = vld [vmem:[%s4585_s25 + $0x1a0] ss:$8 sps:$4 sm:$0xff]   ;;  %v4223_v16 = vld [vmem:[%s4585_s25 + $0x294] ss:$8 sps:$4 sm:$0xff]  }
 0x154   : > { %v4869_v29 = vadd.f32 %v1078_v52, %v4810_v38  ;;  %1855 = vmatprep.subr.bf16.mxu0 %v4175_v3  ;;  %v4226_v17 = vld [vmem:[%s4585_s25 + $0x224] ss:$8 sps:$4 sm:$0xff]   ;;  %v4227_v23 = vld [vmem:[%s4585_s25 + $0x2a0] ss:$8 sps:$4 sm:$0xff]   ;;  %v4230_v52 = vld [vmem:[%s4585_s25 + $0x230] ss:$8 sps:$4 sm:$0xff]  }
 0x155   : > { %1735 = vmatpush1.bf16.msra.mxu1 %v4170_v21  ;;  %v4229_v3 = vld [vmem:[%s4585_s25 + $0x2a4] ss:$8 sps:$4 sm:$0xff]   ;;  %v4232_v21 = vld [vmem:[%s4585_s25 + $0x234] ss:$8 sps:$4 sm:$0xff]  }
 0x156   : > { %1736 = vmatprep.subr.bf16.mxu1 %v4178_v24  ;;  %v4235_v24 = vld [vmem:[%s4585_s25 + $0x2b4] ss:$8 sps:$4 sm:$0xff]   ;;  %v4286_v11 = vld [vmem:[%s4585_s25 + $0x344] ss:$8 sps:$4 sm:$0xff]  }
 0x157   : > { %1856 = vmatpush1.bf16.msra.mxu0 %v4173_v27  ;;  %v4238_v27 = vld [vmem:[%s4585_s25 + $0x244] ss:$8 sps:$4 sm:$0xff]  }
 0x158   : > { %v3996_v32 = vpop.f32.mrb[40].mxu0  ;;  %1857 = vmatprep.subr.bf16.mxu0 %v4181_v35  ;;  %v4233_v35 = vld [vmem:[%s4585_s25 + $0x2b0] ss:$8 sps:$4 sm:$0xff]  }
 0x159   : > { %v4877_v34 = vadd.f32 %v3996_v32, %v4826_v25  ;;  %1737 = vmatpush1.bf16.msra.mxu1 %v4176_v30  ;;  %v1091_v38 = vpop.f32.mrb[41].mxu0  ;;  %v4185_v25 = vld [vmem:[%s4585_s25 + $0x1b0] ss:$8 sps:$4 sm:$0xff]   ;;  %v4241_v30 = vld [vmem:[%s4585_s25 + $0x2c4] ss:$8 sps:$4 sm:$0xff]  }
 0x15a   : > { %v4881_v37 = vadd.f32 %v1091_v38, %v4820_v7  ;;  %v3997_v39 = vpop.f32.mrb[42].mxu0  ;;  %1738 = vmatprep.subr.bf16.mxu1 %v4184_v31  ;;  %v4188_v7 = vld [vmem:[%s4585_s25 + $0x140] ss:$8 sps:$4 sm:$0xff]   ;;  %v4242_v38 = vld [vmem:[%s4585_s25 + $0x250] ss:$8 sps:$4 sm:$0xff]  }
 0x15b   : > { %v4885_v41 = vadd.f32 %v3997_v39, %v4828_v28  ;;  %1858 = vmatpush1.bf16.msra.mxu0 %v4179_v56  ;;  %v1094_v42 = vpop.f32.mrb[43].mxu0  ;;  %v4199_v28 = vld [vmem:[%s4585_s25 + $0x1d4] ss:$8 sps:$4 sm:$0xff]   ;;  %v4236_v31 = vld [vmem:[%s4585_s25 + $0x240] ss:$8 sps:$4 sm:$0xff]  }
 0x15c   : > { %v4889_v44 = vadd.f32 %v1094_v42, %v4822_v10  ;;  %1859 = vmatprep.subr.bf16.mxu0 %v4187_v33  ;;  %v4244_v56 = vld [vmem:[%s4585_s25 + $0x254] ss:$8 sps:$4 sm:$0xff]   ;;  %v4239_v32 = vld [vmem:[%s4585_s25 + $0x2c0] ss:$8 sps:$4 sm:$0xff]   ;;  %v4245_v39 = vld [vmem:[%s4585_s25 + $0x2d0] ss:$8 sps:$4 sm:$0xff]  }
 0x15d   : > { %1739 = vmatpush1.bf16.msra.mxu1 %v4182_v36  ;;  %v4247_v33 = vld [vmem:[%s4585_s25 + $0x2d4] ss:$8 sps:$4 sm:$0xff]   ;;  %v4250_v36 = vld [vmem:[%s4585_s25 + $0x264] ss:$8 sps:$4 sm:$0xff]   ;;  %v4248_v42 = vld [vmem:[%s4585_s25 + $0x260] ss:$8 sps:$4 sm:$0xff]  }
 0x15e   : > { %1740 = vmatprep.subr.bf16.mxu1 %v4190_v40  ;;  %v4253_v40 = vld [vmem:[%s4585_s25 + $0x2e4] ss:$8 sps:$4 sm:$0xff]  }
 0x15f   : > { %1860 = vmatpush1.bf16.msra.mxu0 %v4185_v25  ;;  %v4256_v25 = vld [vmem:[%s4585_s25 + $0x274] ss:$8 sps:$4 sm:$0xff]  }
 0x160   : > { %v4000_v49 = vpop.f32.mrb[44].mxu0  ;;  %1861 = vmatprep.subr.bf16.mxu0 %v4193_v45  ;;  %v4251_v45 = vld [vmem:[%s4585_s25 + $0x2e0] ss:$8 sps:$4 sm:$0xff]  }
 0x161   : > { %v4897_v51 = vadd.f32 %v4000_v49, %v4838_v63  ;;  %1741 = vmatpush1.bf16.msra.mxu1 %v4188_v7  ;;  %v1107_v10 = vpop.f32.mrb[45].mxu0  ;;  %v4200_v63 = vld [vmem:[%s4585_s25 + $0x160] ss:$8 sps:$4 sm:$0xff]   ;;  %v4259_v7 = vld [vmem:[%s4585_s25 + $0x2f4] ss:$8 sps:$4 sm:$0xff]  }
 0x162   : > { %v4901_v55 = vadd.f32 %v1107_v10, %v4832_v43  ;;  %v4001_v57 = vpop.f32.mrb[46].mxu0  ;;  %1742 = vmatprep.subr.bf16.mxu1 %v4196_v47  ;;  %v4205_v43 = vld [vmem:[%s4585_s25 + $0x1e4] ss:$8 sps:$4 sm:$0xff]   ;;  %v4254_v47 = vld [vmem:[%s4585_s25 + $0x270] ss:$8 sps:$4 sm:$0xff]   ;;  %v1127_v10 = vmax.f32 %v4869_v29, 0.0 }
 0x163   : > { %v4905_v59 = vadd.f32 %v4001_v57, %v4843_v4  ;;  %1862 = vmatpush1.bf16.msra.mxu0 %v4191_v48  ;;  %v1110_v60 = vpop.f32.mrb[47].mxu0  ;;  %v4211_v4 = vld [vmem:[%s4585_s25 + $0x1f4] ss:$8 sps:$4 sm:$0xff]   ;;  %v1126_v48 = vmax.f32 %v4860_v6, 0.0  ;;  %v4262_v49 = vld [vmem:[%s4585_s25 + $0x304] ss:$8 sps:$4 sm:$0xff]  }
 0x164   : > { %v4909_v62 = vadd.f32 %v1110_v60, %v4834_v46  ;;  %1863 = vmatprep.subr.bf16.mxu0 %v4199_v28  ;;  %v1124_v46 = vmax.f32 %v4841_v1, 0.0  ;;  %v4215_v1 = vld [vmem:[%s4585_s25 + $0x280] ss:$8 sps:$4 sm:$0xff]   ;;  %v4257_v28 = vld [vmem:[%s4585_s25 + $0x2f0] ss:$8 sps:$4 sm:$0xff]  }
 0x165   : > { %1743 = vmatpush1.bf16.msra.mxu1 %v4194_v54  ;;  %v4265_v54 = vld [vmem:[%s4585_s25 + $0x384] ss:$8 sps:$4 sm:$0xff]   ;;  %v4260_v57 = vld [vmem:[%s4585_s25 + $0x300] ss:$8 sps:$4 sm:$0xff]   ;;  %v4268_v60 = vld [vmem:[%s4585_s25 + $0x314] ss:$8 sps:$4 sm:$0xff]  }
 0x166   : > { %1744 = vmatprep.subr.bf16.mxu1 %v4202_v58  ;;  %v1140_v14 = vpack.c.bf16 %v1124_v46, %v1124_v46  ;;  %v1142_v58 = vpack.c.bf16 %v1126_v48, %v1126_v48  ;;  %v4263_v6 = vld [vmem:[%s4585_s25 + $0x380] ss:$8 sps:$4 sm:$0xff]   ;;  %v4266_v29 = vld [vmem:[%s4585_s25 + $0x310] ss:$8 sps:$4 sm:$0xff]  }
 0x167   : > { %1864 = vmatpush1.bf16.msra.mxu0 %v4197_v61  ;;  %v1143_v61 = vpack.c.bf16 %v1127_v10, %v1127_v10  ;;  %v4275_v46 = vld [vmem:[%s4585_s25 + $0x3a0] ss:$8 sps:$4 sm:$0xff]   ;;  %v4326_v48 = vld [vmem:[%s4585_s25 + $0x430] ss:$8 sps:$4 sm:$0xff]   ;;  %v4337_v10 = vld [vmem:[%s4585_s25 + $0x4c4] ss:$8 sps:$4 sm:$0xff]  }
 0x168   : > { %1865 = vmatprep.subr.bf16.mxu0 %v4205_v43  ;;  %v4271_v43 = vld [vmem:[%s4585_s25 + $0x394] ss:$8 sps:$4 sm:$0xff]  }
 0x169   : > { %1745 = vmatpush1.bf16.msra.mxu1 %v4200_v63  ;;  %v4274_v63 = vld [vmem:[%s4585_s25 + $0x324] ss:$8 sps:$4 sm:$0xff]  }
 0x16a   : > { %1746 = vmatprep.subr.bf16.mxu1 %v4208_v0  ;;  %v4269_v0 = vld [vmem:[%s4585_s25 + $0x390] ss:$8 sps:$4 sm:$0xff]  }
 0x16b   : > { %1866 = vmatpush1.bf16.msra.mxu0 %v4203_v2  ;;  %v4277_v2 = vld [vmem:[%s4585_s25 + $0x3a4] ss:$8 sps:$4 sm:$0xff]  }
 0x16c   : > { %1867 = vmatprep.subr.bf16.mxu0 %v4211_v4  ;;  %v4272_v4 = vld [vmem:[%s4585_s25 + $0x320] ss:$8 sps:$4 sm:$0xff]  }
 0x16d   : > { %1747 = vmatpush1.bf16.msra.mxu1 %v4206_v5  ;;  %v4280_v5 = vld [vmem:[%s4585_s25 + $0x334] ss:$8 sps:$4 sm:$0xff]  }
 0x16e   : > { %1974 = vmatprep.subr.bf16.mxu1 %v4214_v8  ;;  %v4283_v8 = vld [vmem:[%s4585_s25 + $0x3b4] ss:$8 sps:$4 sm:$0xff]  }
 0x16f   : > { %1868 = vmatpush1.bf16.msra.mxu0 %v4209_v53  ;;  %v4278_v53 = vld [vmem:[%s4585_s25 + $0x330] ss:$8 sps:$4 sm:$0xff]  }
 0x170   : > { %1765 = vmatmul.mubr.bf16.vlgmr.msra.gmra.mrb[36].mxu1 %v1140_v14  ;;  %2095 = vmatprep.subr.bf16.mxu0 %v4217_v12  ;;  %v4281_v12 = vld [vmem:[%s4585_s25 + $0x3b0] ss:$8 sps:$4 sm:$0xff]   ;;  %v4284_v14 = vld [vmem:[%s4585_s25 + $0x340] ss:$8 sps:$4 sm:$0xff]  }
 0x171   : > { %1975 = vmatpush1.bf16.msra.mxu1 %v4212_v13  ;;  %2006 = vmatprep.mubr.bf16.mxu1 %v4539_v50  ;;  %v4289_v13 = vld [vmem:[%s4585_s25 + $0x3c4] ss:$8 sps:$4 sm:$0xff]  }
 0x172   : > { %1886 = vmatmul.mubr.bf16.vlgmr.msra.gmra.mrb[52].mxu0 %v1141_v19  ;;  %1976 = vmatprep.subr.bf16.mxu1 %v4220_v15  ;;  %v4292_v15 = vld [vmem:[%s4585_s25 + $0x354] ss:$8 sps:$4 sm:$0xff]  }
 0x173   : > { %2096 = vmatpush1.bf16.msra.mxu0 %v4215_v1  ;;  %2127 = vmatprep.mubr.bf16.mxu0 %v4539_v50  ;;  %v4287_v1 = vld [vmem:[%s4585_s25 + $0x3c0] ss:$8 sps:$4 sm:$0xff]   ;;  %v4295_v19 = vld [vmem:[%s4585_s25 + $0x3d4] ss:$8 sps:$4 sm:$0xff]  }
 0x174   : > { %2097 = vmatprep.subr.bf16.mxu0 %v4223_v16  ;;  %v4290_v16 = vld [vmem:[%s4585_s25 + $0x350] ss:$8 sps:$4 sm:$0xff]  }
 0x175   : > { %1977 = vmatpush1.bf16.msra.mxu1 %v4218_v9  ;;  %v4298_v9 = vld [vmem:[%s4585_s25 + $0x364] ss:$8 sps:$4 sm:$0xff]  }
 0x176   : > { %1978 = vmatprep.subr.bf16.mxu1 %v4226_v17  ;;  %v4293_v17 = vld [vmem:[%s4585_s25 + $0x3d0] ss:$8 sps:$4 sm:$0xff]  }
 0x177   : > { %2098 = vmatpush1.bf16.msra.mxu0 %v4221_v18  ;;  %v4301_v18 = vld [vmem:[%s4585_s25 + $0x3e4] ss:$8 sps:$4 sm:$0xff]  }
 0x178   : > { %2099 = vmatprep.subr.bf16.mxu0 %v4229_v3  ;;  %v4296_v3 = vld [vmem:[%s4585_s25 + $0x360] ss:$8 sps:$4 sm:$0xff]  }
 0x179   : > { %1979 = vmatpush1.bf16.msra.mxu1 %v4224_v22  ;;  %v4304_v22 = vld [vmem:[%s4585_s25 + $0x374] ss:$8 sps:$4 sm:$0xff]  }
 0x17a   : > { %1980 = vmatprep.subr.bf16.mxu1 %v4232_v21  ;;  %v4299_v21 = vld [vmem:[%s4585_s25 + $0x3e0] ss:$8 sps:$4 sm:$0xff]  }
 0x17b   : > { %2100 = vmatpush1.bf16.msra.mxu0 %v4227_v23  ;;  %v4307_v23 = vld [vmem:[%s4585_s25 + $0x3f4] ss:$8 sps:$4 sm:$0xff]  }
 0x17c   : > { %2101 = vmatprep.subr.bf16.mxu0 %v4235_v24  ;;  %v4302_v24 = vld [vmem:[%s4585_s25 + $0x370] ss:$8 sps:$4 sm:$0xff]  }
 0x17d   : > { %1981 = vmatpush1.bf16.msra.mxu1 %v4230_v52  ;;  %v1128_v52 = vmax.f32 %v4855_v20, 0.0  ;;  %v4311_v20 = vld [vmem:[%s4585_s25 + $0x480] ss:$8 sps:$4 sm:$0xff]  }
 0x17e   : > { %1982 = vmatprep.subr.bf16.mxu1 %v4238_v27  ;;  %v4310_v27 = vld [vmem:[%s4585_s25 + $0x404] ss:$8 sps:$4 sm:$0xff]  }
 0x17f   : > { %2102 = vmatpush1.bf16.msra.mxu0 %v4233_v35  ;;  %v4305_v35 = vld [vmem:[%s4585_s25 + $0x3f0] ss:$8 sps:$4 sm:$0xff]  }
 0x180   : > { %2103 = vmatprep.subr.bf16.mxu0 %v4241_v30  ;;  %v1129_v30 = vmax.f32 %v4864_v26, 0.0  ;;  %v4314_v26 = vld [vmem:[%s4585_s25 + $0x410] ss:$8 sps:$4 sm:$0xff]  }
 0x181   : > { %1983 = vmatpush1.bf16.msra.mxu1 %v4236_v31  ;;  %v4313_v31 = vld [vmem:[%s4585_s25 + $0x484] ss:$8 sps:$4 sm:$0xff]  }
 0x182   : > { %1984 = vmatprep.subr.bf16.mxu1 %v4244_v56  ;;  %v4308_v56 = vld [vmem:[%s4585_s25 + $0x400] ss:$8 sps:$4 sm:$0xff]  }
 0x183   : > { %2104 = vmatpush1.bf16.msra.mxu0 %v4239_v32  ;;  %v1144_v32 = vpack.c.bf16 %v1128_v52, %v1128_v52  ;;  %v4377_v52 = vld [vmem:[%s4585_s25 + $0x5b0] ss:$8 sps:$4 sm:$0xff]  }
 0x184   : > { %2105 = vmatprep.subr.bf16.mxu0 %v4247_v33  ;;  %v4316_v33 = vld [vmem:[%s4585_s25 + $0x414] ss:$8 sps:$4 sm:$0xff]  }
 0x185   : > { %1985 = vmatpush1.bf16.msra.mxu1 %v4242_v38  ;;  %v1145_v38 = vpack.c.bf16 %v1129_v30, %v1129_v30  ;;  %v4388_v30 = vld [vmem:[%s4585_s25 + $0x554] ss:$8 sps:$4 sm:$0xff]  }
 0x186   : > { %1986 = vmatprep.subr.bf16.mxu1 %v4250_v36  ;;  %v4319_v36 = vld [vmem:[%s4585_s25 + $0x494] ss:$8 sps:$4 sm:$0xff]  }
 0x187   : > { %2106 = vmatpush1.bf16.msra.mxu0 %v4245_v39  ;;  %v4322_v39 = vld [vmem:[%s4585_s25 + $0x424] ss:$8 sps:$4 sm:$0xff]  }
 0x188   : > { %2107 = vmatprep.subr.bf16.mxu0 %v4253_v40  ;;  %v4317_v40 = vld [vmem:[%s4585_s25 + $0x490] ss:$8 sps:$4 sm:$0xff]  }
 0x189   : > { %1987 = vmatpush1.bf16.msra.mxu1 %v4248_v42  ;;  %v4325_v42 = vld [vmem:[%s4585_s25 + $0x4a4] ss:$8 sps:$4 sm:$0xff]  }
 0x18a   : > { %1988 = vmatprep.subr.bf16.mxu1 %v4256_v25  ;;  %v4320_v25 = vld [vmem:[%s4585_s25 + $0x420] ss:$8 sps:$4 sm:$0xff]  }
 0x18b   : > { %2108 = vmatpush1.bf16.msra.mxu0 %v4251_v45  ;;  %v4328_v45 = vld [vmem:[%s4585_s25 + $0x434] ss:$8 sps:$4 sm:$0xff]  }
 0x18c   : > { %2109 = vmatprep.subr.bf16.mxu0 %v4259_v7  ;;  %v4323_v7 = vld [vmem:[%s4585_s25 + $0x4a0] ss:$8 sps:$4 sm:$0xff]  }
 0x18d   : > { %1989 = vmatpush1.bf16.msra.mxu1 %v4254_v47  ;;  %v4331_v47 = vld [vmem:[%s4585_s25 + $0x4b4] ss:$8 sps:$4 sm:$0xff]  }
 0x18e   : > { %2216 = vmatprep.subr.bf16.mxu1 %v4262_v49  ;;  %v4334_v49 = vld [vmem:[%s4585_s25 + $0x444] ss:$8 sps:$4 sm:$0xff]  }
 0x18f   : > { %2110 = vmatpush1.bf16.msra.mxu0 %v4257_v28  ;;  %v4329_v28 = vld [vmem:[%s4585_s25 + $0x4b0] ss:$8 sps:$4 sm:$0xff]  }
 0x190   : > { %2007 = vmatmul.mubr.bf16.vlgmr.msra.gmra.mrb[40].mxu1 %v1142_v58  ;;  %2337 = vmatprep.subr.bf16.mxu0 %v4265_v54  ;;  %v4332_v54 = vld [vmem:[%s4585_s25 + $0x440] ss:$8 sps:$4 sm:$0xff]  }
 0x191   : > { %2217 = vmatpush1.bf16.msra.mxu1 %v4260_v57  ;;  %2248 = vmatprep.mubr.bf16.mxu1 %v4539_v50  ;;  %v4340_v57 = vld [vmem:[%s4585_s25 + $0x454] ss:$8 sps:$4 sm:$0xff]   ;;  %v4335_v58 = vld [vmem:[%s4585_s25 + $0x4c0] ss:$8 sps:$4 sm:$0xff]  }
 0x192   : > { %2128 = vmatmul.mubr.bf16.vlgmr.msra.gmra.mrb[56].mxu0 %v1143_v61  ;;  %2218 = vmatprep.subr.bf16.mxu1 %v4268_v60  ;;  %v4343_v60 = vld [vmem:[%s4585_s25 + $0x4d4] ss:$8 sps:$4 sm:$0xff]   ;;  %v4346_v61 = vld [vmem:[%s4585_s25 + $0x464] ss:$8 sps:$4 sm:$0xff]  }
 0x193   : > { %2338 = vmatpush1.bf16.msra.mxu0 %v4263_v6  ;;  %2369 = vmatprep.mubr.bf16.mxu0 %v4539_v50  ;;  %v4338_v6 = vld [vmem:[%s4585_s25 + $0x450] ss:$8 sps:$4 sm:$0xff]  }
 0x194   : > { %2339 = vmatprep.subr.bf16.mxu0 %v4271_v43  ;;  %v4341_v43 = vld [vmem:[%s4585_s25 + $0x4d0] ss:$8 sps:$4 sm:$0xff]  }
 0x195   : > { %2219 = vmatpush1.bf16.msra.mxu1 %v4266_v29  ;;  %v4349_v29 = vld [vmem:[%s4585_s25 + $0x4e4] ss:$8 sps:$4 sm:$0xff]  }
 0x196   : > { %2220 = vmatprep.subr.bf16.mxu1 %v4274_v63  ;;  %v4344_v63 = vld [vmem:[%s4585_s25 + $0x460] ss:$8 sps:$4 sm:$0xff]  }
 0x197   : > { %2340 = vmatpush1.bf16.msra.mxu0 %v4269_v0  ;;  %v4352_v0 = vld [vmem:[%s4585_s25 + $0x474] ss:$8 sps:$4 sm:$0xff]  }
 0x198   : > { %2341 = vmatprep.subr.bf16.mxu0 %v4277_v2  ;;  %v4347_v2 = vld [vmem:[%s4585_s25 + $0x4e0] ss:$8 sps:$4 sm:$0xff]  }
 0x199   : > { %2221 = vmatpush1.bf16.msra.mxu1 %v4272_v4  ;;  %v4355_v4 = vld [vmem:[%s4585_s25 + $0x4f4] ss:$8 sps:$4 sm:$0xff]  }
 0x19a   : > { %2222 = vmatprep.subr.bf16.mxu1 %v4280_v5  ;;  %v4350_v5 = vld [vmem:[%s4585_s25 + $0x470] ss:$8 sps:$4 sm:$0xff]  }
 0x19b   : > { %2342 = vmatpush1.bf16.msra.mxu0 %v4275_v46  ;;  %v1130_v46 = vmax.f32 %v4881_v37, 0.0  ;;  %v4359_v37 = vld [vmem:[%s4585_s25 + $0x580] ss:$8 sps:$4 sm:$0xff]  }
 0x19c   : > { %2343 = vmatprep.subr.bf16.mxu0 %v4283_v8  ;;  %v4358_v8 = vld [vmem:[%s4585_s25 + $0x504] ss:$8 sps:$4 sm:$0xff]  }
 0x19d   : > { %2223 = vmatpush1.bf16.msra.mxu1 %v4278_v53  ;;  %v4353_v53 = vld [vmem:[%s4585_s25 + $0x4f0] ss:$8 sps:$4 sm:$0xff]  }
 0x19e   : > { %2224 = vmatprep.subr.bf16.mxu1 %v4286_v11  ;;  %v1131_v11 = vmax.f32 %v4889_v44, 0.0  ;;  %v4362_v44 = vld [vmem:[%s4585_s25 + $0x510] ss:$8 sps:$4 sm:$0xff]  }
 0x19f   : > { %2344 = vmatpush1.bf16.msra.mxu0 %v4281_v12  ;;  %v4361_v12 = vld [vmem:[%s4585_s25 + $0x584] ss:$8 sps:$4 sm:$0xff]  }
 0x1a0   : > { %2345 = vmatprep.subr.bf16.mxu0 %v4289_v13  ;;  %v4356_v13 = vld [vmem:[%s4585_s25 + $0x500] ss:$8 sps:$4 sm:$0xff]  }
 0x1a1   : > { %2225 = vmatpush1.bf16.msra.mxu1 %v4284_v14  ;;  %v1146_v14 = vpack.c.bf16 %v1130_v46, %v1130_v46  ;;  %v4428_v46 = vld [vmem:[%s4585_s25 + $0x640] ss:$8 sps:$4 sm:$0xff]  }
 0x1a2   : > { %2226 = vmatprep.subr.bf16.mxu1 %v4292_v15  ;;  %v4364_v15 = vld [vmem:[%s4585_s25 + $0x514] ss:$8 sps:$4 sm:$0xff]  }
 0x1a3   : > { %2346 = vmatpush1.bf16.msra.mxu0 %v4287_v1  ;;  %v1147_v1 = vpack.c.bf16 %v1131_v11, %v1131_v11  ;;  %v4439_v11 = vld [vmem:[%s4585_s25 + $0x6d4] ss:$8 sps:$4 sm:$0xff]  }
 0x1a4   : > { %2347 = vmatprep.subr.bf16.mxu0 %v4295_v19  ;;  %v4367_v19 = vld [vmem:[%s4585_s25 + $0x594] ss:$8 sps:$4 sm:$0xff]  }
 0x1a5   : > { %2227 = vmatpush1.bf16.msra.mxu1 %v4290_v16  ;;  %v4370_v16 = vld [vmem:[%s4585_s25 + $0x524] ss:$8 sps:$4 sm:$0xff]  }
 0x1a6   : > { %2228 = vmatprep.subr.bf16.mxu1 %v4298_v9  ;;  %v4365_v9 = vld [vmem:[%s4585_s25 + $0x590] ss:$8 sps:$4 sm:$0xff]  }
 0x1a7   : > { %2348 = vmatpush1.bf16.msra.mxu0 %v4293_v17  ;;  %v4373_v17 = vld [vmem:[%s4585_s25 + $0x5a4] ss:$8 sps:$4 sm:$0xff]  }
 0x1a8   : > { %2349 = vmatprep.subr.bf16.mxu0 %v4301_v18  ;;  %v4368_v18 = vld [vmem:[%s4585_s25 + $0x520] ss:$8 sps:$4 sm:$0xff]  }
 0x1a9   : > { %2229 = vmatpush1.bf16.msra.mxu1 %v4296_v3  ;;  %v4376_v3 = vld [vmem:[%s4585_s25 + $0x534] ss:$8 sps:$4 sm:$0xff]  }
 0x1aa   : > { %2230 = vmatprep.subr.bf16.mxu1 %v4304_v22  ;;  %v4371_v22 = vld [vmem:[%s4585_s25 + $0x5a0] ss:$8 sps:$4 sm:$0xff]  }
 0x1ab   : > { %2350 = vmatpush1.bf16.msra.mxu0 %v4299_v21  ;;  %v4379_v21 = vld [vmem:[%s4585_s25 + $0x5b4] ss:$8 sps:$4 sm:$0xff]  }
 0x1ac   : > { %2351 = vmatprep.subr.bf16.mxu0 %v4307_v23  ;;  %v4374_v23 = vld [vmem:[%s4585_s25 + $0x530] ss:$8 sps:$4 sm:$0xff]  }
 0x1ad   : > { %2231 = vmatpush1.bf16.msra.mxu1 %v4302_v24  ;;  %v4382_v24 = vld [vmem:[%s4585_s25 + $0x544] ss:$8 sps:$4 sm:$0xff]  }
 0x1ae   : > { %2458 = vmatprep.subr.bf16.mxu1 %v4310_v27  ;;  %v4385_v27 = vld [vmem:[%s4585_s25 + $0x5c4] ss:$8 sps:$4 sm:$0xff]  }
 0x1af   : > { %2352 = vmatpush1.bf16.msra.mxu0 %v4305_v35  ;;  %v4380_v35 = vld [vmem:[%s4585_s25 + $0x540] ss:$8 sps:$4 sm:$0xff]  }
 0x1b0   : > { %2249 = vmatmul.mubr.bf16.vlgmr.msra.gmra.mrb[44].mxu1 %v1144_v32  ;;  %2579 = vmatprep.subr.bf16.mxu0 %v4313_v31  ;;  %v4383_v31 = vld [vmem:[%s4585_s25 + $0x5c0] ss:$8 sps:$4 sm:$0xff]   ;;  %v4386_v32 = vld [vmem:[%s4585_s25 + $0x550] ss:$8 sps:$4 sm:$0xff]  }
 0x1b1   : > { %2459 = vmatpush1.bf16.msra.mxu1 %v4308_v56  ;;  %2490 = vmatprep.mubr.bf16.mxu1 %v4539_v50  ;;  %v4391_v56 = vld [vmem:[%s4585_s25 + $0x5d4] ss:$8 sps:$4 sm:$0xff]  }
 0x1b2   : > { %2370 = vmatmul.mubr.bf16.vlgmr.msra.gmra.mrb[60].mxu0 %v1145_v38  ;;  %2460 = vmatprep.subr.bf16.mxu1 %v4316_v33  ;;  %v4394_v33 = vld [vmem:[%s4585_s25 + $0x564] ss:$8 sps:$4 sm:$0xff]  }
 0x1b3   : > { %2580 = vmatpush1.bf16.msra.mxu0 %v4311_v20  ;;  %2611 = vmatprep.mubr.bf16.mxu0 %v4539_v50  ;;  %v4389_v20 = vld [vmem:[%s4585_s25 + $0x5d0] ss:$8 sps:$4 sm:$0xff]   ;;  %v4397_v38 = vld [vmem:[%s4585_s25 + $0x5e4] ss:$8 sps:$4 sm:$0xff]  }
 0x1b4   : > { %2581 = vmatprep.subr.bf16.mxu0 %v4319_v36  ;;  %v4392_v36 = vld [vmem:[%s4585_s25 + $0x560] ss:$8 sps:$4 sm:$0xff]  }
 0x1b5   : > { %2461 = vmatpush1.bf16.msra.mxu1 %v4314_v26  ;;  %v4400_v26 = vld [vmem:[%s4585_s25 + $0x574] ss:$8 sps:$4 sm:$0xff]  }
 0x1b6   : > { %2462 = vmatprep.subr.bf16.mxu1 %v4322_v39  ;;  %v4395_v39 = vld [vmem:[%s4585_s25 + $0x5e0] ss:$8 sps:$4 sm:$0xff]  }
 0x1b7   : > { %2582 = vmatpush1.bf16.msra.mxu0 %v4317_v40  ;;  %v4403_v40 = vld [vmem:[%s4585_s25 + $0x5f4] ss:$8 sps:$4 sm:$0xff]  }
 0x1b8   : > { %2583 = vmatprep.subr.bf16.mxu0 %v4325_v42  ;;  %v4398_v42 = vld [vmem:[%s4585_s25 + $0x570] ss:$8 sps:$4 sm:$0xff]  }
 0x1b9   : > { %2463 = vmatpush1.bf16.msra.mxu1 %v4320_v25  ;;  %v1132_v25 = vmax.f32 %v4877_v34, 0.0  ;;  %v4407_v34 = vld [vmem:[%s4585_s25 + $0x680] ss:$8 sps:$4 sm:$0xff]  }
 0x1ba   : > { %2464 = vmatprep.subr.bf16.mxu1 %v4328_v45  ;;  %v4406_v45 = vld [vmem:[%s4585_s25 + $0x604] ss:$8 sps:$4 sm:$0xff]  }
 0x1bb   : > { %2584 = vmatpush1.bf16.msra.mxu0 %v4323_v7  ;;  %v4401_v7 = vld [vmem:[%s4585_s25 + $0x5f0] ss:$8 sps:$4 sm:$0xff]  }
 0x1bc   : > { %2585 = vmatprep.subr.bf16.mxu0 %v4331_v47  ;;  %v1133_v47 = vmax.f32 %v4885_v41, 0.0  ;;  %v4410_v41 = vld [vmem:[%s4585_s25 + $0x610] ss:$8 sps:$4 sm:$0xff]  }
 0x1bd   : > { %2465 = vmatpush1.bf16.msra.mxu1 %v4326_v48  ;;  %v4409_v48 = vld [vmem:[%s4585_s25 + $0x684] ss:$8 sps:$4 sm:$0xff]  }
 0x1be   : > { %2466 = vmatprep.subr.bf16.mxu1 %v4334_v49  ;;  %v4404_v49 = vld [vmem:[%s4585_s25 + $0x600] ss:$8 sps:$4 sm:$0xff]  }
 0x1bf   : > { %2586 = vmatpush1.bf16.msra.mxu0 %v4329_v28  ;;  %v1148_v28 = vpack.c.bf16 %v1132_v25, %v1132_v25  ;;  %v4487_v25 = vld [vmem:[%s4585_s25 + $0x7d4] ss:$8 sps:$4 sm:$0xff]  }
 0x1c0   : > { %2587 = vmatprep.subr.bf16.mxu0 %v4337_v10  ;;  %v4412_v10 = vld [vmem:[%s4585_s25 + $0x614] ss:$8 sps:$4 sm:$0xff]  }
 0x1c1   : > { %2467 = vmatpush1.bf16.msra.mxu1 %v4332_v54  ;;  %v1149_v54 = vpack.c.bf16 %v1133_v47, %v1133_v47 }
 0x1c2   : > { %2468 = vmatprep.subr.bf16.mxu1 %v4340_v57  ;;  %v4415_v57 = vld [vmem:[%s4585_s25 + $0x694] ss:$8 sps:$4 sm:$0xff]  }
 0x1c3   : > { %2588 = vmatpush1.bf16.msra.mxu0 %v4335_v58  ;;  %v4418_v58 = vld [vmem:[%s4585_s25 + $0x624] ss:$8 sps:$4 sm:$0xff]  }
 0x1c4   : > { %2589 = vmatprep.subr.bf16.mxu0 %v4343_v60  ;;  %v4413_v60 = vld [vmem:[%s4585_s25 + $0x690] ss:$8 sps:$4 sm:$0xff]  }
 0x1c5   : > { %2469 = vmatpush1.bf16.msra.mxu1 %v4338_v6  ;;  %v4421_v6 = vld [vmem:[%s4585_s25 + $0x6a4] ss:$8 sps:$4 sm:$0xff]  }
 0x1c6   : > { %2470 = vmatprep.subr.bf16.mxu1 %v4346_v61  ;;  %v4416_v61 = vld [vmem:[%s4585_s25 + $0x620] ss:$8 sps:$4 sm:$0xff]  }
 0x1c7   : > { %2590 = vmatpush1.bf16.msra.mxu0 %v4341_v43  ;;  %v4424_v43 = vld [vmem:[%s4585_s25 + $0x634] ss:$8 sps:$4 sm:$0xff]  }
 0x1c8   : > { %2591 = vmatprep.subr.bf16.mxu0 %v4349_v29  ;;  %v4419_v29 = vld [vmem:[%s4585_s25 + $0x6a0] ss:$8 sps:$4 sm:$0xff]  }
 0x1c9   : > { %2471 = vmatpush1.bf16.msra.mxu1 %v4344_v63  ;;  %v4427_v63 = vld [vmem:[%s4585_s25 + $0x6b4] ss:$8 sps:$4 sm:$0xff]  }
 0x1ca   : > { %2472 = vmatprep.subr.bf16.mxu1 %v4352_v0  ;;  %v4422_v0 = vld [vmem:[%s4585_s25 + $0x630] ss:$8 sps:$4 sm:$0xff]  }
 0x1cb   : > { %2592 = vmatpush1.bf16.msra.mxu0 %v4347_v2  ;;  %v4430_v2 = vld [vmem:[%s4585_s25 + $0x644] ss:$8 sps:$4 sm:$0xff]  }
 0x1cc   : > { %2593 = vmatprep.subr.bf16.mxu0 %v4355_v4  ;;  %v4425_v4 = vld [vmem:[%s4585_s25 + $0x6b0] ss:$8 sps:$4 sm:$0xff]  }
 0x1cd   : > { %2473 = vmatpush1.bf16.msra.mxu1 %v4350_v5  ;;  %v4433_v5 = vld [vmem:[%s4585_s25 + $0x6c4] ss:$8 sps:$4 sm:$0xff]  }
 0x1ce   : > { %2700 = vmatprep.subr.bf16.mxu1 %v4358_v8  ;;  %v4436_v8 = vld [vmem:[%s4585_s25 + $0x654] ss:$8 sps:$4 sm:$0xff]  }
 0x1cf   : > { %2594 = vmatpush1.bf16.msra.mxu0 %v4353_v53  ;;  %v4431_v53 = vld [vmem:[%s4585_s25 + $0x6c0] ss:$8 sps:$4 sm:$0xff]  }
 0x1d0   : > { %2491 = vmatmul.mubr.bf16.vlgmr.msra.gmra.mrb[48].mxu1 %v1146_v14  ;;  %2821 = vmatprep.subr.bf16.mxu0 %v4361_v12  ;;  %v4434_v12 = vld [vmem:[%s4585_s25 + $0x650] ss:$8 sps:$4 sm:$0xff]  }
 0x1d1   : > { %2701 = vmatpush1.bf16.msra.mxu1 %v4356_v13  ;;  %2732 = vmatprep.mubr.bf16.mxu1 %v4539_v50  ;;  %v4442_v13 = vld [vmem:[%s4585_s25 + $0x664] ss:$8 sps:$4 sm:$0xff]   ;;  %v4437_v14 = vld [vmem:[%s4585_s25 + $0x6d0] ss:$8 sps:$4 sm:$0xff]  }
 0x1d2   : > { %2612 = vmatmul.mubr.bf16.vlgmr.msra.gmra.mrb[64].mxu0 %v1147_v1  ;;  %2702 = vmatprep.subr.bf16.mxu1 %v4364_v15  ;;  %v4445_v15 = vld [vmem:[%s4585_s25 + $0x6e4] ss:$8 sps:$4 sm:$0xff]   ;;  %v4448_v1 = vld [vmem:[%s4585_s25 + $0x674] ss:$8 sps:$4 sm:$0xff]  }
 0x1d3   : > { %2822 = vmatpush1.bf16.msra.mxu0 %v4359_v37  ;;  %2853 = vmatprep.mubr.bf16.mxu0 %v4539_v50  ;;  %v4440_v37 = vld [vmem:[%s4585_s25 + $0x660] ss:$8 sps:$4 sm:$0xff]  }
 0x1d4   : > { %2823 = vmatprep.subr.bf16.mxu0 %v4367_v19  ;;  %v4443_v19 = vld [vmem:[%s4585_s25 + $0x6e0] ss:$8 sps:$4 sm:$0xff]  }
 0x1d5   : > { %2703 = vmatpush1.bf16.msra.mxu1 %v4362_v44  ;;  %v4451_v44 = vld [vmem:[%s4585_s25 + $0x6f4] ss:$8 sps:$4 sm:$0xff]  }
 0x1d6   : > { %2704 = vmatprep.subr.bf16.mxu1 %v4370_v16  ;;  %v4446_v16 = vld [vmem:[%s4585_s25 + $0x670] ss:$8 sps:$4 sm:$0xff]  }
 0x1d7   : > { %2824 = vmatpush1.bf16.msra.mxu0 %v4365_v9  ;;  %v1134_v9 = vmax.f32 %v4901_v55, 0.0  ;;  %v4455_v55 = vld [vmem:[%s4585_s25 + $0x780] ss:$8 sps:$4 sm:$0xff]  }
 0x1d8   : > { %2825 = vmatprep.subr.bf16.mxu0 %v4373_v17  ;;  %v4454_v17 = vld [vmem:[%s4585_s25 + $0x704] ss:$8 sps:$4 sm:$0xff]  }
 0x1d9   : > { %2705 = vmatpush1.bf16.msra.mxu1 %v4368_v18  ;;  %v4449_v18 = vld [vmem:[%s4585_s25 + $0x6f0] ss:$8 sps:$4 sm:$0xff]  }
 0x1da   : > { %2706 = vmatprep.subr.bf16.mxu1 %v4376_v3  ;;  %v1135_v3 = vmax.f32 %v4909_v62, 0.0  ;;  %v4458_v62 = vld [vmem:[%s4585_s25 + $0x710] ss:$8 sps:$4 sm:$0xff]  }
 0x1db   : > { %2826 = vmatpush1.bf16.msra.mxu0 %v4371_v22  ;;  %v4457_v22 = vld [vmem:[%s4585_s25 + $0x784] ss:$8 sps:$4 sm:$0xff]  }
 0x1dc   : > { %2827 = vmatprep.subr.bf16.mxu0 %v4379_v21  ;;  %v4452_v21 = vld [vmem:[%s4585_s25 + $0x700] ss:$8 sps:$4 sm:$0xff]  }
 0x1dd   : > { %2707 = vmatpush1.bf16.msra.mxu1 %v4374_v23  ;;  %v1150_v23 = vpack.c.bf16 %v1134_v9, %v1134_v9 }
 0x1de   : > { %2708 = vmatprep.subr.bf16.mxu1 %v4382_v24  ;;  %v4460_v24 = vld [vmem:[%s4585_s25 + $0x714] ss:$8 sps:$4 sm:$0xff]  }
 0x1df   : > { %2828 = vmatpush1.bf16.msra.mxu0 %v4377_v52  ;;  %v1151_v52 = vpack.c.bf16 %v1135_v3, %v1135_v3 }
 0x1e0   : > { %2829 = vmatprep.subr.bf16.mxu0 %v4385_v27  ;;  %v4463_v27 = vld [vmem:[%s4585_s25 + $0x794] ss:$8 sps:$4 sm:$0xff]  }
 0x1e1   : > { %2709 = vmatpush1.bf16.msra.mxu1 %v4380_v35  ;;  %v4466_v35 = vld [vmem:[%s4585_s25 + $0x724] ss:$8 sps:$4 sm:$0xff]  }
 0x1e2   : > { %2710 = vmatprep.subr.bf16.mxu1 %v4388_v30  ;;  %v4461_v30 = vld [vmem:[%s4585_s25 + $0x790] ss:$8 sps:$4 sm:$0xff]  }
 0x1e3   : > { %2830 = vmatpush1.bf16.msra.mxu0 %v4383_v31  ;;  %v4469_v31 = vld [vmem:[%s4585_s25 + $0x7a4] ss:$8 sps:$4 sm:$0xff]  }
 0x1e4   : > { %2831 = vmatprep.subr.bf16.mxu0 %v4391_v56  ;;  %v4464_v56 = vld [vmem:[%s4585_s25 + $0x720] ss:$8 sps:$4 sm:$0xff]  }
 0x1e5   : > { %2711 = vmatpush1.bf16.msra.mxu1 %v4386_v32  ;;  %v4472_v32 = vld [vmem:[%s4585_s25 + $0x734] ss:$8 sps:$4 sm:$0xff]  }
 0x1e6   : > { %2712 = vmatprep.subr.bf16.mxu1 %v4394_v33  ;;  %v4467_v33 = vld [vmem:[%s4585_s25 + $0x7a0] ss:$8 sps:$4 sm:$0xff]  }
 0x1e7   : > { %2832 = vmatpush1.bf16.msra.mxu0 %v4389_v20  ;;  %v4475_v20 = vld [vmem:[%s4585_s25 + $0x7b4] ss:$8 sps:$4 sm:$0xff]  }
 0x1e8   : > { %2833 = vmatprep.subr.bf16.mxu0 %v4397_v38  ;;  %v4470_v38 = vld [vmem:[%s4585_s25 + $0x730] ss:$8 sps:$4 sm:$0xff]  }
 0x1e9   : > { %2713 = vmatpush1.bf16.msra.mxu1 %v4392_v36  ;;  %v4473_v36 = vld [vmem:[%s4585_s25 + $0x7b0] ss:$8 sps:$4 sm:$0xff]  }
 0x1ea   : > { %2714 = vmatprep.subr.bf16.mxu1 %v4400_v26  ;;  %v4481_v26 = vld [vmem:[%s4585_s25 + $0x7c4] ss:$8 sps:$4 sm:$0xff]  }
 0x1eb   : > { %2834 = vmatpush1.bf16.msra.mxu0 %v4395_v39  ;;  %v4476_v39 = vld [vmem:[%s4585_s25 + $0x740] ss:$8 sps:$4 sm:$0xff]  }
 0x1ec   : > { %2835 = vmatprep.subr.bf16.mxu0 %v4403_v40  ;;  %v4484_v40 = vld [vmem:[%s4585_s25 + $0x754] ss:$8 sps:$4 sm:$0xff]  }
 0x1ed   : > { %2715 = vmatpush1.bf16.msra.mxu1 %v4398_v42  ;;  %v4479_v42 = vld [vmem:[%s4585_s25 + $0x7c0] ss:$8 sps:$4 sm:$0xff]  }
 0x1ee   : > { %2942 = vmatprep.subr.bf16.mxu1 %v4406_v45  ;;  %v4482_v45 = vld [vmem:[%s4585_s25 + $0x750] ss:$8 sps:$4 sm:$0xff]  }
 0x1ef   : > { %2836 = vmatpush1.bf16.msra.mxu0 %v4401_v7  ;;  %v4490_v7 = vld [vmem:[%s4585_s25 + $0x764] ss:$8 sps:$4 sm:$0xff]  }
 0x1f0   : > { %2733 = vmatmul.mubr.bf16.vlgmr.msra.gmra.mrb[52].mxu1 %v1148_v28  ;;  %3063 = vmatprep.subr.bf16.mxu0 %v4409_v48  ;;  %v4485_v48 = vld [vmem:[%s4585_s25 + $0x7d0] ss:$8 sps:$4 sm:$0xff]   ;;  %v4493_v28 = vld [vmem:[%s4585_s25 + $0x7e4] ss:$8 sps:$4 sm:$0xff]  }
 0x1f1   : > { %2943 = vmatpush1.bf16.msra.mxu1 %v4404_v49  ;;  %2974 = vmatprep.mubr.bf16.mxu1 %v4539_v50 }
 0x1f2   : > { %2854 = vmatmul.mubr.bf16.vlgmr.msra.gmra.mrb[68].mxu0 %v1149_v54  ;;  %2944 = vmatprep.subr.bf16.mxu1 %v4412_v10  ;;  %v4488_v54 = vld [vmem:[%s4585_s25 + $0x760] ss:$8 sps:$4 sm:$0xff]  }
 0x1f3   : > { %3064 = vmatpush1.bf16.msra.mxu0 %v4407_v34  ;;  %3095 = vmatprep.mubr.bf16.mxu0 %v4539_v50 }
 0x1f4   : > { %3065 = vmatprep.subr.bf16.mxu0 %v4415_v57 }
 0x1f5   : > { %2945 = vmatpush1.bf16.msra.mxu1 %v4410_v41 }
 0x1f6   : > { %2946 = vmatprep.subr.bf16.mxu1 %v4418_v58 }
 0x1f7   : > { %3066 = vmatpush1.bf16.msra.mxu0 %v4413_v60  ;;  %v4496_v60 = vld [vmem:[%s4585_s25 + $0x774] ss:$8 sps:$4 sm:$0xff]  }
 0x1f8   : > { %3067 = vmatprep.subr.bf16.mxu0 %v4421_v6 }
 0x1f9   : > { %2947 = vmatpush1.bf16.msra.mxu1 %v4416_v61 }
 0x1fa   : > { %2948 = vmatprep.subr.bf16.mxu1 %v4424_v43  ;;  %v4491_v43 = vld [vmem:[%s4585_s25 + $0x7e0] ss:$8 sps:$4 sm:$0xff]  }
 0x1fb   : > { %3068 = vmatpush1.bf16.msra.mxu0 %v4419_v29 }
 0x1fc   : > { %3069 = vmatprep.subr.bf16.mxu0 %v4427_v63  ;;  %v4499_v63 = vld [vmem:[%s4585_s25 + $0x7f4] ss:$8 sps:$4 sm:$0xff]  }
 0x1fd   : > { %2949 = vmatpush1.bf16.msra.mxu1 %v4422_v0  ;;  %v4494_v0 = vld [vmem:[%s4585_s25 + $0x770] ss:$8 sps:$4 sm:$0xff]  }
 0x1fe   : > { %2950 = vmatprep.subr.bf16.mxu1 %v4430_v2  ;;  %v1136_v2 = vmax.f32 %v4897_v51, 0.0 }
 0x1ff   : > { %3070 = vmatpush1.bf16.msra.mxu0 %v4425_v4  ;;  %v4497_v4 = vld [vmem:[%s4585_s25 + $0x7f0] ss:$8 sps:$4 sm:$0xff]  }
 0x200   : > { %3071 = vmatprep.subr.bf16.mxu0 %v4433_v5  ;;  %v1137_v5 = vmax.f32 %v4905_v59, 0.0 }
 0x201   : > { %2951 = vmatpush1.bf16.msra.mxu1 %v4428_v46  ;;  %v1152_v46 = vpack.c.bf16 %v1136_v2, %v1136_v2 }
 0x202   : > { %2952 = vmatprep.subr.bf16.mxu1 %v4436_v8  ;;  %v1153_v8 = vpack.c.bf16 %v1137_v5, %v1137_v5 }
 0x203   : > { %3072 = vmatpush1.bf16.msra.mxu0 %v4431_v53 }
 0x204   : > { %3073 = vmatprep.subr.bf16.mxu0 %v4439_v11 }
 0x205   : > { %2953 = vmatpush1.bf16.msra.mxu1 %v4434_v12 }
 0x206   : > { %2954 = vmatprep.subr.bf16.mxu1 %v4442_v13 }
 0x207   : > { %3074 = vmatpush1.bf16.msra.mxu0 %v4437_v14 }
 0x208   : > { %3075 = vmatprep.subr.bf16.mxu0 %v4445_v15 }
 0x209   : > { %2955 = vmatpush1.bf16.msra.mxu1 %v4440_v37 }
 0x20a   : > { %2956 = vmatprep.subr.bf16.mxu1 %v4448_v1 }
 0x20b   : > { %3076 = vmatpush1.bf16.msra.mxu0 %v4443_v19 }
 0x20c   : > { %3077 = vmatprep.subr.bf16.mxu0 %v4451_v44 }
 0x20d   : > { %2957 = vmatpush1.bf16.msra.mxu1 %v4446_v16 }
 0x20e   : > { %3184 = vmatprep.subr.bf16.mxu1 %v4454_v17 }
 0x20f   : > { %3078 = vmatpush1.bf16.msra.mxu0 %v4449_v18 }
 0x210   : > { %2975 = vmatmul.mubr.bf16.vlgmr.msra.gmra.mrb[56].mxu1 %v1150_v23  ;;  %3305 = vmatprep.subr.bf16.mxu0 %v4457_v22 }
 0x211   : > { %3185 = vmatpush1.bf16.msra.mxu1 %v4452_v21  ;;  %3216 = vmatprep.mubr.bf16.mxu1 %v4539_v50 }
 0x212   : > { %3096 = vmatmul.mubr.bf16.vlgmr.msra.gmra.mrb[72].mxu0 %v1151_v52  ;;  %3186 = vmatprep.subr.bf16.mxu1 %v4460_v24 }
 0x213   : > { %3306 = vmatpush1.bf16.msra.mxu0 %v4455_v55  ;;  %3337 = vmatprep.mubr.bf16.mxu0 %v4539_v50  ;;  %v4478_v50 = vld [vmem:[%s4585_s25 + $0x744] ss:$8 sps:$4 sm:$0xff]  }
 0x214   : > { %3307 = vmatprep.subr.bf16.mxu0 %v4463_v27 }
 0x215   : > { %3187 = vmatpush1.bf16.msra.mxu1 %v4458_v62 }
 0x216   : > { %3188 = vmatprep.subr.bf16.mxu1 %v4466_v35 }
 0x217   : > { %3308 = vmatpush1.bf16.msra.mxu0 %v4461_v30 }
 0x218   : > { %3309 = vmatprep.subr.bf16.mxu0 %v4469_v31 }
 0x219   : > { %3189 = vmatpush1.bf16.msra.mxu1 %v4464_v56 }
 0x21a   : > { %3190 = vmatprep.subr.bf16.mxu1 %v4472_v32 }
 0x21b   : > { %3310 = vmatpush1.bf16.msra.mxu0 %v4467_v33 }
 0x21c   : > { %3311 = vmatprep.subr.bf16.mxu0 %v4475_v20 }
 0x21d   : > { %3191 = vmatpush1.bf16.msra.mxu1 %v4470_v38 }
 0x21e   : > { %3192 = vmatprep.subr.bf16.mxu1 %v4478_v50 }
 0x21f   : > { %3312 = vmatpush1.bf16.msra.mxu0 %v4473_v36 }
 0x220   : > { %3313 = vmatprep.subr.bf16.mxu0 %v4481_v26 }
 0x221   : > { %3193 = vmatpush1.bf16.msra.mxu1 %v4476_v39 }
 0x222   : > { %3194 = vmatprep.subr.bf16.mxu1 %v4484_v40 }
 0x223   : > { %3314 = vmatpush1.bf16.msra.mxu0 %v4479_v42  ;;  %v1524_v47 = vpop.f32.mrb[32].mxu1 }
 0x224   : > { %v1526_v49 = vpop.f32.mrb[33].mxu1  ;;  %3315 = vmatprep.subr.bf16.mxu0 %v4487_v25 }
 0x225   : > { %3195 = vmatpush1.bf16.msra.mxu1 %v4482_v45  ;;  %v1528_v10 = vpop.f32.mrb[34].mxu1  ;;  %v1645_v34 = vpop.f32.mrb[48].mxu0 }
 0x226   : > { %v3348_v57 = vadd.f32 %v1645_v34, %v1524_v47  ;;  %v1529_v41 = vpop.f32.mrb[35].mxu1  ;;  %v1647_v58 = vpop.f32.mrb[49].mxu0  ;;  %3196 = vmatprep.subr.bf16.mxu1 %v4490_v7 }
 0x227   : > { %v3363_v6 = vadd.f32 %v1647_v58, %v1526_v49  ;;  %3316 = vmatpush1.bf16.msra.mxu0 %v4485_v48  ;;  %v1649_v61 = vpop.f32.mrb[50].mxu0 }
 0x228   : > { %v1650_v29 = vpop.f32.mrb[51].mxu0  ;;  %3317 = vmatprep.subr.bf16.mxu0 %v4493_v28 }
 0x229   : > { %3197 = vmatpush1.bf16.msra.mxu1 %v4488_v54 }
 0x22a   : > { %3198 = vmatprep.subr.bf16.mxu1 %v4496_v60 }
 0x22b   : > { %3318 = vmatpush1.bf16.msra.mxu0 %v4491_v43 }
 0x22c   : > { %3319 = vmatprep.subr.bf16.mxu0 %v4499_v63 }
 0x22d   : > { %3199 = vmatpush1.bf16.msra.mxu1 %v4494_v0 }
 0x22f   : > { %3320 = vmatpush1.bf16.msra.mxu0 %v4497_v4 }
 0x230   : > { %3217 = vmatmul.mubr.bf16.vlgmr.msra.gmra.mrb[60].mxu1 %v1152_v46 }
 0x232   : > { %3338 = vmatmul.mubr.bf16.vlgmr.msra.gmra.mrb[76].mxu0 %v1153_v8 }
 0x243   : > { %v1766_v53 = vpop.f32.mrb[36].mxu1 }
 0x244   : > { %v3349_v11 = vadd.f32 %v3348_v57, %v1766_v53  ;;  %v1768_v12 = vpop.f32.mrb[37].mxu1 }
 0x245   : > { %v3364_v13 = vadd.f32 %v3363_v6, %v1768_v12  ;;  %v1770_v14 = vpop.f32.mrb[38].mxu1  ;;  %v1887_v15 = vpop.f32.mrb[52].mxu0 }
 0x246   : > { %v3350_v37 = vadd.f32 %v3349_v11, %v1887_v15  ;;  %v1771_v51 = vpop.f32.mrb[39].mxu1  ;;  %v1889_v1 = vpop.f32.mrb[53].mxu0 }
 0x247   : > { %v3365_v19 = vadd.f32 %v3364_v13, %v1889_v1  ;;  %v1891_v44 = vpop.f32.mrb[54].mxu0 }
 0x248   : > { %v1892_v16 = vpop.f32.mrb[55].mxu0 }
 0x263   : > { %v2008_v59 = vpop.f32.mrb[40].mxu1 }
 0x264   : > { %v3351_v9 = vadd.f32 %v3350_v37, %v2008_v59  ;;  %v2010_v17 = vpop.f32.mrb[41].mxu1 }
 0x265   : > { %v3366_v18 = vadd.f32 %v3365_v19, %v2010_v17  ;;  %v2012_v3 = vpop.f32.mrb[42].mxu1  ;;  %v2129_v22 = vpop.f32.mrb[56].mxu0  ;;  %v3346_v17 = vld [vmem:[#allocation2] sm:$0xff] }
 0x266   : > { %v3352_v21 = vadd.f32 %v3351_v9, %v2129_v22  ;;  %v2013_v23 = vpop.f32.mrb[43].mxu1  ;;  %v2131_v24 = vpop.f32.mrb[57].mxu0 }
 0x267   : > { %v3367_v55 = vadd.f32 %v3366_v18, %v2131_v24  ;;  %v2133_v52 = vpop.f32.mrb[58].mxu0 }
 0x268   : > { %v2134_v27 = vpop.f32.mrb[59].mxu0 }
 0x283   : > { %v2250_v62 = vpop.f32.mrb[44].mxu1 }
 0x284   : > { %v3353_v35 = vadd.f32 %v3352_v21, %v2250_v62  ;;  %v2252_v30 = vpop.f32.mrb[45].mxu1  ;;  %v3347_v21 = vld [vmem:[#allocation2 + $0x8] sm:$0xff]  ;;  %v3390_v62 = vlaneseq (!%p3819_p5) }
 0x285   : > { %v3368_v31 = vadd.f32 %v3367_v55, %v2252_v30  ;;  %v2254_v56 = vpop.f32.mrb[46].mxu1  ;;  %v2371_v32 = vpop.f32.mrb[60].mxu0  ;;  %v3388_v30 = vld [vmem:[%s5170_s4] sm:$0x3] (!%p3819_p5) }
 0x286   : > { %v3354_v33 = vadd.f32 %v3353_v35, %v2371_v32  ;;  %v2255_v20 = vpop.f32.mrb[47].mxu1  ;;  %v2373_v38 = vpop.f32.mrb[61].mxu0  ;;  %v3391_v35 = vshrl.u32 (!%p3819_p5), %v3390_v62, 7 }
 0x287   : > { %v3369_v50 = vadd.f32 %v3368_v31, %v2373_v38  ;;  %v2375_v36 = vpop.f32.mrb[62].mxu0 }
 0x288   : > { %v2376_v26 = vpop.f32.mrb[63].mxu0  ;;  %v3392_v31 = vsub.s32 (!%p3819_p5), 0, %v3391_v35  ;;  %v3396_v56 = vsub.s32 (!%p3819_p5), 1, %v3391_v35 }
 0x28a   : > { %v3393_v20 = vrot.slane (!%p3819_p5), %v3388_v30, %v3392_v31  ;;  %v3397_v38 = vrot.slane (!%p3819_p5), %v3388_v30, %v3396_v56 }
 0x2a3   : > { %v2492_v39 = vpop.f32.mrb[48].mxu1 }
 0x2a4   : > { %v3355_v40 = vadd.f32 %v3354_v33, %v2492_v39  ;;  %v2494_v42 = vpop.f32.mrb[49].mxu1 }
 0x2a5   : > { %v3370_v25 = vadd.f32 %v3369_v50, %v2494_v42  ;;  %v2496_v45 = vpop.f32.mrb[50].mxu1  ;;  %v2613_v7 = vpop.f32.mrb[64].mxu0 }
 0x2a6   : > { %v3356_v47 = vadd.f32 %v3355_v40, %v2613_v7  ;;  %v2497_v48 = vpop.f32.mrb[51].mxu1  ;;  %v2615_v49 = vpop.f32.mrb[65].mxu0 }
 0x2a7   : > { %v3371_v28 = vadd.f32 %v3370_v25, %v2615_v49  ;;  %v2617_v10 = vpop.f32.mrb[66].mxu0 }
 0x2a8   : > { %v2618_v34 = vpop.f32.mrb[67].mxu0 }
 0x2c3   : > { %v2734_v54 = vpop.f32.mrb[52].mxu1 }
 0x2c4   : > { %v3357_v57 = vadd.f32 %v3356_v47, %v2734_v54  ;;  %v2736_v41 = vpop.f32.mrb[53].mxu1 }
 0x2c5   : > { %v3372_v58 = vadd.f32 %v3371_v28, %v2736_v41  ;;  %v2738_v60 = vpop.f32.mrb[54].mxu1  ;;  %v2855_v6 = vpop.f32.mrb[68].mxu0 }
 0x2c6   : > { %v3358_v61 = vadd.f32 %v3357_v57, %v2855_v6  ;;  %v2739_v43 = vpop.f32.mrb[55].mxu1  ;;  %v2857_v29 = vpop.f32.mrb[69].mxu0 }
 0x2c7   : > { %v3373_v63 = vadd.f32 %v3372_v58, %v2857_v29  ;;  %v2859_v0 = vpop.f32.mrb[70].mxu0 }
 0x2c8   : > { %v2860_v2 = vpop.f32.mrb[71].mxu0 }
 0x2e3   : > { %v2976_v4 = vpop.f32.mrb[56].mxu1 }
 0x2e4   : > { %v3359_v5 = vadd.f32 %v3358_v61, %v2976_v4  ;;  %v2978_v46 = vpop.f32.mrb[57].mxu1 }
 0x2e5   : > { %v3374_v8 = vadd.f32 %v3373_v63, %v2978_v46  ;;  %v2980_v53 = vpop.f32.mrb[58].mxu1  ;;  %v3097_v11 = vpop.f32.mrb[72].mxu0 }
 0x2e6   : > { %v3360_v12 = vadd.f32 %v3359_v5, %v3097_v11  ;;  %v2981_v13 = vpop.f32.mrb[59].mxu1  ;;  %v3099_v14 = vpop.f32.mrb[73].mxu0 }
 0x2e7   : > { %v3375_v15 = vadd.f32 %v3374_v8, %v3099_v14  ;;  %v3101_v37 = vpop.f32.mrb[74].mxu0 }
 0x2e8   : > { %v3102_v51 = vpop.f32.mrb[75].mxu0 }
 0x303   : > { %v3218_v1 = vpop.f32.mrb[60].mxu1 }
 0x304   : > { %v3361_v19 = vadd.f32 %v3360_v12, %v3218_v1  ;;  %v3220_v44 = vpop.f32.mrb[61].mxu1 }
 0x305   : > { %v3376_v16 = vadd.f32 %v3375_v15, %v3220_v44  ;;  %v3222_v59 = vpop.f32.mrb[62].mxu1  ;;  %v3339_v9 = vpop.f32.mrb[76].mxu0  ;;  %3385 = sbr.rel (%p3819_p5) target bundleno = 792 (0x318), region = 48 }
 0x306   : > { %v3362_v18 = vadd.f32 %v3361_v19, %v3339_v9  ;;  %v3223_v3 = vpop.f32.mrb[63].mxu1  ;;  %v3341_v22 = vpop.f32.mrb[77].mxu0 }
 0x307   : > { %v3377_v23 = vadd.f32 %v3376_v16, %v3341_v22  ;;  %v3343_v24 = vpop.f32.mrb[78].mxu0 }
 0x308   : > { %v3378_v55 = vadd.f32 %v3362_v18, %v3346_v17  ;;  %v3344_v52 = vpop.f32.mrb[79].mxu0 }
 0x309   : > { %v3379_v27 = vadd.f32 %v3377_v23, %v3347_v21 }
 0x30a   : > { %3380 = vst [vmem:[#allocation2] sm:$0xff] %v3378_v55 }
 0x30b   : > { %3381 = vst [vmem:[#allocation2 + $0x8] sm:$0xff] %v3379_v27 }
 0x311   : > { %v3386_v32 = vld [vmem:[#allocation2] sm:$0xff] }
 0x312   : > { %v3387_v33 = vld [vmem:[#allocation2 + $0x8] sm:$0xff]  ;;  %v3400_v50 = vadd.f32 %v3393_v20, %v3386_v32 }
 0x313   : > { %v3401_v36 = vadd.f32 %v3397_v38, %v3387_v33 }
 0x315   : > { %v3404_v26 = vcombine.low %v3400_v50, %v3401_v36 }
 0x317   : > { %3820 = vst.sshfl [vmem:[#allocation3] sm:$0x33 pattern:$0x76325410] %v3404_v26 }
 0x318 PF: > { %p4007_p6 = scmp.eq.s32.totalorder %s4577_s19, 3  ;;  %s4540_s26 = smov [#allocation3]  }
 0x319   : > { %s3421_s27 = sshll.u32 %s4540_s26, 4  ;;  %s3422_s27 = int_to_ptr.vmem [resolvable:$true] %s3421_s27 }
 0x31a   : > { %s4500_s29 = scalar_lea.vmem %s3422_s27, 64  ;;  %p4507_p10 = scmp.lt.s32.totalorder %s3422_s27, %s3422_s27 }
 0x31b   : > { %p4501_p7 = scmp.ne.s32.totalorder %s3422_s27, %s4500_s29  ;;  %p4508_p11 = scmp.lt.s32.totalorder %s4500_s29, %s4500_s29 }
 0x31d   : > { %p4502_p8 = pnand %p4501_p7, %p4007_p6  ;;  %p4509_p12 = por %p4508_p11, %p4507_p10 }
 0x31f   : > { %p4503_p9 = pneg %p4502_p8 }
 0x321   : > { %p4510_p13 = pnand %p4509_p12, %p4503_p9 }
 0x323   : > { %4513 = shalt.err (!%p4510_p13)
}
 0x324   : > { %s4514_s7 = scalar_lea.hbm %s5171_s5, 64 }
 0x325   : > { %p4515_p0 = scmp.ne.s32.totalorder %s5171_s5, %s4514_s7  ;;  %p4520_p3 = scmp.lt.u32.totalorder %s4514_s7, %s5171_s5 }
 0x327   : > { %p4516_p1 = pnand %p4515_p0, %p4007_p6 }
 0x329   : > { %p4517_p2 = pneg %p4516_p1 }
 0x32b   : > { %p4522_p4 = pnand %p4520_p3, %p4517_p2 }
 0x32d   : > { %4525 = shalt.err (!%p4522_p4)
}
 0x32e   : > { %4004 = dma.vmem_to_hbm [thread:$0]  (%p4007_p6), %s3422_s27, 64, %s5171_s5, [#allocation4]  }
 0x32f   : > { %4531 = dma.done.wait (%p4007_p6), [#allocation4], 64  }
 0x330   : > { %4533 = vsyncadd (%p4007_p6), [#allocation4], 4294967232 }
 0x331 PF: > { %s16_s18 = sadd.s32 1, %s4536_s18  }
 0x332   : > { %p13_p5 = scmp.ge.s32.totalorder %s16_s18, 6  }
 0x334   :  { %15 = sbr.rel (!%p13_p5) target bundleno = 1 (0x1), region = 78 }
 0x33b   :  { %3434 = vsyncpa [#allocation4], 1 }
 0x33c   :  { %3436 = vsyncpa [#allocation4 + $0x1], 1 }

</bundles_post_ra>
